<compile_context>
chip_gen: v7x
topology: tpu7x:2x2x1
jax: 0.10.0
libtpu: 0.0.40
codegen_flags: <defaults>
</compile_context>

<pallas_src>
import functools
import math

import jax
import jax.numpy as jnp
from jax.experimental import pallas as pl
from jax.experimental.pallas import tpu as pltpu

BN_EPS = 1e-5


def _round_up(x, m):
    return (x + m - 1) // m * m


# ---------------- Phase 1: fused im2col + conv (MXU) + per-tile batch statistics ----------
def _conv_stats_kernel(r0_ref, r1_ref, r2_ref, w_ref, y_ref, s_ref, *, tho, wo, cp):
    """One block of `tho` output rows for one batch element.

    r{kh}_ref : (tho, wo+1, C2p) bf16  -- stride-2 row strip kh, column-pair layout
    w_ref     : (6, C2p, cp)     bf16  -- per-(kh, pair-offset) weight slices (resident)
    y_ref     : (tho*wo, cp)     bf16  -- pre-BN conv output tile
    s_ref     : (2, cp)          f32   -- per-tile [sum; sum of squares]
    """
    wo1 = wo + 1
    ssum = jnp.zeros((1, cp), jnp.float32)
    ssq = jnp.zeros((1, cp), jnp.float32)
    for r in range(tho):  # unrolled; independent rows keep the MXU pipeline fed
        acc = jnp.zeros((wo, cp), jnp.float32)
        for j, strip in enumerate((r0_ref, r1_ref, r2_ref)):
            left = strip[r, 0:wo, :]      # cols {2w, 2w+1}   -> taps kw=0, kw=1
            right = strip[r, 1:wo1, :]    # cols {2w+2, 2w+3} -> tap kw=2 (+ zero weight rows)
            acc = acc + jnp.dot(left, w_ref[2 * j],
                                preferred_element_type=jnp.float32)
            acc = acc + jnp.dot(right, w_ref[2 * j + 1],
                                preferred_element_type=jnp.float32)
        y_ref[r * wo:(r + 1) * wo, :] = acc.astype(y_ref.dtype)
        # Statistics from the f32 accumulator (not the bf16-rounded store).
        ssum = ssum + jnp.sum(acc, axis=0, keepdims=True)
        ssq = ssq + jnp.sum(acc * acc, axis=0, keepdims=True)
    s_ref[0:1, :] = ssum
    s_ref[1:2, :] = ssq


# ---------------- Phase 2: BatchNorm (precomputed scale/shift) + ReLU + NCHW transpose -----
def _bn_relu_t_kernel(y_ref, scale_ref, shift_ref, o_ref):
    z = y_ref[...].astype(jnp.float32) * scale_ref[...] + shift_ref[...]
    z = jnp.maximum(z, 0.0)
    # Fold the NHWC->NCHW layout change into the kernel: (TM2, Cp) -> (Cp, TM2).
    o_ref[...] = jnp.transpose(z).astype(o_ref.dtype)


def downsample_forward(x_nchw, weight, gamma, beta):
    """Forward of Downsample. x_nchw: (N, C, H, W); weight: (C, C, 3, 3) PyTorch OIHW."""
    N, C, H, W = x_nchw.shape
    Ho = (H + 2 - 3) // 2 + 1
    Wo = (W + 2 - 3) // 2 + 1
    M = N * Ho * Wo                       # true element count entering the BN statistics
    C2 = 2 * C
    C2p = _round_up(C2, 128)              # contraction dim (MXU / lane aligned)
    Cp = _round_up(C, 128)                # output channels (lane-dense stores)
    Wo1 = Wo + 1
    Wcols = 2 * Wo + 2                    # padded input width, column-pair layout

    # Output-row tile: ~128 rows of the implicit (M, Cout) matmul; TM = tho*Wo multiple of 8.
    tho = max(1, min(Ho, max(1, 128 // max(Wo, 1))))
    g = 8 // math.gcd(Wo, 8)
    tho = min(_round_up(tho, g), _round_up(32, g))
    HoP = _round_up(Ho, tho)
    n_i = HoP // tho
    TM = tho * Wo
    MrowP = HoP * Wo

    # ---- glue (bf16 before any reshuffle): NCHW -> NHWC, pad, 3 stride-2 row strips ----
    x_nhwc = jnp.transpose(x_nchw, (0, 2, 3, 1)).astype(jnp.bfloat16)
    xp = jnp.pad(x_nhwc, ((0, 0), (1, 1), (1, Wcols - W - 1), (0, 0)))
    strips = []
    for kh in range(3):
        s = xp[:, kh:kh + 2 * Ho:2, :, :]          # (N, Ho, Wcols, C): padded rows 2*ho + kh
        s = s.reshape(N, Ho, Wo1, C2)              # column pairs (2w, 2w+1) -> 2C lanes
        s = jnp.pad(s, ((0, 0), (0, HoP - Ho), (0, 0), (0, C2p - C2)))
        strips.append(s)

    # Weight (Cout, Cin, kh, kw) -> 6 slices of shape (C2p, Cp):
    #   slice 2*kh   : [W[:,:,kh,0]; W[:,:,kh,1]]  (applied to the "left" column pair)
    #   slice 2*kh+1 : [W[:,:,kh,2]; 0]            (applied to the "right" column pair)
    wt = jnp.transpose(weight, (2, 3, 1, 0)).astype(jnp.float32)   # (kh, kw, Cin, Cout)
    zblk = jnp.zeros((C, C), jnp.float32)
    mats = []
    for kh in range(3):
        mats.append(jnp.concatenate([wt[kh, 0], wt[kh, 1]], axis=0))
        mats.append(jnp.concatenate([wt[kh, 2], zblk], axis=0))
    wk = jnp.stack(mats, axis=0)                                    # (6, 2C, C)
    wk = jnp.pad(wk, ((0, 0), (0, C2p - C2), (0, Cp - C))).astype(jnp.bfloat16)

    # ---- phase 1: conv + per-tile partial sums / sums-of-squares ----
    need1 = (2 * (3 * tho * Wo1 * C2p * 2) + 2 * (6 * C2p * Cp * 2)
             + 2 * (TM * Cp * 2) + 2 * (2 * Cp * 4))
    cost1 = pl.CostEstimate(
        flops=2 * N * MrowP * (6 * C2p) * Cp,
        transcendentals=0,
        bytes_accessed=(3 * N * HoP * Wo1 * C2p * 2 + 6 * C2p * Cp * 2
                        + N * MrowP * Cp * 2 + N * n_i * 2 * Cp * 4),
    )
    strip_spec = pl.BlockSpec((None, tho, Wo1, C2p), lambda n, i: (n, i, 0, 0))
    conv_y, stats = pl.pallas_call(
        functools.partial(_conv_stats_kernel, tho=tho, wo=Wo, cp=Cp),
        out_shape=(
            jax.ShapeDtypeStruct((N, MrowP, Cp), jnp.bfloat16),    # pre-BN conv (bf16)
            jax.ShapeDtypeStruct((N, n_i, 2, Cp), jnp.float32),    # per-tile [sum; sumsq]
        ),
        grid_spec=pltpu.PrefetchScalarGridSpec(
            num_scalar_prefetch=0,
            grid=(N, n_i),
            in_specs=[
                strip_spec, strip_spec, strip_spec,
                pl.BlockSpec((6, C2p, Cp), lambda n, i: (0, 0, 0)),  # resident weight
            ],
            out_specs=(
                pl.BlockSpec((None, TM, Cp), lambda n, i: (n, i, 0)),
                pl.BlockSpec((None, None, 2, Cp), lambda n, i: (n, i, 0, 0)),
            ),
        ),
        compiler_params=pltpu.CompilerParams(
            dimension_semantics=("parallel", "parallel"),
            vmem_limit_bytes=int(max(32 << 20, 2 * need1)),
        ),
        cost_estimate=cost1,
    )(strips[0], strips[1], strips[2], wk)

    # ---- tiny per-channel finalize (train-mode BN over the full batch M) ----
    ssum = jnp.sum(stats[:, :, 0, :], axis=(0, 1))
    ssq = jnp.sum(stats[:, :, 1, :], axis=(0, 1))
    mean = ssum / M                                  # padded rows/channels are exact zeros
    var = jnp.maximum(ssq / M - mean * mean, 0.0)    # biased variance (PyTorch train BN)
    gamma_p = jnp.pad(gamma.astype(jnp.float32), (0, Cp - C))
    beta_p = jnp.pad(beta.astype(jnp.float32), (0, Cp - C))
    scale_v = gamma_p * jax.lax.rsqrt(var + BN_EPS)
    shift_v = beta_p - mean * scale_v
    scale2d = scale_v.reshape(1, Cp)
    shift2d = shift_v.reshape(1, Cp)

    # ---- phase 2: y*scale + shift, ReLU, fused transpose to channel-major (NCHW) ----
    if MrowP % 128 == 0:
        TM2 = 128
        for cand in (2048, 1024, 512, 256, 128):
            if MrowP % cand == 0:
                TM2 = cand
                break
    else:
        TM2 = MrowP                                  # full-dim block (exception to 128-rule)
    n_j = MrowP // TM2
    need2 = 2 * (TM2 * Cp * 2) + 2 * (Cp * TM2 * 4) + 4 * Cp * 4
    cost2 = pl.CostEstimate(
        flops=2 * N * MrowP * Cp,
        transcendentals=0,
        bytes_accessed=N * MrowP * Cp * 2 + N * MrowP * Cp * 4 + 2 * Cp * 4,
    )
    out_cm = pl.pallas_call(
        _bn_relu_t_kernel,
        out_shape=jax.ShapeDtypeStruct((N, Cp, MrowP), jnp.float32),
        grid_spec=pltpu.PrefetchScalarGridSpec(
            num_scalar_prefetch=0,
            grid=(N, n_j),
            in_specs=[
                pl.BlockSpec((None, TM2, Cp), lambda n, j: (n, j, 0)),
                pl.BlockSpec((1, Cp), lambda n, j: (0, 0)),   # scale, resident
                pl.BlockSpec((1, Cp), lambda n, j: (0, 0)),   # shift, resident
            ],
            out_specs=pl.BlockSpec((None, Cp, TM2), lambda n, j: (n, 0, j)),
        ),
        compiler_params=pltpu.CompilerParams(
            dimension_semantics=("parallel", "parallel"),
            vmem_limit_bytes=int(max(32 << 20, 2 * need2)),
        ),
        cost_estimate=cost2,
    )(conv_y, scale2d, shift2d)

    # ---- unpad (no-op copy when C is a multiple of 128 and Ho needed no padding) ----
    out = out_cm[:, :C, :Ho * Wo].reshape(N, C, Ho, Wo)
    return out.astype(x_nchw.dtype)


def _reference(x_nchw, weight, gamma, beta):
    """Pure-JAX f32 reference: conv -> train-mode BN -> ReLU."""
    y = jax.lax.conv_general_dilated(
        x_nchw.astype(jnp.float32), weight.astype(jnp.float32),
        window_strides=(2, 2), padding=((1, 1), (1, 1)),
        dimension_numbers=("NCHW", "OIHW", "NCHW"))
    mean = jnp.mean(y, axis=(0, 2, 3), keepdims=True)
    var = jnp.mean(jnp.square(y - mean), axis=(0, 2, 3), keepdims=True)
    y = (y - mean) * jax.lax.rsqrt(var + BN_EPS)
    y = y * gamma.reshape(1, -1, 1, 1) + beta.reshape(1, -1, 1, 1)
    return jnp.maximum(y, 0.0)


if __name__ == "__main__":
    key = jax.random.PRNGKey(0)
    k_x, k_w = jax.random.split(key)

    N, C, H, W = 2, 4, 16, 16
    x = jax.random.normal(k_x, (N, C, H, W), dtype=jnp.float32)

    # Deterministic parameter init (synthetic): conv weight ~ scaled normal,
    # BatchNorm gamma=1, beta=0 (PyTorch defaults for a fresh module).
    fan_in = C * 3 * 3
    weight = jax.random.normal(k_w, (C, C, 3, 3), dtype=jnp.float32) / jnp.sqrt(fan_in)
    gamma = jnp.ones((C,), dtype=jnp.float32)
    beta = jnp.zeros((C,), dtype=jnp.float32)

    out = downsample_forward(x, weight, gamma, beta)
    out = jax.block_until_ready(out)

    ref = _reference(x, weight, gamma, beta)
    assert out.shape == (N, C, H // 2, W // 2), out.shape
    # bf16 MXU operands (f32 accumulation) -> tolerance loosened vs the pure-f32 reference.
    assert jnp.allclose(out, ref, atol=5e-2, rtol=5e-2), float(jnp.max(jnp.abs(out - ref)))

    print("KERNEL_OK")
</pallas_src>

<mosaic_0001>
module attributes {stable_mosaic.version = 11 : i64} {
  func.func @_conv_stats_kernel(%arg0: i32, %arg1: i32, %arg2: memref<1x8x9x128xbf16, #tpu.memory_space<vmem>>, %arg3: memref<1x8x9x128xbf16, #tpu.memory_space<vmem>>, %arg4: memref<1x8x9x128xbf16, #tpu.memory_space<vmem>>, %arg5: memref<6x128x128xbf16, #tpu.memory_space<vmem>>, %arg6: memref<1x64x128xbf16, #tpu.memory_space<vmem>>, %arg7: memref<1x1x2x128xf32, #tpu.memory_space<vmem>>) attributes {dimension_semantics = [#tpu.dimension_semantics<parallel>, #tpu.dimension_semantics<parallel>], iteration_bounds = array<i64: 2, 1>, scalar_prefetch = 0 : i64, scratch_operands = 0 : i64, tpu.core_type = #tpu.core_type<tc>, window_params = [{transform_indices = @transform_0, window_bounds = array<i64: 1, 8, 9, 128>}, {transform_indices = @transform_1, window_bounds = array<i64: 1, 8, 9, 128>}, {transform_indices = @transform_2, window_bounds = array<i64: 1, 8, 9, 128>}, {pipeline_mode = #tpu.pipeline_mode<synchronous>, transform_indices = @transform_3, window_bounds = array<i64: 6, 128, 128>}, {transform_indices = @transform_4, window_bounds = array<i64: 1, 64, 128>}, {transform_indices = @transform_5, window_bounds = array<i64: 1, 1, 2, 128>}]} {
    %cst = arith.constant 0.000000e+00 : f32
    %0 = vector.broadcast %cst : f32 to vector<1x128xf32>
    %cst_0 = arith.constant 0.000000e+00 : f32
    %1 = vector.broadcast %cst_0 : f32 to vector<1x128xf32>
    %cst_1 = arith.constant 0.000000e+00 : f32
    %2 = vector.broadcast %cst_1 : f32 to vector<8x128xf32>
    %c0 = arith.constant 0 : index
    %c0_2 = arith.constant 0 : index
    %c0_3 = arith.constant 0 : index
    %c0_4 = arith.constant 0 : index
    %3 = vector.load %arg2[%c0, %c0_2, %c0_3, %c0_4] : memref<1x8x9x128xbf16, #tpu.memory_space<vmem>>, vector<1x1x8x128xbf16>
    %4 = vector.shape_cast %3 : vector<1x1x8x128xbf16> to vector<8x128xbf16>
    %c0_5 = arith.constant 0 : index
    %c0_6 = arith.constant 0 : index
    %c1 = arith.constant 1 : index
    %c0_7 = arith.constant 0 : index
    %5 = vector.load %arg2[%c0_5, %c0_6, %c1, %c0_7] : memref<1x8x9x128xbf16, #tpu.memory_space<vmem>>, vector<1x1x8x128xbf16>
    %6 = vector.shape_cast %5 : vector<1x1x8x128xbf16> to vector<8x128xbf16>
    %c0_8 = arith.constant 0 : index
    %c0_9 = arith.constant 0 : index
    %c0_10 = arith.constant 0 : index
    %7 = vector.load %arg5[%c0_8, %c0_9, %c0_10] : memref<6x128x128xbf16, #tpu.memory_space<vmem>>, vector<1x128x128xbf16>
    %8 = vector.shape_cast %7 : vector<1x128x128xbf16> to vector<128x128xbf16>
    %cst_11 = arith.constant dense<0.000000e+00> : vector<8x128xf32>
    %9 = tpu.matmul %4, %8, %cst_11 {dimension_numbers = #tpu.dot_dimension_numbers<[1], [0], [0], [1], [0, 0, 1, 1], [], []>} : vector<8x128xbf16>, vector<128x128xbf16>, vector<8x128xf32> -> vector<8x128xf32>
    %10 = arith.addf %2, %9 : vector<8x128xf32>
    %c1_12 = arith.constant 1 : index
    %c0_13 = arith.constant 0 : index
    %c0_14 = arith.constant 0 : index
    %11 = vector.load %arg5[%c1_12, %c0_13, %c0_14] : memref<6x128x128xbf16, #tpu.memory_space<vmem>>, vector<1x128x128xbf16>
    %12 = vector.shape_cast %11 : vector<1x128x128xbf16> to vector<128x128xbf16>
    %cst_15 = arith.constant dense<0.000000e+00> : vector<8x128xf32>
    %13 = tpu.matmul %6, %12, %cst_15 {dimension_numbers = #tpu.dot_dimension_numbers<[1], [0], [0], [1], [0, 0, 1, 1], [], []>} : vector<8x128xbf16>, vector<128x128xbf16>, vector<8x128xf32> -> vector<8x128xf32>
    %14 = arith.addf %10, %13 : vector<8x128xf32>
    %c0_16 = arith.constant 0 : index
    %c0_17 = arith.constant 0 : index
    %c0_18 = arith.constant 0 : index
    %c0_19 = arith.constant 0 : index
    %15 = vector.load %arg3[%c0_16, %c0_17, %c0_18, %c0_19] : memref<1x8x9x128xbf16, #tpu.memory_space<vmem>>, vector<1x1x8x128xbf16>
    %16 = vector.shape_cast %15 : vector<1x1x8x128xbf16> to vector<8x128xbf16>
    %c0_20 = arith.constant 0 : index
    %c0_21 = arith.constant 0 : index
    %c1_22 = arith.constant 1 : index
    %c0_23 = arith.constant 0 : index
    %17 = vector.load %arg3[%c0_20, %c0_21, %c1_22, %c0_23] : memref<1x8x9x128xbf16, #tpu.memory_space<vmem>>, vector<1x1x8x128xbf16>
    %18 = vector.shape_cast %17 : vector<1x1x8x128xbf16> to vector<8x128xbf16>
    %c2 = arith.constant 2 : index
    %c0_24 = arith.constant 0 : index
    %c0_25 = arith.constant 0 : index
    %19 = vector.load %arg5[%c2, %c0_24, %c0_25] : memref<6x128x128xbf16, #tpu.memory_space<vmem>>, vector<1x128x128xbf16>
    %20 = vector.shape_cast %19 : vector<1x128x128xbf16> to vector<128x128xbf16>
    %cst_26 = arith.constant dense<0.000000e+00> : vector<8x128xf32>
    %21 = tpu.matmul %16, %20, %cst_26 {dimension_numbers = #tpu.dot_dimension_numbers<[1], [0], [0], [1], [0, 0, 1, 1], [], []>} : vector<8x128xbf16>, vector<128x128xbf16>, vector<8x128xf32> -> vector<8x128xf32>
    %22 = arith.addf %14, %21 : vector<8x128xf32>
    %c3 = arith.constant 3 : index
    %c0_27 = arith.constant 0 : index
    %c0_28 = arith.constant 0 : index
    %23 = vector.load %arg5[%c3, %c0_27, %c0_28] : memref<6x128x128xbf16, #tpu.memory_space<vmem>>, vector<1x128x128xbf16>
    %24 = vector.shape_cast %23 : vector<1x128x128xbf16> to vector<128x128xbf16>
    %cst_29 = arith.constant dense<0.000000e+00> : vector<8x128xf32>
    %25 = tpu.matmul %18, %24, %cst_29 {dimension_numbers = #tpu.dot_dimension_numbers<[1], [0], [0], [1], [0, 0, 1, 1], [], []>} : vector<8x128xbf16>, vector<128x128xbf16>, vector<8x128xf32> -> vector<8x128xf32>
    %26 = arith.addf %22, %25 : vector<8x128xf32>
    %c0_30 = arith.constant 0 : index
    %c0_31 = arith.constant 0 : index
    %c0_32 = arith.constant 0 : index
    %c0_33 = arith.constant 0 : index
    %27 = vector.load %arg4[%c0_30, %c0_31, %c0_32, %c0_33] : memref<1x8x9x128xbf16, #tpu.memory_space<vmem>>, vector<1x1x8x128xbf16>
    %28 = vector.shape_cast %27 : vector<1x1x8x128xbf16> to vector<8x128xbf16>
    %c0_34 = arith.constant 0 : index
    %c0_35 = arith.constant 0 : index
    %c1_36 = arith.constant 1 : index
    %c0_37 = arith.constant 0 : index
    %29 = vector.load %arg4[%c0_34, %c0_35, %c1_36, %c0_37] : memref<1x8x9x128xbf16, #tpu.memory_space<vmem>>, vector<1x1x8x128xbf16>
    %30 = vector.shape_cast %29 : vector<1x1x8x128xbf16> to vector<8x128xbf16>
    %c4 = arith.constant 4 : index
    %c0_38 = arith.constant 0 : index
    %c0_39 = arith.constant 0 : index
    %31 = vector.load %arg5[%c4, %c0_38, %c0_39] : memref<6x128x128xbf16, #tpu.memory_space<vmem>>, vector<1x128x128xbf16>
    %32 = vector.shape_cast %31 : vector<1x128x128xbf16> to vector<128x128xbf16>
    %cst_40 = arith.constant dense<0.000000e+00> : vector<8x128xf32>
    %33 = tpu.matmul %28, %32, %cst_40 {dimension_numbers = #tpu.dot_dimension_numbers<[1], [0], [0], [1], [0, 0, 1, 1], [], []>} : vector<8x128xbf16>, vector<128x128xbf16>, vector<8x128xf32> -> vector<8x128xf32>
    %34 = arith.addf %26, %33 : vector<8x128xf32>
    %c5 = arith.constant 5 : index
    %c0_41 = arith.constant 0 : index
    %c0_42 = arith.constant 0 : index
    %35 = vector.load %arg5[%c5, %c0_41, %c0_42] : memref<6x128x128xbf16, #tpu.memory_space<vmem>>, vector<1x128x128xbf16>
    %36 = vector.shape_cast %35 : vector<1x128x128xbf16> to vector<128x128xbf16>
    %cst_43 = arith.constant dense<0.000000e+00> : vector<8x128xf32>
    %37 = tpu.matmul %30, %36, %cst_43 {dimension_numbers = #tpu.dot_dimension_numbers<[1], [0], [0], [1], [0, 0, 1, 1], [], []>} : vector<8x128xbf16>, vector<128x128xbf16>, vector<8x128xf32> -> vector<8x128xf32>
    %38 = arith.addf %34, %37 : vector<8x128xf32>
    %39 = arith.truncf %38 : vector<8x128xf32> to vector<8x128xbf16>
    %c0_44 = arith.constant 0 : index
    %c0_45 = arith.constant 0 : index
    %c0_46 = arith.constant 0 : index
    %40 = vector.load %arg6[%c0_44, %c0_45, %c0_46] : memref<1x64x128xbf16, #tpu.memory_space<vmem>>, vector<1x8x128xbf16>
    %41 = vector.shape_cast %40 : vector<1x8x128xbf16> to vector<8x128xbf16>
    %42 = vector.shape_cast %39 : vector<8x128xbf16> to vector<1x8x128xbf16>
    tpu.vector_store %arg6[%c0_44, %c0_45, %c0_46], %42 {strides = array<i32>} : memref<1x64x128xbf16, #tpu.memory_space<vmem>>, vector<1x8x128xbf16>,
    %cst_47 = arith.constant dense<0.000000e+00> : vector<128xf32>
    %43 = vector.multi_reduction <add>, %38, %cst_47 [0] : vector<8x128xf32> to vector<128xf32>
    %44 = vector.shape_cast %43 : vector<128xf32> to vector<1x128xf32>
    %45 = arith.addf %0, %44 : vector<1x128xf32>
    %46 = arith.mulf %38, %38 : vector<8x128xf32>
    %cst_48 = arith.constant dense<0.000000e+00> : vector<128xf32>
    %47 = vector.multi_reduction <add>, %46, %cst_48 [0] : vector<8x128xf32> to vector<128xf32>
    %48 = vector.shape_cast %47 : vector<128xf32> to vector<1x128xf32>
    %49 = arith.addf %1, %48 : vector<1x128xf32>
    %cst_49 = arith.constant 0.000000e+00 : f32
    %50 = vector.broadcast %cst_49 : f32 to vector<8x128xf32>
    %c0_50 = arith.constant 0 : index
    %c1_51 = arith.constant 1 : index
    %c0_52 = arith.constant 0 : index
    %c0_53 = arith.constant 0 : index
    %51 = vector.load %arg2[%c0_50, %c1_51, %c0_52, %c0_53] : memref<1x8x9x128xbf16, #tpu.memory_space<vmem>>, vector<1x1x8x128xbf16>
    %52 = vector.shape_cast %51 : vector<1x1x8x128xbf16> to vector<8x128xbf16>
    %c0_54 = arith.constant 0 : index
    %c1_55 = arith.constant 1 : index
    %c1_56 = arith.constant 1 : index
    %c0_57 = arith.constant 0 : index
    %53 = vector.load %arg2[%c0_54, %c1_55, %c1_56, %c0_57] : memref<1x8x9x128xbf16, #tpu.memory_space<vmem>>, vector<1x1x8x128xbf16>
    %54 = vector.shape_cast %53 : vector<1x1x8x128xbf16> to vector<8x128xbf16>
    %c0_58 = arith.constant 0 : index
    %c0_59 = arith.constant 0 : index
    %c0_60 = arith.constant 0 : index
    %55 = vector.load %arg5[%c0_58, %c0_59, %c0_60] : memref<6x128x128xbf16, #tpu.memory_space<vmem>>, vector<1x128x128xbf16>
    %56 = vector.shape_cast %55 : vector<1x128x128xbf16> to vector<128x128xbf16>
    %cst_61 = arith.constant dense<0.000000e+00> : vector<8x128xf32>
    %57 = tpu.matmul %52, %56, %cst_61 {dimension_numbers = #tpu.dot_dimension_numbers<[1], [0], [0], [1], [0, 0, 1, 1], [], []>} : vector<8x128xbf16>, vector<128x128xbf16>, vector<8x128xf32> -> vector<8x128xf32>
    %58 = arith.addf %50, %57 : vector<8x128xf32>
    %c1_62 = arith.constant 1 : index
    %c0_63 = arith.constant 0 : index
    %c0_64 = arith.constant 0 : index
    %59 = vector.load %arg5[%c1_62, %c0_63, %c0_64] : memref<6x128x128xbf16, #tpu.memory_space<vmem>>, vector<1x128x128xbf16>
    %60 = vector.shape_cast %59 : vector<1x128x128xbf16> to vector<128x128xbf16>
    %cst_65 = arith.constant dense<0.000000e+00> : vector<8x128xf32>
    %61 = tpu.matmul %54, %60, %cst_65 {dimension_numbers = #tpu.dot_dimension_numbers<[1], [0], [0], [1], [0, 0, 1, 1], [], []>} : vector<8x128xbf16>, vector<128x128xbf16>, vector<8x128xf32> -> vector<8x128xf32>
    %62 = arith.addf %58, %61 : vector<8x128xf32>
    %c0_66 = arith.constant 0 : index
    %c1_67 = arith.constant 1 : index
    %c0_68 = arith.constant 0 : index
    %c0_69 = arith.constant 0 : index
    %63 = vector.load %arg3[%c0_66, %c1_67, %c0_68, %c0_69] : memref<1x8x9x128xbf16, #tpu.memory_space<vmem>>, vector<1x1x8x128xbf16>
    %64 = vector.shape_cast %63 : vector<1x1x8x128xbf16> to vector<8x128xbf16>
    %c0_70 = arith.constant 0 : index
    %c1_71 = arith.constant 1 : index
    %c1_72 = arith.constant 1 : index
    %c0_73 = arith.constant 0 : index
    %65 = vector.load %arg3[%c0_70, %c1_71, %c1_72, %c0_73] : memref<1x8x9x128xbf16, #tpu.memory_space<vmem>>, vector<1x1x8x128xbf16>
    %66 = vector.shape_cast %65 : vector<1x1x8x128xbf16> to vector<8x128xbf16>
    %c2_74 = arith.constant 2 : index
    %c0_75 = arith.constant 0 : index
    %c0_76 = arith.constant 0 : index
    %67 = vector.load %arg5[%c2_74, %c0_75, %c0_76] : memref<6x128x128xbf16, #tpu.memory_space<vmem>>, vector<1x128x128xbf16>
    %68 = vector.shape_cast %67 : vector<1x128x128xbf16> to vector<128x128xbf16>
    %cst_77 = arith.constant dense<0.000000e+00> : vector<8x128xf32>
    %69 = tpu.matmul %64, %68, %cst_77 {dimension_numbers = #tpu.dot_dimension_numbers<[1], [0], [0], [1], [0, 0, 1, 1], [], []>} : vector<8x128xbf16>, vector<128x128xbf16>, vector<8x128xf32> -> vector<8x128xf32>
    %70 = arith.addf %62, %69 : vector<8x128xf32>
    %c3_78 = arith.constant 3 : index
    %c0_79 = arith.constant 0 : index
    %c0_80 = arith.constant 0 : index
    %71 = vector.load %arg5[%c3_78, %c0_79, %c0_80] : memref<6x128x128xbf16, #tpu.memory_space<vmem>>, vector<1x128x128xbf16>
    %72 = vector.shape_cast %71 : vector<1x128x128xbf16> to vector<128x128xbf16>
    %cst_81 = arith.constant dense<0.000000e+00> : vector<8x128xf32>
    %73 = tpu.matmul %66, %72, %cst_81 {dimension_numbers = #tpu.dot_dimension_numbers<[1], [0], [0], [1], [0, 0, 1, 1], [], []>} : vector<8x128xbf16>, vector<128x128xbf16>, vector<8x128xf32> -> vector<8x128xf32>
    %74 = arith.addf %70, %73 : vector<8x128xf32>
    %c0_82 = arith.constant 0 : index
    %c1_83 = arith.constant 1 : index
    %c0_84 = arith.constant 0 : index
    %c0_85 = arith.constant 0 : index
    %75 = vector.load %arg4[%c0_82, %c1_83, %c0_84, %c0_85] : memref<1x8x9x128xbf16, #tpu.memory_space<vmem>>, vector<1x1x8x128xbf16>
    %76 = vector.shape_cast %75 : vector<1x1x8x128xbf16> to vector<8x128xbf16>
    %c0_86 = arith.constant 0 : index
    %c1_87 = arith.constant 1 : index
    %c1_88 = arith.constant 1 : index
    %c0_89 = arith.constant 0 : index
    %77 = vector.load %arg4[%c0_86, %c1_87, %c1_88, %c0_89] : memref<1x8x9x128xbf16, #tpu.memory_space<vmem>>, vector<1x1x8x128xbf16>
    %78 = vector.shape_cast %77 : vector<1x1x8x128xbf16> to vector<8x128xbf16>
    %c4_90 = arith.constant 4 : index
    %c0_91 = arith.constant 0 : index
    %c0_92 = arith.constant 0 : index
    %79 = vector.load %arg5[%c4_90, %c0_91, %c0_92] : memref<6x128x128xbf16, #tpu.memory_space<vmem>>, vector<1x128x128xbf16>
    %80 = vector.shape_cast %79 : vector<1x128x128xbf16> to vector<128x128xbf16>
    %cst_93 = arith.constant dense<0.000000e+00> : vector<8x128xf32>
    %81 = tpu.matmul %76, %80, %cst_93 {dimension_numbers = #tpu.dot_dimension_numbers<[1], [0], [0], [1], [0, 0, 1, 1], [], []>} : vector<8x128xbf16>, vector<128x128xbf16>, vector<8x128xf32> -> vector<8x128xf32>
    %82 = arith.addf %74, %81 : vector<8x128xf32>
    %c5_94 = arith.constant 5 : index
    %c0_95 = arith.constant 0 : index
    %c0_96 = arith.constant 0 : index
    %83 = vector.load %arg5[%c5_94, %c0_95, %c0_96] : memref<6x128x128xbf16, #tpu.memory_space<vmem>>, vector<1x128x128xbf16>
    %84 = vector.shape_cast %83 : vector<1x128x128xbf16> to vector<128x128xbf16>
    %cst_97 = arith.constant dense<0.000000e+00> : vector<8x128xf32>
    %85 = tpu.matmul %78, %84, %cst_97 {dimension_numbers = #tpu.dot_dimension_numbers<[1], [0], [0], [1], [0, 0, 1, 1], [], []>} : vector<8x128xbf16>, vector<128x128xbf16>, vector<8x128xf32> -> vector<8x128xf32>
    %86 = arith.addf %82, %85 : vector<8x128xf32>
    %87 = arith.truncf %86 : vector<8x128xf32> to vector<8x128xbf16>
    %c0_98 = arith.constant 0 : index
    %c8 = arith.constant 8 : index
    %c0_99 = arith.constant 0 : index
    %88 = vector.load %arg6[%c0_98, %c8, %c0_99] : memref<1x64x128xbf16, #tpu.memory_space<vmem>>, vector<1x8x128xbf16>
    %89 = vector.shape_cast %88 : vector<1x8x128xbf16> to vector<8x128xbf16>
    %90 = vector.shape_cast %87 : vector<8x128xbf16> to vector<1x8x128xbf16>
    tpu.vector_store %arg6[%c0_98, %c8, %c0_99], %90 {strides = array<i32>} : memref<1x64x128xbf16, #tpu.memory_space<vmem>>, vector<1x8x128xbf16>,
    %cst_100 = arith.constant dense<0.000000e+00> : vector<128xf32>
    %91 = vector.multi_reduction <add>, %86, %cst_100 [0] : vector<8x128xf32> to vector<128xf32>
    %92 = vector.shape_cast %91 : vector<128xf32> to vector<1x128xf32>
    %93 = arith.addf %45, %92 : vector<1x128xf32>
    %94 = arith.mulf %86, %86 : vector<8x128xf32>
    %cst_101 = arith.constant dense<0.000000e+00> : vector<128xf32>
    %95 = vector.multi_reduction <add>, %94, %cst_101 [0] : vector<8x128xf32> to vector<128xf32>
    %96 = vector.shape_cast %95 : vector<128xf32> to vector<1x128xf32>
    %97 = arith.addf %49, %96 : vector<1x128xf32>
    %cst_102 = arith.constant 0.000000e+00 : f32
    %98 = vector.broadcast %cst_102 : f32 to vector<8x128xf32>
    %c0_103 = arith.constant 0 : index
    %c2_104 = arith.constant 2 : index
    %c0_105 = arith.constant 0 : index
    %c0_106 = arith.constant 0 : index
    %99 = vector.load %arg2[%c0_103, %c2_104, %c0_105, %c0_106] : memref<1x8x9x128xbf16, #tpu.memory_space<vmem>>, vector<1x1x8x128xbf16>
    %100 = vector.shape_cast %99 : vector<1x1x8x128xbf16> to vector<8x128xbf16>
    %c0_107 = arith.constant 0 : index
    %c2_108 = arith.constant 2 : index
    %c1_109 = arith.constant 1 : index
    %c0_110 = arith.constant 0 : index
    %101 = vector.load %arg2[%c0_107, %c2_108, %c1_109, %c0_110] : memref<1x8x9x128xbf16, #tpu.memory_space<vmem>>, vector<1x1x8x128xbf16>
    %102 = vector.shape_cast %101 : vector<1x1x8x128xbf16> to vector<8x128xbf16>
    %c0_111 = arith.constant 0 : index
    %c0_112 = arith.constant 0 : index
    %c0_113 = arith.constant 0 : index
    %103 = vector.load %arg5[%c0_111, %c0_112, %c0_113] : memref<6x128x128xbf16, #tpu.memory_space<vmem>>, vector<1x128x128xbf16>
    %104 = vector.shape_cast %103 : vector<1x128x128xbf16> to vector<128x128xbf16>
    %cst_114 = arith.constant dense<0.000000e+00> : vector<8x128xf32>
    %105 = tpu.matmul %100, %104, %cst_114 {dimension_numbers = #tpu.dot_dimension_numbers<[1], [0], [0], [1], [0, 0, 1, 1], [], []>} : vector<8x128xbf16>, vector<128x128xbf16>, vector<8x128xf32> -> vector<8x128xf32>
    %106 = arith.addf %98, %105 : vector<8x128xf32>
    %c1_115 = arith.constant 1 : index
    %c0_116 = arith.constant 0 : index
    %c0_117 = arith.constant 0 : index
    %107 = vector.load %arg5[%c1_115, %c0_116, %c0_117] : memref<6x128x128xbf16, #tpu.memory_space<vmem>>, vector<1x128x128xbf16>
    %108 = vector.shape_cast %107 : vector<1x128x128xbf16> to vector<128x128xbf16>
    %cst_118 = arith.constant dense<0.000000e+00> : vector<8x128xf32>
    %109 = tpu.matmul %102, %108, %cst_118 {dimension_numbers = #tpu.dot_dimension_numbers<[1], [0], [0], [1], [0, 0, 1, 1], [], []>} : vector<8x128xbf16>, vector<128x128xbf16>, vector<8x128xf32> -> vector<8x128xf32>
    %110 = arith.addf %106, %109 : vector<8x128xf32>
    %c0_119 = arith.constant 0 : index
    %c2_120 = arith.constant 2 : index
    %c0_121 = arith.constant 0 : index
    %c0_122 = arith.constant 0 : index
    %111 = vector.load %arg3[%c0_119, %c2_120, %c0_121, %c0_122] : memref<1x8x9x128xbf16, #tpu.memory_space<vmem>>, vector<1x1x8x128xbf16>
    %112 = vector.shape_cast %111 : vector<1x1x8x128xbf16> to vector<8x128xbf16>
    %c0_123 = arith.constant 0 : index
    %c2_124 = arith.constant 2 : index
    %c1_125 = arith.constant 1 : index
    %c0_126 = arith.constant 0 : index
    %113 = vector.load %arg3[%c0_123, %c2_124, %c1_125, %c0_126] : memref<1x8x9x128xbf16, #tpu.memory_space<vmem>>, vector<1x1x8x128xbf16>
    %114 = vector.shape_cast %113 : vector<1x1x8x128xbf16> to vector<8x128xbf16>
    %c2_127 = arith.constant 2 : index
    %c0_128 = arith.constant 0 : index
    %c0_129 = arith.constant 0 : index
    %115 = vector.load %arg5[%c2_127, %c0_128, %c0_129] : memref<6x128x128xbf16, #tpu.memory_space<vmem>>, vector<1x128x128xbf16>
    %116 = vector.shape_cast %115 : vector<1x128x128xbf16> to vector<128x128xbf16>
    %cst_130 = arith.constant dense<0.000000e+00> : vector<8x128xf32>
    %117 = tpu.matmul %112, %116, %cst_130 {dimension_numbers = #tpu.dot_dimension_numbers<[1], [0], [0], [1], [0, 0, 1, 1], [], []>} : vector<8x128xbf16>, vector<128x128xbf16>, vector<8x128xf32> -> vector<8x128xf32>
    %118 = arith.addf %110, %117 : vector<8x128xf32>
    %c3_131 = arith.constant 3 : index
    %c0_132 = arith.constant 0 : index
    %c0_133 = arith.constant 0 : index
    %119 = vector.load %arg5[%c3_131, %c0_132, %c0_133] : memref<6x128x128xbf16, #tpu.memory_space<vmem>>, vector<1x128x128xbf16>
    %120 = vector.shape_cast %119 : vector<1x128x128xbf16> to vector<128x128xbf16>
    %cst_134 = arith.constant dense<0.000000e+00> : vector<8x128xf32>
    %121 = tpu.matmul %114, %120, %cst_134 {dimension_numbers = #tpu.dot_dimension_numbers<[1], [0], [0], [1], [0, 0, 1, 1], [], []>} : vector<8x128xbf16>, vector<128x128xbf16>, vector<8x128xf32> -> vector<8x128xf32>
    %122 = arith.addf %118, %121 : vector<8x128xf32>
    %c0_135 = arith.constant 0 : index
    %c2_136 = arith.constant 2 : index
    %c0_137 = arith.constant 0 : index
    %c0_138 = arith.constant 0 : index
    %123 = vector.load %arg4[%c0_135, %c2_136, %c0_137, %c0_138] : memref<1x8x9x128xbf16, #tpu.memory_space<vmem>>, vector<1x1x8x128xbf16>
    %124 = vector.shape_cast %123 : vector<1x1x8x128xbf16> to vector<8x128xbf16>
    %c0_139 = arith.constant 0 : index
    %c2_140 = arith.constant 2 : index
    %c1_141 = arith.constant 1 : index
    %c0_142 = arith.constant 0 : index
    %125 = vector.load %arg4[%c0_139, %c2_140, %c1_141, %c0_142] : memref<1x8x9x128xbf16, #tpu.memory_space<vmem>>, vector<1x1x8x128xbf16>
    %126 = vector.shape_cast %125 : vector<1x1x8x128xbf16> to vector<8x128xbf16>
    %c4_143 = arith.constant 4 : index
    %c0_144 = arith.constant 0 : index
    %c0_145 = arith.constant 0 : index
    %127 = vector.load %arg5[%c4_143, %c0_144, %c0_145] : memref<6x128x128xbf16, #tpu.memory_space<vmem>>, vector<1x128x128xbf16>
    %128 = vector.shape_cast %127 : vector<1x128x128xbf16> to vector<128x128xbf16>
    %cst_146 = arith.constant dense<0.000000e+00> : vector<8x128xf32>
    %129 = tpu.matmul %124, %128, %cst_146 {dimension_numbers = #tpu.dot_dimension_numbers<[1], [0], [0], [1], [0, 0, 1, 1], [], []>} : vector<8x128xbf16>, vector<128x128xbf16>, vector<8x128xf32> -> vector<8x128xf32>
    %130 = arith.addf %122, %129 : vector<8x128xf32>
    %c5_147 = arith.constant 5 : index
    %c0_148 = arith.constant 0 : index
    %c0_149 = arith.constant 0 : index
    %131 = vector.load %arg5[%c5_147, %c0_148, %c0_149] : memref<6x128x128xbf16, #tpu.memory_space<vmem>>, vector<1x128x128xbf16>
    %132 = vector.shape_cast %131 : vector<1x128x128xbf16> to vector<128x128xbf16>
    %cst_150 = arith.constant dense<0.000000e+00> : vector<8x128xf32>
    %133 = tpu.matmul %126, %132, %cst_150 {dimension_numbers = #tpu.dot_dimension_numbers<[1], [0], [0], [1], [0, 0, 1, 1], [], []>} : vector<8x128xbf16>, vector<128x128xbf16>, vector<8x128xf32> -> vector<8x128xf32>
    %134 = arith.addf %130, %133 : vector<8x128xf32>
    %135 = arith.truncf %134 : vector<8x128xf32> to vector<8x128xbf16>
    %c0_151 = arith.constant 0 : index
    %c16 = arith.constant 16 : index
    %c0_152 = arith.constant 0 : index
    %136 = vector.load %arg6[%c0_151, %c16, %c0_152] : memref<1x64x128xbf16, #tpu.memory_space<vmem>>, vector<1x8x128xbf16>
    %137 = vector.shape_cast %136 : vector<1x8x128xbf16> to vector<8x128xbf16>
    %138 = vector.shape_cast %135 : vector<8x128xbf16> to vector<1x8x128xbf16>
    tpu.vector_store %arg6[%c0_151, %c16, %c0_152], %138 {strides = array<i32>} : memref<1x64x128xbf16, #tpu.memory_space<vmem>>, vector<1x8x128xbf16>,
    %cst_153 = arith.constant dense<0.000000e+00> : vector<128xf32>
    %139 = vector.multi_reduction <add>, %134, %cst_153 [0] : vector<8x128xf32> to vector<128xf32>
    %140 = vector.shape_cast %139 : vector<128xf32> to vector<1x128xf32>
    %141 = arith.addf %93, %140 : vector<1x128xf32>
    %142 = arith.mulf %134, %134 : vector<8x128xf32>
    %cst_154 = arith.constant dense<0.000000e+00> : vector<128xf32>
    %143 = vector.multi_reduction <add>, %142, %cst_154 [0] : vector<8x128xf32> to vector<128xf32>
    %144 = vector.shape_cast %143 : vector<128xf32> to vector<1x128xf32>
    %145 = arith.addf %97, %144 : vector<1x128xf32>
    %cst_155 = arith.constant 0.000000e+00 : f32
    %146 = vector.broadcast %cst_155 : f32 to vector<8x128xf32>
    %c0_156 = arith.constant 0 : index
    %c3_157 = arith.constant 3 : index
    %c0_158 = arith.constant 0 : index
    %c0_159 = arith.constant 0 : index
    %147 = vector.load %arg2[%c0_156, %c3_157, %c0_158, %c0_159] : memref<1x8x9x128xbf16, #tpu.memory_space<vmem>>, vector<1x1x8x128xbf16>
    %148 = vector.shape_cast %147 : vector<1x1x8x128xbf16> to vector<8x128xbf16>
    %c0_160 = arith.constant 0 : index
    %c3_161 = arith.constant 3 : index
    %c1_162 = arith.constant 1 : index
    %c0_163 = arith.constant 0 : index
    %149 = vector.load %arg2[%c0_160, %c3_161, %c1_162, %c0_163] : memref<1x8x9x128xbf16, #tpu.memory_space<vmem>>, vector<1x1x8x128xbf16>
    %150 = vector.shape_cast %149 : vector<1x1x8x128xbf16> to vector<8x128xbf16>
    %c0_164 = arith.constant 0 : index
    %c0_165 = arith.constant 0 : index
    %c0_166 = arith.constant 0 : index
    %151 = vector.load %arg5[%c0_164, %c0_165, %c0_166] : memref<6x128x128xbf16, #tpu.memory_space<vmem>>, vector<1x128x128xbf16>
    %152 = vector.shape_cast %151 : vector<1x128x128xbf16> to vector<128x128xbf16>
    %cst_167 = arith.constant dense<0.000000e+00> : vector<8x128xf32>
    %153 = tpu.matmul %148, %152, %cst_167 {dimension_numbers = #tpu.dot_dimension_numbers<[1], [0], [0], [1], [0, 0, 1, 1], [], []>} : vector<8x128xbf16>, vector<128x128xbf16>, vector<8x128xf32> -> vector<8x128xf32>
    %154 = arith.addf %146, %153 : vector<8x128xf32>
    %c1_168 = arith.constant 1 : index
    %c0_169 = arith.constant 0 : index
    %c0_170 = arith.constant 0 : index
    %155 = vector.load %arg5[%c1_168, %c0_169, %c0_170] : memref<6x128x128xbf16, #tpu.memory_space<vmem>>, vector<1x128x128xbf16>
    %156 = vector.shape_cast %155 : vector<1x128x128xbf16> to vector<128x128xbf16>
    %cst_171 = arith.constant dense<0.000000e+00> : vector<8x128xf32>
    %157 = tpu.matmul %150, %156, %cst_171 {dimension_numbers = #tpu.dot_dimension_numbers<[1], [0], [0], [1], [0, 0, 1, 1], [], []>} : vector<8x128xbf16>, vector<128x128xbf16>, vector<8x128xf32> -> vector<8x128xf32>
    %158 = arith.addf %154, %157 : vector<8x128xf32>
    %c0_172 = arith.constant 0 : index
    %c3_173 = arith.constant 3 : index
    %c0_174 = arith.constant 0 : index
    %c0_175 = arith.constant 0 : index
    %159 = vector.load %arg3[%c0_172, %c3_173, %c0_174, %c0_175] : memref<1x8x9x128xbf16, #tpu.memory_space<vmem>>, vector<1x1x8x128xbf16>
    %160 = vector.shape_cast %159 : vector<1x1x8x128xbf16> to vector<8x128xbf16>
    %c0_176 = arith.constant 0 : index
    %c3_177 = arith.constant 3 : index
    %c1_178 = arith.constant 1 : index
    %c0_179 = arith.constant 0 : index
    %161 = vector.load %arg3[%c0_176, %c3_177, %c1_178, %c0_179] : memref<1x8x9x128xbf16, #tpu.memory_space<vmem>>, vector<1x1x8x128xbf16>
    %162 = vector.shape_cast %161 : vector<1x1x8x128xbf16> to vector<8x128xbf16>
    %c2_180 = arith.constant 2 : index
    %c0_181 = arith.constant 0 : index
    %c0_182 = arith.constant 0 : index
    %163 = vector.load %arg5[%c2_180, %c0_181, %c0_182] : memref<6x128x128xbf16, #tpu.memory_space<vmem>>, vector<1x128x128xbf16>
    %164 = vector.shape_cast %163 : vector<1x128x128xbf16> to vector<128x128xbf16>
    %cst_183 = arith.constant dense<0.000000e+00> : vector<8x128xf32>
    %165 = tpu.matmul %160, %164, %cst_183 {dimension_numbers = #tpu.dot_dimension_numbers<[1], [0], [0], [1], [0, 0, 1, 1], [], []>} : vector<8x128xbf16>, vector<128x128xbf16>, vector<8x128xf32> -> vector<8x128xf32>
    %166 = arith.addf %158, %165 : vector<8x128xf32>
    %c3_184 = arith.constant 3 : index
    %c0_185 = arith.constant 0 : index
    %c0_186 = arith.constant 0 : index
    %167 = vector.load %arg5[%c3_184, %c0_185, %c0_186] : memref<6x128x128xbf16, #tpu.memory_space<vmem>>, vector<1x128x128xbf16>
    %168 = vector.shape_cast %167 : vector<1x128x128xbf16> to vector<128x128xbf16>
    %cst_187 = arith.constant dense<0.000000e+00> : vector<8x128xf32>
    %169 = tpu.matmul %162, %168, %cst_187 {dimension_numbers = #tpu.dot_dimension_numbers<[1], [0], [0], [1], [0, 0, 1, 1], [], []>} : vector<8x128xbf16>, vector<128x128xbf16>, vector<8x128xf32> -> vector<8x128xf32>
    %170 = arith.addf %166, %169 : vector<8x128xf32>
    %c0_188 = arith.constant 0 : index
    %c3_189 = arith.constant 3 : index
    %c0_190 = arith.constant 0 : index
    %c0_191 = arith.constant 0 : index
    %171 = vector.load %arg4[%c0_188, %c3_189, %c0_190, %c0_191] : memref<1x8x9x128xbf16, #tpu.memory_space<vmem>>, vector<1x1x8x128xbf16>
    %172 = vector.shape_cast %171 : vector<1x1x8x128xbf16> to vector<8x128xbf16>
    %c0_192 = arith.constant 0 : index
    %c3_193 = arith.constant 3 : index
    %c1_194 = arith.constant 1 : index
    %c0_195 = arith.constant 0 : index
    %173 = vector.load %arg4[%c0_192, %c3_193, %c1_194, %c0_195] : memref<1x8x9x128xbf16, #tpu.memory_space<vmem>>, vector<1x1x8x128xbf16>
    %174 = vector.shape_cast %173 : vector<1x1x8x128xbf16> to vector<8x128xbf16>
    %c4_196 = arith.constant 4 : index
    %c0_197 = arith.constant 0 : index
    %c0_198 = arith.constant 0 : index
    %175 = vector.load %arg5[%c4_196, %c0_197, %c0_198] : memref<6x128x128xbf16, #tpu.memory_space<vmem>>, vector<1x128x128xbf16>
    %176 = vector.shape_cast %175 : vector<1x128x128xbf16> to vector<128x128xbf16>
    %cst_199 = arith.constant dense<0.000000e+00> : vector<8x128xf32>
    %177 = tpu.matmul %172, %176, %cst_199 {dimension_numbers = #tpu.dot_dimension_numbers<[1], [0], [0], [1], [0, 0, 1, 1], [], []>} : vector<8x128xbf16>, vector<128x128xbf16>, vector<8x128xf32> -> vector<8x128xf32>
    %178 = arith.addf %170, %177 : vector<8x128xf32>
    %c5_200 = arith.constant 5 : index
    %c0_201 = arith.constant 0 : index
    %c0_202 = arith.constant 0 : index
    %179 = vector.load %arg5[%c5_200, %c0_201, %c0_202] : memref<6x128x128xbf16, #tpu.memory_space<vmem>>, vector<1x128x128xbf16>
    %180 = vector.shape_cast %179 : vector<1x128x128xbf16> to vector<128x128xbf16>
    %cst_203 = arith.constant dense<0.000000e+00> : vector<8x128xf32>
    %181 = tpu.matmul %174, %180, %cst_203 {dimension_numbers = #tpu.dot_dimension_numbers<[1], [0], [0], [1], [0, 0, 1, 1], [], []>} : vector<8x128xbf16>, vector<128x128xbf16>, vector<8x128xf32> -> vector<8x128xf32>
    %182 = arith.addf %178, %181 : vector<8x128xf32>
    %183 = arith.truncf %182 : vector<8x128xf32> to vector<8x128xbf16>
    %c0_204 = arith.constant 0 : index
    %c24 = arith.constant 24 : index
    %c0_205 = arith.constant 0 : index
    %184 = vector.load %arg6[%c0_204, %c24, %c0_205] : memref<1x64x128xbf16, #tpu.memory_space<vmem>>, vector<1x8x128xbf16>
    %185 = vector.shape_cast %184 : vector<1x8x128xbf16> to vector<8x128xbf16>
    %186 = vector.shape_cast %183 : vector<8x128xbf16> to vector<1x8x128xbf16>
    tpu.vector_store %arg6[%c0_204, %c24, %c0_205], %186 {strides = array<i32>} : memref<1x64x128xbf16, #tpu.memory_space<vmem>>, vector<1x8x128xbf16>,
    %cst_206 = arith.constant dense<0.000000e+00> : vector<128xf32>
    %187 = vector.multi_reduction <add>, %182, %cst_206 [0] : vector<8x128xf32> to vector<128xf32>
    %188 = vector.shape_cast %187 : vector<128xf32> to vector<1x128xf32>
    %189 = arith.addf %141, %188 : vector<1x128xf32>
    %190 = arith.mulf %182, %182 : vector<8x128xf32>
    %cst_207 = arith.constant dense<0.000000e+00> : vector<128xf32>
    %191 = vector.multi_reduction <add>, %190, %cst_207 [0] : vector<8x128xf32> to vector<128xf32>
    %192 = vector.shape_cast %191 : vector<128xf32> to vector<1x128xf32>
    %193 = arith.addf %145, %192 : vector<1x128xf32>
    %cst_208 = arith.constant 0.000000e+00 : f32
    %194 = vector.broadcast %cst_208 : f32 to vector<8x128xf32>
    %c0_209 = arith.constant 0 : index
    %c4_210 = arith.constant 4 : index
    %c0_211 = arith.constant 0 : index
    %c0_212 = arith.constant 0 : index
    %195 = vector.load %arg2[%c0_209, %c4_210, %c0_211, %c0_212] : memref<1x8x9x128xbf16, #tpu.memory_space<vmem>>, vector<1x1x8x128xbf16>
    %196 = vector.shape_cast %195 : vector<1x1x8x128xbf16> to vector<8x128xbf16>
    %c0_213 = arith.constant 0 : index
    %c4_214 = arith.constant 4 : index
    %c1_215 = arith.constant 1 : index
    %c0_216 = arith.constant 0 : index
    %197 = vector.load %arg2[%c0_213, %c4_214, %c1_215, %c0_216] : memref<1x8x9x128xbf16, #tpu.memory_space<vmem>>, vector<1x1x8x128xbf16>
    %198 = vector.shape_cast %197 : vector<1x1x8x128xbf16> to vector<8x128xbf16>
    %c0_217 = arith.constant 0 : index
    %c0_218 = arith.constant 0 : index
    %c0_219 = arith.constant 0 : index
    %199 = vector.load %arg5[%c0_217, %c0_218, %c0_219] : memref<6x128x128xbf16, #tpu.memory_space<vmem>>, vector<1x128x128xbf16>
    %200 = vector.shape_cast %199 : vector<1x128x128xbf16> to vector<128x128xbf16>
    %cst_220 = arith.constant dense<0.000000e+00> : vector<8x128xf32>
    %201 = tpu.matmul %196, %200, %cst_220 {dimension_numbers = #tpu.dot_dimension_numbers<[1], [0], [0], [1], [0, 0, 1, 1], [], []>} : vector<8x128xbf16>, vector<128x128xbf16>, vector<8x128xf32> -> vector<8x128xf32>
    %202 = arith.addf %194, %201 : vector<8x128xf32>
    %c1_221 = arith.constant 1 : index
    %c0_222 = arith.constant 0 : index
    %c0_223 = arith.constant 0 : index
    %203 = vector.load %arg5[%c1_221, %c0_222, %c0_223] : memref<6x128x128xbf16, #tpu.memory_space<vmem>>, vector<1x128x128xbf16>
    %204 = vector.shape_cast %203 : vector<1x128x128xbf16> to vector<128x128xbf16>
    %cst_224 = arith.constant dense<0.000000e+00> : vector<8x128xf32>
    %205 = tpu.matmul %198, %204, %cst_224 {dimension_numbers = #tpu.dot_dimension_numbers<[1], [0], [0], [1], [0, 0, 1, 1], [], []>} : vector<8x128xbf16>, vector<128x128xbf16>, vector<8x128xf32> -> vector<8x128xf32>
    %206 = arith.addf %202, %205 : vector<8x128xf32>
    %c0_225 = arith.constant 0 : index
    %c4_226 = arith.constant 4 : index
    %c0_227 = arith.constant 0 : index
    %c0_228 = arith.constant 0 : index
    %207 = vector.load %arg3[%c0_225, %c4_226, %c0_227, %c0_228] : memref<1x8x9x128xbf16, #tpu.memory_space<vmem>>, vector<1x1x8x128xbf16>
    %208 = vector.shape_cast %207 : vector<1x1x8x128xbf16> to vector<8x128xbf16>
    %c0_229 = arith.constant 0 : index
    %c4_230 = arith.constant 4 : index
    %c1_231 = arith.constant 1 : index
    %c0_232 = arith.constant 0 : index
    %209 = vector.load %arg3[%c0_229, %c4_230, %c1_231, %c0_232] : memref<1x8x9x128xbf16, #tpu.memory_space<vmem>>, vector<1x1x8x128xbf16>
    %210 = vector.shape_cast %209 : vector<1x1x8x128xbf16> to vector<8x128xbf16>
    %c2_233 = arith.constant 2 : index
    %c0_234 = arith.constant 0 : index
    %c0_235 = arith.constant 0 : index
    %211 = vector.load %arg5[%c2_233, %c0_234, %c0_235] : memref<6x128x128xbf16, #tpu.memory_space<vmem>>, vector<1x128x128xbf16>
    %212 = vector.shape_cast %211 : vector<1x128x128xbf16> to vector<128x128xbf16>
    %cst_236 = arith.constant dense<0.000000e+00> : vector<8x128xf32>
    %213 = tpu.matmul %208, %212, %cst_236 {dimension_numbers = #tpu.dot_dimension_numbers<[1], [0], [0], [1], [0, 0, 1, 1], [], []>} : vector<8x128xbf16>, vector<128x128xbf16>, vector<8x128xf32> -> vector<8x128xf32>
    %214 = arith.addf %206, %213 : vector<8x128xf32>
    %c3_237 = arith.constant 3 : index
    %c0_238 = arith.constant 0 : index
    %c0_239 = arith.constant 0 : index
    %215 = vector.load %arg5[%c3_237, %c0_238, %c0_239] : memref<6x128x128xbf16, #tpu.memory_space<vmem>>, vector<1x128x128xbf16>
    %216 = vector.shape_cast %215 : vector<1x128x128xbf16> to vector<128x128xbf16>
    %cst_240 = arith.constant dense<0.000000e+00> : vector<8x128xf32>
    %217 = tpu.matmul %210, %216, %cst_240 {dimension_numbers = #tpu.dot_dimension_numbers<[1], [0], [0], [1], [0, 0, 1, 1], [], []>} : vector<8x128xbf16>, vector<128x128xbf16>, vector<8x128xf32> -> vector<8x128xf32>
    %218 = arith.addf %214, %217 : vector<8x128xf32>
    %c0_241 = arith.constant 0 : index
    %c4_242 = arith.constant 4 : index
    %c0_243 = arith.constant 0 : index
    %c0_244 = arith.constant 0 : index
    %219 = vector.load %arg4[%c0_241, %c4_242, %c0_243, %c0_244] : memref<1x8x9x128xbf16, #tpu.memory_space<vmem>>, vector<1x1x8x128xbf16>
    %220 = vector.shape_cast %219 : vector<1x1x8x128xbf16> to vector<8x128xbf16>
    %c0_245 = arith.constant 0 : index
    %c4_246 = arith.constant 4 : index
    %c1_247 = arith.constant 1 : index
    %c0_248 = arith.constant 0 : index
    %221 = vector.load %arg4[%c0_245, %c4_246, %c1_247, %c0_248] : memref<1x8x9x128xbf16, #tpu.memory_space<vmem>>, vector<1x1x8x128xbf16>
    %222 = vector.shape_cast %221 : vector<1x1x8x128xbf16> to vector<8x128xbf16>
    %c4_249 = arith.constant 4 : index
    %c0_250 = arith.constant 0 : index
    %c0_251 = arith.constant 0 : index
    %223 = vector.load %arg5[%c4_249, %c0_250, %c0_251] : memref<6x128x128xbf16, #tpu.memory_space<vmem>>, vector<1x128x128xbf16>
    %224 = vector.shape_cast %223 : vector<1x128x128xbf16> to vector<128x128xbf16>
    %cst_252 = arith.constant dense<0.000000e+00> : vector<8x128xf32>
    %225 = tpu.matmul %220, %224, %cst_252 {dimension_numbers = #tpu.dot_dimension_numbers<[1], [0], [0], [1], [0, 0, 1, 1], [], []>} : vector<8x128xbf16>, vector<128x128xbf16>, vector<8x128xf32> -> vector<8x128xf32>
    %226 = arith.addf %218, %225 : vector<8x128xf32>
    %c5_253 = arith.constant 5 : index
    %c0_254 = arith.constant 0 : index
    %c0_255 = arith.constant 0 : index
    %227 = vector.load %arg5[%c5_253, %c0_254, %c0_255] : memref<6x128x128xbf16, #tpu.memory_space<vmem>>, vector<1x128x128xbf16>
    %228 = vector.shape_cast %227 : vector<1x128x128xbf16> to vector<128x128xbf16>
    %cst_256 = arith.constant dense<0.000000e+00> : vector<8x128xf32>
    %229 = tpu.matmul %222, %228, %cst_256 {dimension_numbers = #tpu.dot_dimension_numbers<[1], [0], [0], [1], [0, 0, 1, 1], [], []>} : vector<8x128xbf16>, vector<128x128xbf16>, vector<8x128xf32> -> vector<8x128xf32>
    %230 = arith.addf %226, %229 : vector<8x128xf32>
    %231 = arith.truncf %230 : vector<8x128xf32> to vector<8x128xbf16>
    %c0_257 = arith.constant 0 : index
    %c32 = arith.constant 32 : index
    %c0_258 = arith.constant 0 : index
    %232 = vector.load %arg6[%c0_257, %c32, %c0_258] : memref<1x64x128xbf16, #tpu.memory_space<vmem>>, vector<1x8x128xbf16>
    %233 = vector.shape_cast %232 : vector<1x8x128xbf16> to vector<8x128xbf16>
    %234 = vector.shape_cast %231 : vector<8x128xbf16> to vector<1x8x128xbf16>
    tpu.vector_store %arg6[%c0_257, %c32, %c0_258], %234 {strides = array<i32>} : memref<1x64x128xbf16, #tpu.memory_space<vmem>>, vector<1x8x128xbf16>,
    %cst_259 = arith.constant dense<0.000000e+00> : vector<128xf32>
    %235 = vector.multi_reduction <add>, %230, %cst_259 [0] : vector<8x128xf32> to vector<128xf32>
    %236 = vector.shape_cast %235 : vector<128xf32> to vector<1x128xf32>
    %237 = arith.addf %189, %236 : vector<1x128xf32>
    %238 = arith.mulf %230, %230 : vector<8x128xf32>
    %cst_260 = arith.constant dense<0.000000e+00> : vector<128xf32>
    %239 = vector.multi_reduction <add>, %238, %cst_260 [0] : vector<8x128xf32> to vector<128xf32>
    %240 = vector.shape_cast %239 : vector<128xf32> to vector<1x128xf32>
    %241 = arith.addf %193, %240 : vector<1x128xf32>
    %cst_261 = arith.constant 0.000000e+00 : f32
    %242 = vector.broadcast %cst_261 : f32 to vector<8x128xf32>
    %c0_262 = arith.constant 0 : index
    %c5_263 = arith.constant 5 : index
    %c0_264 = arith.constant 0 : index
    %c0_265 = arith.constant 0 : index
    %243 = vector.load %arg2[%c0_262, %c5_263, %c0_264, %c0_265] : memref<1x8x9x128xbf16, #tpu.memory_space<vmem>>, vector<1x1x8x128xbf16>
    %244 = vector.shape_cast %243 : vector<1x1x8x128xbf16> to vector<8x128xbf16>
    %c0_266 = arith.constant 0 : index
    %c5_267 = arith.constant 5 : index
    %c1_268 = arith.constant 1 : index
    %c0_269 = arith.constant 0 : index
    %245 = vector.load %arg2[%c0_266, %c5_267, %c1_268, %c0_269] : memref<1x8x9x128xbf16, #tpu.memory_space<vmem>>, vector<1x1x8x128xbf16>
    %246 = vector.shape_cast %245 : vector<1x1x8x128xbf16> to vector<8x128xbf16>
    %c0_270 = arith.constant 0 : index
    %c0_271 = arith.constant 0 : index
    %c0_272 = arith.constant 0 : index
    %247 = vector.load %arg5[%c0_270, %c0_271, %c0_272] : memref<6x128x128xbf16, #tpu.memory_space<vmem>>, vector<1x128x128xbf16>
    %248 = vector.shape_cast %247 : vector<1x128x128xbf16> to vector<128x128xbf16>
    %cst_273 = arith.constant dense<0.000000e+00> : vector<8x128xf32>
    %249 = tpu.matmul %244, %248, %cst_273 {dimension_numbers = #tpu.dot_dimension_numbers<[1], [0], [0], [1], [0, 0, 1, 1], [], []>} : vector<8x128xbf16>, vector<128x128xbf16>, vector<8x128xf32> -> vector<8x128xf32>
    %250 = arith.addf %242, %249 : vector<8x128xf32>
    %c1_274 = arith.constant 1 : index
    %c0_275 = arith.constant 0 : index
    %c0_276 = arith.constant 0 : index
    %251 = vector.load %arg5[%c1_274, %c0_275, %c0_276] : memref<6x128x128xbf16, #tpu.memory_space<vmem>>, vector<1x128x128xbf16>
    %252 = vector.shape_cast %251 : vector<1x128x128xbf16> to vector<128x128xbf16>
    %cst_277 = arith.constant dense<0.000000e+00> : vector<8x128xf32>
    %253 = tpu.matmul %246, %252, %cst_277 {dimension_numbers = #tpu.dot_dimension_numbers<[1], [0], [0], [1], [0, 0, 1, 1], [], []>} : vector<8x128xbf16>, vector<128x128xbf16>, vector<8x128xf32> -> vector<8x128xf32>
    %254 = arith.addf %250, %253 : vector<8x128xf32>
    %c0_278 = arith.constant 0 : index
    %c5_279 = arith.constant 5 : index
    %c0_280 = arith.constant 0 : index
    %c0_281 = arith.constant 0 : index
    %255 = vector.load %arg3[%c0_278, %c5_279, %c0_280, %c0_281] : memref<1x8x9x128xbf16, #tpu.memory_space<vmem>>, vector<1x1x8x128xbf16>
    %256 = vector.shape_cast %255 : vector<1x1x8x128xbf16> to vector<8x128xbf16>
    %c0_282 = arith.constant 0 : index
    %c5_283 = arith.constant 5 : index
    %c1_284 = arith.constant 1 : index
    %c0_285 = arith.constant 0 : index
    %257 = vector.load %arg3[%c0_282, %c5_283, %c1_284, %c0_285] : memref<1x8x9x128xbf16, #tpu.memory_space<vmem>>, vector<1x1x8x128xbf16>
    %258 = vector.shape_cast %257 : vector<1x1x8x128xbf16> to vector<8x128xbf16>
    %c2_286 = arith.constant 2 : index
    %c0_287 = arith.constant 0 : index
    %c0_288 = arith.constant 0 : index
    %259 = vector.load %arg5[%c2_286, %c0_287, %c0_288] : memref<6x128x128xbf16, #tpu.memory_space<vmem>>, vector<1x128x128xbf16>
    %260 = vector.shape_cast %259 : vector<1x128x128xbf16> to vector<128x128xbf16>
    %cst_289 = arith.constant dense<0.000000e+00> : vector<8x128xf32>
    %261 = tpu.matmul %256, %260, %cst_289 {dimension_numbers = #tpu.dot_dimension_numbers<[1], [0], [0], [1], [0, 0, 1, 1], [], []>} : vector<8x128xbf16>, vector<128x128xbf16>, vector<8x128xf32> -> vector<8x128xf32>
    %262 = arith.addf %254, %261 : vector<8x128xf32>
    %c3_290 = arith.constant 3 : index
    %c0_291 = arith.constant 0 : index
    %c0_292 = arith.constant 0 : index
    %263 = vector.load %arg5[%c3_290, %c0_291, %c0_292] : memref<6x128x128xbf16, #tpu.memory_space<vmem>>, vector<1x128x128xbf16>
    %264 = vector.shape_cast %263 : vector<1x128x128xbf16> to vector<128x128xbf16>
    %cst_293 = arith.constant dense<0.000000e+00> : vector<8x128xf32>
    %265 = tpu.matmul %258, %264, %cst_293 {dimension_numbers = #tpu.dot_dimension_numbers<[1], [0], [0], [1], [0, 0, 1, 1], [], []>} : vector<8x128xbf16>, vector<128x128xbf16>, vector<8x128xf32> -> vector<8x128xf32>
    %266 = arith.addf %262, %265 : vector<8x128xf32>
    %c0_294 = arith.constant 0 : index
    %c5_295 = arith.constant 5 : index
    %c0_296 = arith.constant 0 : index
    %c0_297 = arith.constant 0 : index
    %267 = vector.load %arg4[%c0_294, %c5_295, %c0_296, %c0_297] : memref<1x8x9x128xbf16, #tpu.memory_space<vmem>>, vector<1x1x8x128xbf16>
    %268 = vector.shape_cast %267 : vector<1x1x8x128xbf16> to vector<8x128xbf16>
    %c0_298 = arith.constant 0 : index
    %c5_299 = arith.constant 5 : index
    %c1_300 = arith.constant 1 : index
    %c0_301 = arith.constant 0 : index
    %269 = vector.load %arg4[%c0_298, %c5_299, %c1_300, %c0_301] : memref<1x8x9x128xbf16, #tpu.memory_space<vmem>>, vector<1x1x8x128xbf16>
    %270 = vector.shape_cast %269 : vector<1x1x8x128xbf16> to vector<8x128xbf16>
    %c4_302 = arith.constant 4 : index
    %c0_303 = arith.constant 0 : index
    %c0_304 = arith.constant 0 : index
    %271 = vector.load %arg5[%c4_302, %c0_303, %c0_304] : memref<6x128x128xbf16, #tpu.memory_space<vmem>>, vector<1x128x128xbf16>
    %272 = vector.shape_cast %271 : vector<1x128x128xbf16> to vector<128x128xbf16>
    %cst_305 = arith.constant dense<0.000000e+00> : vector<8x128xf32>
    %273 = tpu.matmul %268, %272, %cst_305 {dimension_numbers = #tpu.dot_dimension_numbers<[1], [0], [0], [1], [0, 0, 1, 1], [], []>} : vector<8x128xbf16>, vector<128x128xbf16>, vector<8x128xf32> -> vector<8x128xf32>
    %274 = arith.addf %266, %273 : vector<8x128xf32>
    %c5_306 = arith.constant 5 : index
    %c0_307 = arith.constant 0 : index
    %c0_308 = arith.constant 0 : index
    %275 = vector.load %arg5[%c5_306, %c0_307, %c0_308] : memref<6x128x128xbf16, #tpu.memory_space<vmem>>, vector<1x128x128xbf16>
    %276 = vector.shape_cast %275 : vector<1x128x128xbf16> to vector<128x128xbf16>
    %cst_309 = arith.constant dense<0.000000e+00> : vector<8x128xf32>
    %277 = tpu.matmul %270, %276, %cst_309 {dimension_numbers = #tpu.dot_dimension_numbers<[1], [0], [0], [1], [0, 0, 1, 1], [], []>} : vector<8x128xbf16>, vector<128x128xbf16>, vector<8x128xf32> -> vector<8x128xf32>
    %278 = arith.addf %274, %277 : vector<8x128xf32>
    %279 = arith.truncf %278 : vector<8x128xf32> to vector<8x128xbf16>
    %c0_310 = arith.constant 0 : index
    %c40 = arith.constant 40 : index
    %c0_311 = arith.constant 0 : index
    %280 = vector.load %arg6[%c0_310, %c40, %c0_311] : memref<1x64x128xbf16, #tpu.memory_space<vmem>>, vector<1x8x128xbf16>
    %281 = vector.shape_cast %280 : vector<1x8x128xbf16> to vector<8x128xbf16>
    %282 = vector.shape_cast %279 : vector<8x128xbf16> to vector<1x8x128xbf16>
    tpu.vector_store %arg6[%c0_310, %c40, %c0_311], %282 {strides = array<i32>} : memref<1x64x128xbf16, #tpu.memory_space<vmem>>, vector<1x8x128xbf16>,
    %cst_312 = arith.constant dense<0.000000e+00> : vector<128xf32>
    %283 = vector.multi_reduction <add>, %278, %cst_312 [0] : vector<8x128xf32> to vector<128xf32>
    %284 = vector.shape_cast %283 : vector<128xf32> to vector<1x128xf32>
    %285 = arith.addf %237, %284 : vector<1x128xf32>
    %286 = arith.mulf %278, %278 : vector<8x128xf32>
    %cst_313 = arith.constant dense<0.000000e+00> : vector<128xf32>
    %287 = vector.multi_reduction <add>, %286, %cst_313 [0] : vector<8x128xf32> to vector<128xf32>
    %288 = vector.shape_cast %287 : vector<128xf32> to vector<1x128xf32>
    %289 = arith.addf %241, %288 : vector<1x128xf32>
    %cst_314 = arith.constant 0.000000e+00 : f32
    %290 = vector.broadcast %cst_314 : f32 to vector<8x128xf32>
    %c0_315 = arith.constant 0 : index
    %c6 = arith.constant 6 : index
    %c0_316 = arith.constant 0 : index
    %c0_317 = arith.constant 0 : index
    %291 = vector.load %arg2[%c0_315, %c6, %c0_316, %c0_317] : memref<1x8x9x128xbf16, #tpu.memory_space<vmem>>, vector<1x1x8x128xbf16>
    %292 = vector.shape_cast %291 : vector<1x1x8x128xbf16> to vector<8x128xbf16>
    %c0_318 = arith.constant 0 : index
    %c6_319 = arith.constant 6 : index
    %c1_320 = arith.constant 1 : index
    %c0_321 = arith.constant 0 : index
    %293 = vector.load %arg2[%c0_318, %c6_319, %c1_320, %c0_321] : memref<1x8x9x128xbf16, #tpu.memory_space<vmem>>, vector<1x1x8x128xbf16>
    %294 = vector.shape_cast %293 : vector<1x1x8x128xbf16> to vector<8x128xbf16>
    %c0_322 = arith.constant 0 : index
    %c0_323 = arith.constant 0 : index
    %c0_324 = arith.constant 0 : index
    %295 = vector.load %arg5[%c0_322, %c0_323, %c0_324] : memref<6x128x128xbf16, #tpu.memory_space<vmem>>, vector<1x128x128xbf16>
    %296 = vector.shape_cast %295 : vector<1x128x128xbf16> to vector<128x128xbf16>
    %cst_325 = arith.constant dense<0.000000e+00> : vector<8x128xf32>
    %297 = tpu.matmul %292, %296, %cst_325 {dimension_numbers = #tpu.dot_dimension_numbers<[1], [0], [0], [1], [0, 0, 1, 1], [], []>} : vector<8x128xbf16>, vector<128x128xbf16>, vector<8x128xf32> -> vector<8x128xf32>
    %298 = arith.addf %290, %297 : vector<8x128xf32>
    %c1_326 = arith.constant 1 : index
    %c0_327 = arith.constant 0 : index
    %c0_328 = arith.constant 0 : index
    %299 = vector.load %arg5[%c1_326, %c0_327, %c0_328] : memref<6x128x128xbf16, #tpu.memory_space<vmem>>, vector<1x128x128xbf16>
    %300 = vector.shape_cast %299 : vector<1x128x128xbf16> to vector<128x128xbf16>
    %cst_329 = arith.constant dense<0.000000e+00> : vector<8x128xf32>
    %301 = tpu.matmul %294, %300, %cst_329 {dimension_numbers = #tpu.dot_dimension_numbers<[1], [0], [0], [1], [0, 0, 1, 1], [], []>} : vector<8x128xbf16>, vector<128x128xbf16>, vector<8x128xf32> -> vector<8x128xf32>
    %302 = arith.addf %298, %301 : vector<8x128xf32>
    %c0_330 = arith.constant 0 : index
    %c6_331 = arith.constant 6 : index
    %c0_332 = arith.constant 0 : index
    %c0_333 = arith.constant 0 : index
    %303 = vector.load %arg3[%c0_330, %c6_331, %c0_332, %c0_333] : memref<1x8x9x128xbf16, #tpu.memory_space<vmem>>, vector<1x1x8x128xbf16>
    %304 = vector.shape_cast %303 : vector<1x1x8x128xbf16> to vector<8x128xbf16>
    %c0_334 = arith.constant 0 : index
    %c6_335 = arith.constant 6 : index
    %c1_336 = arith.constant 1 : index
    %c0_337 = arith.constant 0 : index
    %305 = vector.load %arg3[%c0_334, %c6_335, %c1_336, %c0_337] : memref<1x8x9x128xbf16, #tpu.memory_space<vmem>>, vector<1x1x8x128xbf16>
    %306 = vector.shape_cast %305 : vector<1x1x8x128xbf16> to vector<8x128xbf16>
    %c2_338 = arith.constant 2 : index
    %c0_339 = arith.constant 0 : index
    %c0_340 = arith.constant 0 : index
    %307 = vector.load %arg5[%c2_338, %c0_339, %c0_340] : memref<6x128x128xbf16, #tpu.memory_space<vmem>>, vector<1x128x128xbf16>
    %308 = vector.shape_cast %307 : vector<1x128x128xbf16> to vector<128x128xbf16>
    %cst_341 = arith.constant dense<0.000000e+00> : vector<8x128xf32>
    %309 = tpu.matmul %304, %308, %cst_341 {dimension_numbers = #tpu.dot_dimension_numbers<[1], [0], [0], [1], [0, 0, 1, 1], [], []>} : vector<8x128xbf16>, vector<128x128xbf16>, vector<8x128xf32> -> vector<8x128xf32>
    %310 = arith.addf %302, %309 : vector<8x128xf32>
    %c3_342 = arith.constant 3 : index
    %c0_343 = arith.constant 0 : index
    %c0_344 = arith.constant 0 : index
    %311 = vector.load %arg5[%c3_342, %c0_343, %c0_344] : memref<6x128x128xbf16, #tpu.memory_space<vmem>>, vector<1x128x128xbf16>
    %312 = vector.shape_cast %311 : vector<1x128x128xbf16> to vector<128x128xbf16>
    %cst_345 = arith.constant dense<0.000000e+00> : vector<8x128xf32>
    %313 = tpu.matmul %306, %312, %cst_345 {dimension_numbers = #tpu.dot_dimension_numbers<[1], [0], [0], [1], [0, 0, 1, 1], [], []>} : vector<8x128xbf16>, vector<128x128xbf16>, vector<8x128xf32> -> vector<8x128xf32>
    %314 = arith.addf %310, %313 : vector<8x128xf32>
    %c0_346 = arith.constant 0 : index
    %c6_347 = arith.constant 6 : index
    %c0_348 = arith.constant 0 : index
    %c0_349 = arith.constant 0 : index
    %315 = vector.load %arg4[%c0_346, %c6_347, %c0_348, %c0_349] : memref<1x8x9x128xbf16, #tpu.memory_space<vmem>>, vector<1x1x8x128xbf16>
    %316 = vector.shape_cast %315 : vector<1x1x8x128xbf16> to vector<8x128xbf16>
    %c0_350 = arith.constant 0 : index
    %c6_351 = arith.constant 6 : index
    %c1_352 = arith.constant 1 : index
    %c0_353 = arith.constant 0 : index
    %317 = vector.load %arg4[%c0_350, %c6_351, %c1_352, %c0_353] : memref<1x8x9x128xbf16, #tpu.memory_space<vmem>>, vector<1x1x8x128xbf16>
    %318 = vector.shape_cast %317 : vector<1x1x8x128xbf16> to vector<8x128xbf16>
    %c4_354 = arith.constant 4 : index
    %c0_355 = arith.constant 0 : index
    %c0_356 = arith.constant 0 : index
    %319 = vector.load %arg5[%c4_354, %c0_355, %c0_356] : memref<6x128x128xbf16, #tpu.memory_space<vmem>>, vector<1x128x128xbf16>
    %320 = vector.shape_cast %319 : vector<1x128x128xbf16> to vector<128x128xbf16>
    %cst_357 = arith.constant dense<0.000000e+00> : vector<8x128xf32>
    %321 = tpu.matmul %316, %320, %cst_357 {dimension_numbers = #tpu.dot_dimension_numbers<[1], [0], [0], [1], [0, 0, 1, 1], [], []>} : vector<8x128xbf16>, vector<128x128xbf16>, vector<8x128xf32> -> vector<8x128xf32>
    %322 = arith.addf %314, %321 : vector<8x128xf32>
    %c5_358 = arith.constant 5 : index
    %c0_359 = arith.constant 0 : index
    %c0_360 = arith.constant 0 : index
    %323 = vector.load %arg5[%c5_358, %c0_359, %c0_360] : memref<6x128x128xbf16, #tpu.memory_space<vmem>>, vector<1x128x128xbf16>
    %324 = vector.shape_cast %323 : vector<1x128x128xbf16> to vector<128x128xbf16>
    %cst_361 = arith.constant dense<0.000000e+00> : vector<8x128xf32>
    %325 = tpu.matmul %318, %324, %cst_361 {dimension_numbers = #tpu.dot_dimension_numbers<[1], [0], [0], [1], [0, 0, 1, 1], [], []>} : vector<8x128xbf16>, vector<128x128xbf16>, vector<8x128xf32> -> vector<8x128xf32>
    %326 = arith.addf %322, %325 : vector<8x128xf32>
    %327 = arith.truncf %326 : vector<8x128xf32> to vector<8x128xbf16>
    %c0_362 = arith.constant 0 : index
    %c48 = arith.constant 48 : index
    %c0_363 = arith.constant 0 : index
    %328 = vector.load %arg6[%c0_362, %c48, %c0_363] : memref<1x64x128xbf16, #tpu.memory_space<vmem>>, vector<1x8x128xbf16>
    %329 = vector.shape_cast %328 : vector<1x8x128xbf16> to vector<8x128xbf16>
    %330 = vector.shape_cast %327 : vector<8x128xbf16> to vector<1x8x128xbf16>
    tpu.vector_store %arg6[%c0_362, %c48, %c0_363], %330 {strides = array<i32>} : memref<1x64x128xbf16, #tpu.memory_space<vmem>>, vector<1x8x128xbf16>,
    %cst_364 = arith.constant dense<0.000000e+00> : vector<128xf32>
    %331 = vector.multi_reduction <add>, %326, %cst_364 [0] : vector<8x128xf32> to vector<128xf32>
    %332 = vector.shape_cast %331 : vector<128xf32> to vector<1x128xf32>
    %333 = arith.addf %285, %332 : vector<1x128xf32>
    %334 = arith.mulf %326, %326 : vector<8x128xf32>
    %cst_365 = arith.constant dense<0.000000e+00> : vector<128xf32>
    %335 = vector.multi_reduction <add>, %334, %cst_365 [0] : vector<8x128xf32> to vector<128xf32>
    %336 = vector.shape_cast %335 : vector<128xf32> to vector<1x128xf32>
    %337 = arith.addf %289, %336 : vector<1x128xf32>
    %cst_366 = arith.constant 0.000000e+00 : f32
    %338 = vector.broadcast %cst_366 : f32 to vector<8x128xf32>
    %c0_367 = arith.constant 0 : index
    %c7 = arith.constant 7 : index
    %c0_368 = arith.constant 0 : index
    %c0_369 = arith.constant 0 : index
    %339 = vector.load %arg2[%c0_367, %c7, %c0_368, %c0_369] : memref<1x8x9x128xbf16, #tpu.memory_space<vmem>>, vector<1x1x8x128xbf16>
    %340 = vector.shape_cast %339 : vector<1x1x8x128xbf16> to vector<8x128xbf16>
    %c0_370 = arith.constant 0 : index
    %c7_371 = arith.constant 7 : index
    %c1_372 = arith.constant 1 : index
    %c0_373 = arith.constant 0 : index
    %341 = vector.load %arg2[%c0_370, %c7_371, %c1_372, %c0_373] : memref<1x8x9x128xbf16, #tpu.memory_space<vmem>>, vector<1x1x8x128xbf16>
    %342 = vector.shape_cast %341 : vector<1x1x8x128xbf16> to vector<8x128xbf16>
    %c0_374 = arith.constant 0 : index
    %c0_375 = arith.constant 0 : index
    %c0_376 = arith.constant 0 : index
    %343 = vector.load %arg5[%c0_374, %c0_375, %c0_376] : memref<6x128x128xbf16, #tpu.memory_space<vmem>>, vector<1x128x128xbf16>
    %344 = vector.shape_cast %343 : vector<1x128x128xbf16> to vector<128x128xbf16>
    %cst_377 = arith.constant dense<0.000000e+00> : vector<8x128xf32>
    %345 = tpu.matmul %340, %344, %cst_377 {dimension_numbers = #tpu.dot_dimension_numbers<[1], [0], [0], [1], [0, 0, 1, 1], [], []>} : vector<8x128xbf16>, vector<128x128xbf16>, vector<8x128xf32> -> vector<8x128xf32>
    %346 = arith.addf %338, %345 : vector<8x128xf32>
    %c1_378 = arith.constant 1 : index
    %c0_379 = arith.constant 0 : index
    %c0_380 = arith.constant 0 : index
    %347 = vector.load %arg5[%c1_378, %c0_379, %c0_380] : memref<6x128x128xbf16, #tpu.memory_space<vmem>>, vector<1x128x128xbf16>
    %348 = vector.shape_cast %347 : vector<1x128x128xbf16> to vector<128x128xbf16>
    %cst_381 = arith.constant dense<0.000000e+00> : vector<8x128xf32>
    %349 = tpu.matmul %342, %348, %cst_381 {dimension_numbers = #tpu.dot_dimension_numbers<[1], [0], [0], [1], [0, 0, 1, 1], [], []>} : vector<8x128xbf16>, vector<128x128xbf16>, vector<8x128xf32> -> vector<8x128xf32>
    %350 = arith.addf %346, %349 : vector<8x128xf32>
    %c0_382 = arith.constant 0 : index
    %c7_383 = arith.constant 7 : index
    %c0_384 = arith.constant 0 : index
    %c0_385 = arith.constant 0 : index
    %351 = vector.load %arg3[%c0_382, %c7_383, %c0_384, %c0_385] : memref<1x8x9x128xbf16, #tpu.memory_space<vmem>>, vector<1x1x8x128xbf16>
    %352 = vector.shape_cast %351 : vector<1x1x8x128xbf16> to vector<8x128xbf16>
    %c0_386 = arith.constant 0 : index
    %c7_387 = arith.constant 7 : index
    %c1_388 = arith.constant 1 : index
    %c0_389 = arith.constant 0 : index
    %353 = vector.load %arg3[%c0_386, %c7_387, %c1_388, %c0_389] : memref<1x8x9x128xbf16, #tpu.memory_space<vmem>>, vector<1x1x8x128xbf16>
    %354 = vector.shape_cast %353 : vector<1x1x8x128xbf16> to vector<8x128xbf16>
    %c2_390 = arith.constant 2 : index
    %c0_391 = arith.constant 0 : index
    %c0_392 = arith.constant 0 : index
    %355 = vector.load %arg5[%c2_390, %c0_391, %c0_392] : memref<6x128x128xbf16, #tpu.memory_space<vmem>>, vector<1x128x128xbf16>
    %356 = vector.shape_cast %355 : vector<1x128x128xbf16> to vector<128x128xbf16>
    %cst_393 = arith.constant dense<0.000000e+00> : vector<8x128xf32>
    %357 = tpu.matmul %352, %356, %cst_393 {dimension_numbers = #tpu.dot_dimension_numbers<[1], [0], [0], [1], [0, 0, 1, 1], [], []>} : vector<8x128xbf16>, vector<128x128xbf16>, vector<8x128xf32> -> vector<8x128xf32>
    %358 = arith.addf %350, %357 : vector<8x128xf32>
    %c3_394 = arith.constant 3 : index
    %c0_395 = arith.constant 0 : index
    %c0_396 = arith.constant 0 : index
    %359 = vector.load %arg5[%c3_394, %c0_395, %c0_396] : memref<6x128x128xbf16, #tpu.memory_space<vmem>>, vector<1x128x128xbf16>
    %360 = vector.shape_cast %359 : vector<1x128x128xbf16> to vector<128x128xbf16>
    %cst_397 = arith.constant dense<0.000000e+00> : vector<8x128xf32>
    %361 = tpu.matmul %354, %360, %cst_397 {dimension_numbers = #tpu.dot_dimension_numbers<[1], [0], [0], [1], [0, 0, 1, 1], [], []>} : vector<8x128xbf16>, vector<128x128xbf16>, vector<8x128xf32> -> vector<8x128xf32>
    %362 = arith.addf %358, %361 : vector<8x128xf32>
    %c0_398 = arith.constant 0 : index
    %c7_399 = arith.constant 7 : index
    %c0_400 = arith.constant 0 : index
    %c0_401 = arith.constant 0 : index
    %363 = vector.load %arg4[%c0_398, %c7_399, %c0_400, %c0_401] : memref<1x8x9x128xbf16, #tpu.memory_space<vmem>>, vector<1x1x8x128xbf16>
    %364 = vector.shape_cast %363 : vector<1x1x8x128xbf16> to vector<8x128xbf16>
    %c0_402 = arith.constant 0 : index
    %c7_403 = arith.constant 7 : index
    %c1_404 = arith.constant 1 : index
    %c0_405 = arith.constant 0 : index
    %365 = vector.load %arg4[%c0_402, %c7_403, %c1_404, %c0_405] : memref<1x8x9x128xbf16, #tpu.memory_space<vmem>>, vector<1x1x8x128xbf16>
    %366 = vector.shape_cast %365 : vector<1x1x8x128xbf16> to vector<8x128xbf16>
    %c4_406 = arith.constant 4 : index
    %c0_407 = arith.constant 0 : index
    %c0_408 = arith.constant 0 : index
    %367 = vector.load %arg5[%c4_406, %c0_407, %c0_408] : memref<6x128x128xbf16, #tpu.memory_space<vmem>>, vector<1x128x128xbf16>
    %368 = vector.shape_cast %367 : vector<1x128x128xbf16> to vector<128x128xbf16>
    %cst_409 = arith.constant dense<0.000000e+00> : vector<8x128xf32>
    %369 = tpu.matmul %364, %368, %cst_409 {dimension_numbers = #tpu.dot_dimension_numbers<[1], [0], [0], [1], [0, 0, 1, 1], [], []>} : vector<8x128xbf16>, vector<128x128xbf16>, vector<8x128xf32> -> vector<8x128xf32>
    %370 = arith.addf %362, %369 : vector<8x128xf32>
    %c5_410 = arith.constant 5 : index
    %c0_411 = arith.constant 0 : index
    %c0_412 = arith.constant 0 : index
    %371 = vector.load %arg5[%c5_410, %c0_411, %c0_412] : memref<6x128x128xbf16, #tpu.memory_space<vmem>>, vector<1x128x128xbf16>
    %372 = vector.shape_cast %371 : vector<1x128x128xbf16> to vector<128x128xbf16>
    %cst_413 = arith.constant dense<0.000000e+00> : vector<8x128xf32>
    %373 = tpu.matmul %366, %372, %cst_413 {dimension_numbers = #tpu.dot_dimension_numbers<[1], [0], [0], [1], [0, 0, 1, 1], [], []>} : vector<8x128xbf16>, vector<128x128xbf16>, vector<8x128xf32> -> vector<8x128xf32>
    %374 = arith.addf %370, %373 : vector<8x128xf32>
    %375 = arith.truncf %374 : vector<8x128xf32> to vector<8x128xbf16>
    %c0_414 = arith.constant 0 : index
    %c56 = arith.constant 56 : index
    %c0_415 = arith.constant 0 : index
    %376 = vector.load %arg6[%c0_414, %c56, %c0_415] : memref<1x64x128xbf16, #tpu.memory_space<vmem>>, vector<1x8x128xbf16>
    %377 = vector.shape_cast %376 : vector<1x8x128xbf16> to vector<8x128xbf16>
    %378 = vector.shape_cast %375 : vector<8x128xbf16> to vector<1x8x128xbf16>
    tpu.vector_store %arg6[%c0_414, %c56, %c0_415], %378 {strides = array<i32>} : memref<1x64x128xbf16, #tpu.memory_space<vmem>>, vector<1x8x128xbf16>,
    %cst_416 = arith.constant dense<0.000000e+00> : vector<128xf32>
    %379 = vector.multi_reduction <add>, %374, %cst_416 [0] : vector<8x128xf32> to vector<128xf32>
    %380 = vector.shape_cast %379 : vector<128xf32> to vector<1x128xf32>
    %381 = arith.addf %333, %380 : vector<1x128xf32>
    %382 = arith.mulf %374, %374 : vector<8x128xf32>
    %cst_417 = arith.constant dense<0.000000e+00> : vector<128xf32>
    %383 = vector.multi_reduction <add>, %382, %cst_417 [0] : vector<8x128xf32> to vector<128xf32>
    %384 = vector.shape_cast %383 : vector<128xf32> to vector<1x128xf32>
    %385 = arith.addf %337, %384 : vector<1x128xf32>
    %c0_418 = arith.constant 0 : index
    %c0_419 = arith.constant 0 : index
    %c0_420 = arith.constant 0 : index
    %c0_421 = arith.constant 0 : index
    %386 = vector.load %arg7[%c0_418, %c0_419, %c0_420, %c0_421] : memref<1x1x2x128xf32, #tpu.memory_space<vmem>>, vector<1x1x1x128xf32>
    %387 = vector.shape_cast %386 : vector<1x1x1x128xf32> to vector<1x128xf32>
    %388 = vector.shape_cast %381 : vector<1x128xf32> to vector<1x1x1x128xf32>
    tpu.vector_store %arg7[%c0_418, %c0_419, %c0_420, %c0_421], %388 {strides = array<i32>} : memref<1x1x2x128xf32, #tpu.memory_space<vmem>>, vector<1x1x1x128xf32>,
    %c0_422 = arith.constant 0 : index
    %c0_423 = arith.constant 0 : index
    %c1_424 = arith.constant 1 : index
    %c0_425 = arith.constant 0 : index
    %389 = vector.load %arg7[%c0_422, %c0_423, %c1_424, %c0_425] : memref<1x1x2x128xf32, #tpu.memory_space<vmem>>, vector<1x1x1x128xf32>
    %390 = vector.shape_cast %389 : vector<1x1x1x128xf32> to vector<1x128xf32>
    %391 = vector.shape_cast %385 : vector<1x128xf32> to vector<1x1x1x128xf32>
    tpu.vector_store %arg7[%c0_422, %c0_423, %c1_424, %c0_425], %391 {strides = array<i32>} : memref<1x1x2x128xf32, #tpu.memory_space<vmem>>, vector<1x1x1x128xf32>,
    return
  }
  func.func @transform_0(%arg0: i32, %arg1: i32) -> (i32, i32, i32, i32) {
    %c0_i32 = arith.constant 0 : i32
    %c0_i32_0 = arith.constant 0 : i32
    %c0_i32_1 = arith.constant 0 : i32
    return %arg0, %arg1, %c0_i32, %c0_i32_0 : i32, i32, i32, i32
  }
  func.func @transform_1(%arg0: i32, %arg1: i32) -> (i32, i32, i32, i32) {
    %c0_i32 = arith.constant 0 : i32
    %c0_i32_0 = arith.constant 0 : i32
    %c0_i32_1 = arith.constant 0 : i32
    return %arg0, %arg1, %c0_i32, %c0_i32_0 : i32, i32, i32, i32
  }
  func.func @transform_2(%arg0: i32, %arg1: i32) -> (i32, i32, i32, i32) {
    %c0_i32 = arith.constant 0 : i32
    %c0_i32_0 = arith.constant 0 : i32
    %c0_i32_1 = arith.constant 0 : i32
    return %arg0, %arg1, %c0_i32, %c0_i32_0 : i32, i32, i32, i32
  }
  func.func @transform_3(%arg0: i32, %arg1: i32) -> (i32, i32, i32) {
    %c0_i32 = arith.constant 0 : i32
    %c0_i32_0 = arith.constant 0 : i32
    %c0_i32_1 = arith.constant 0 : i32
    %c0_i32_2 = arith.constant 0 : i32
    return %c0_i32, %c0_i32_0, %c0_i32_1 : i32, i32, i32
  }
  func.func @transform_4(%arg0: i32, %arg1: i32) -> (i32, i32, i32) {
    %c0_i32 = arith.constant 0 : i32
    %c0_i32_0 = arith.constant 0 : i32
    return %arg0, %arg1, %c0_i32 : i32, i32, i32
  }
  func.func @transform_5(%arg0: i32, %arg1: i32) -> (i32, i32, i32, i32) {
    %c0_i32 = arith.constant 0 : i32
    %c0_i32_0 = arith.constant 0 : i32
    %c0_i32_1 = arith.constant 0 : i32
    return %arg0, %arg1, %c0_i32, %c0_i32_0 : i32, i32, i32, i32
  }
}

</mosaic_0001>

<bundles_post_ra>
// kernel: tpu_custom_call.1
= control target key start
LH: loop header
LB: loop body
LE: loop exit
PB: predicated region body
PF: predicated region fallthrough
CT: control target
= control target key end

     0   :  { %11 = vsyncpa [#allocation3], 0  ;;  %s11282_s0 = inlined_call_operand.vmem [shape: bf16[2,8,9,128], index: 0, kind: input, shape index: {}]   ;;  %s11283_s1 = inlined_call_operand.vmem [shape: bf16[2,8,9,128], index: 1, kind: input, shape index: {}]   ;;  %s11284_s2 = inlined_call_operand.vmem [shape: bf16[2,8,9,128], index: 2, kind: input, shape index: {}]   ;;  %s11285_s3 = inlined_call_operand.vmem [shape: bf16[6,128,128], index: 3, kind: input, shape index: {}]   ;;  %s11286_s4 = inlined_call_operand.hbm [shape: bf16[2,64,128], index: 4, kind: output, shape index: {0}]   ;;  %s11287_s5 = inlined_call_operand.hbm [shape: f32[2,1,2,128], index: 5, kind: output, shape index: {1}]  }
   0x1   :  { %13 = vsyncpa [#allocation3 + $0x1], 0 }
   0x2   :  { %14 = vsyncpa [#allocation5], 0 }
   0x3   :  { %16 = vsyncpa [#allocation5 + $0x1], 0  ;;  %s9375_s18 = smov 0   ;;  %s9377_s19 = smov 0  }
   0x4   :  { %s9379_s20 = smov 0   ;;  %s9381_s21 = smov 0  }
   0x5   :  { %s9383_s22 = smov 0   ;;  %s9385_s23 = smov 0  }
   0x6 LB: > { %s6089_s24 = sadd.s32 4294967295, %s9337_s23   ;;  %s6090_s25 = sadd.s32 4294967294, %s9337_s23   ;;  %s9337_s23 = sphi %s9385_s23, %s22_s23   ;;  %s9333_s22 = sphi %s9383_s22, %s11294_s22   ;;  %s9329_s21 = sphi %s9381_s21, %s11293_s21   ;;  %s9325_s20 = sphi %s9379_s20, %s11292_s20   ;;  %s9321_s19 = sphi %s9377_s19, %s11291_s19   ;;  %s9317_s18 = sphi %s9375_s18, %s11290_s18  }
   0x7   : > { %s34_s26 = sadd.s32 1, %s9333_s22  ;;  %s148_s27 = sadd.s32 1, %s9325_s20 }
   0x8   : > { %p36_p0 = scmp.ge.s32.totalorder %s34_s26, 2  ;;  %p158_p1 = scmp.ne.s32.totalorder %s9325_s20, %s9321_s19 }
   0x9   : > { %p159_p2 = scmp.eq.s32.totalorder %s6089_s24, 1  ;;  %p164_p3 = scmp.ne.s32.totalorder %s9321_s19, %s9317_s18 }
   0xa   : > { %s11296_s26 = smov (%p36_p0, %s34_s26), 0  ;;  %p165_p5 = scmp.eq.s32.totalorder %s6090_s25, 1 }
   0xb   : > { %p9415_p4 = por %p159_p2, %p158_p1  ;;  %s143_s29 = ssub.s32 %s9333_s22, %s11296_s26 }
   0xc   : > { %p6093_p6 = scmp.ge.s32.totalorder %s9337_s23, 1  ;;  %p146_p7 = scmp.eq.s32.totalorder %s143_s29, 0 }
   0xd   : > { %p9422_p8 = por %p165_p5, %p164_p3  ;;  %p256_p9 = scmp.lt.s32.totalorder %s9337_s23, 3 }
   0xe   : > { %s9428_s6 = scalar_select %p146_p7, %s9325_s20, %s148_s27  }
   0xf   : > { %p257_p10 = pnand %p6093_p6, %p256_p9 }
  0x10   : > { %v8819_v0 = vld [vmem:[%s11285_s3 + $0x40] sm:$0xff] (!%p257_p10)   ;;  %v9339_v1 = vmov (!%p257_p10), 0.0   ;;  %v8821_v3 = vld [vmem:[%s11285_s3 + $0x48] sm:$0xff] (!%p257_p10)   ;;  %vm9340_vm0 = vmmov (!%p257_p10), 0   ;;  %p315_p11 = scmp.lt.s32.totalorder (!%p257_p10), %s9329_s21, 1  ;;  %v8823_v5 = vld [vmem:[%s11285_s3 + $0x50] sm:$0xff] (!%p257_p10)  }
  0x11   : > { %260 = sbr.rel (%p257_p10) target bundleno = 1041 (0x411), region = 36  ;;  %7635 = vmatprep.subr.bf16.mxu0 (!%p257_p10), %v9339_v1  ;;  %7755 = vmatprep.subr.bf16.mxu1 (!%p257_p10), %v9339_v1  ;;  %v8820_v2 = vld [vmem:[%s11285_s3 + $0x40] sm:$0xff] (!%p257_p10)   ;;  %v8822_v4 = vld [vmem:[%s11285_s3 + $0x48] sm:$0xff] (!%p257_p10)   ;;  %v8824_v6 = vld [vmem:[%s11285_s3 + $0x50] sm:$0xff] (!%p257_p10)   ;;  %s10348_s15 = sand.u32 (!%p257_p10), 1, %s9321_s19  }
  0x12   : > { %7636 = vmatpush3.bf16.msra.mxu0 (!%p257_p10), %v8819_v0  ;;  %7651 = vmatprep.mubr.msk.bf16.mxu0 (!%p257_p10), %vm9340_vm0, %v9339_v1  ;;  %v8825_v7 = vld [vmem:[%s11285_s3 + $0x58] sm:$0xff] (!%p257_p10)   ;;  %v8827_v9 = vld [vmem:[%s11285_s3 + $0x60] sm:$0xff] (!%p257_p10)   ;;  %v8829_v13 = vld [vmem:[%s11285_s3 + $0x68] sm:$0xff] (!%p257_p10)   ;;  %s7202_s25 = sshll.u32 (!%p257_p10), %s9329_s21, 9  ;;  %s5898_s9 = scalar_lea.sflag (!%p257_p10), [#allocation3], %s10348_s15 }
  0x13   : > { %7756 = vmatpush3.bf16.msra.mxu1 (!%p257_p10), %v8820_v2  ;;  %7637 = vmatprep.subr.bf16.mxu0 (!%p257_p10), %v9339_v1  ;;  %v8826_v8 = vld [vmem:[%s11285_s3 + $0x58] sm:$0xff] (!%p257_p10)   ;;  %v8828_v10 = vld [vmem:[%s11285_s3 + $0x60] sm:$0xff] (!%p257_p10)   ;;  %v8830_v17 = vld [vmem:[%s11285_s3 + $0x68] sm:$0xff] (!%p257_p10)   ;;  %s11197_s8 = scalar_lea.hbm (!%p257_p10), %s11286_s4, %s7202_s25  ;;  %s9341_s14 = smov (!%p257_p10), [#allocation2]  }
  0x14   : > { %7757 = vmatprep.subr.bf16.mxu1 (!%p257_p10), %v9339_v1  ;;  %7771 = vmatprep.mubr.msk.bf16.mxu1 (!%p257_p10), %vm9340_vm0, %v9339_v1  ;;  %v8831_v20 = vld [vmem:[%s11285_s3 + $0x70] sm:$0xff] (!%p257_p10)   ;;  %v8833_v23 = vld [vmem:[%s11285_s3 + $0x78] sm:$0xff] (!%p257_p10)   ;;  %v8836_v30 = vld [vmem:[%s11285_s3] sm:$0xff] (!%p257_p10)   ;;  %s9231_s16 = sshll.u32 (!%p257_p10), %s9341_s14, 4  ;;  %s9232_s16 = int_to_ptr.vmem [resolvable:$false] %s9231_s16 }
  0x15   : > { %v8832_v22 = vld [vmem:[%s11285_s3 + $0x70] sm:$0xff] (!%p257_p10)   ;;  %v8834_v28 = vld [vmem:[%s11285_s3 + $0x78] sm:$0xff] (!%p257_p10)   ;;  %v8838_v32 = vld [vmem:[%s11285_s3] sm:$0xff] (!%p257_p10)  }
  0x16   : > { %7638 = vmatpush3.bf16.msra.mxu0 (!%p257_p10), %v8821_v3  ;;  %v8839_v33 = vld [vmem:[%s11285_s3 + $0x8] sm:$0xff] (!%p257_p10)   ;;  %v8841_v35 = vld [vmem:[%s11285_s3 + $0x10] sm:$0xff] (!%p257_p10)   ;;  %v8843_v37 = vld [vmem:[%s11285_s3 + $0x18] sm:$0xff] (!%p257_p10)  }
  0x17   : > { %7758 = vmatpush3.bf16.msra.mxu1 (!%p257_p10), %v8822_v4  ;;  %7639 = vmatprep.subr.bf16.mxu0 (!%p257_p10), %v9339_v1  ;;  %v8840_v34 = vld [vmem:[%s11285_s3 + $0x8] sm:$0xff] (!%p257_p10)   ;;  %v8842_v36 = vld [vmem:[%s11285_s3 + $0x10] sm:$0xff] (!%p257_p10)   ;;  %v8844_v38 = vld [vmem:[%s11285_s3 + $0x18] sm:$0xff] (!%p257_p10)  }
  0x18   : > { %s316_s17 = scalar_select %p315_p11, %s9329_s21, 1  ;;  %7759 = vmatprep.subr.bf16.mxu1 %v9339_v1  ;;  %v8845_v39 = vld [vmem:[%s11285_s3 + $0x20] sm:$0xff]   ;;  %v8847_v41 = vld [vmem:[%s11285_s3 + $0x28] sm:$0xff]   ;;  %v8849_v43 = vld [vmem:[%s11285_s3 + $0x30] sm:$0xff]  }
  0x19   : > { %v8846_v40 = vld [vmem:[%s11285_s3 + $0x20] sm:$0xff]   ;;  %v8848_v42 = vld [vmem:[%s11285_s3 + $0x28] sm:$0xff]   ;;  %v8850_v44 = vld [vmem:[%s11285_s3 + $0x30] sm:$0xff]  }
  0x1a   : > { %7640 = vmatpush3.bf16.msra.mxu0 %v8823_v5  ;;  %s9463_s7 = sshll.u32 %s316_s17, 6  ;;  %v8851_v45 = vld [vmem:[%s11285_s3 + $0x38] sm:$0xff]   ;;  %v8853_v47 = vld [vmem:[%s11285_s3 + $0x80] sm:$0xff]   ;;  %v8855_v49 = vld [vmem:[%s11285_s3 + $0x88] sm:$0xff]   ;;  %s6094_s17 = sshll.u32 %s10348_s15, 5 }
  0x1b   : > { %7760 = vmatpush3.bf16.msra.mxu1 %v8824_v6  ;;  %7641 = vmatprep.subr.bf16.mxu0 %v9339_v1  ;;  %s9474_s12 = scalar_lea.vmem %s11282_s0, %s9463_s7  ;;  %v8852_v46 = vld [vmem:[%s11285_s3 + $0x38] sm:$0xff]   ;;  %v8854_v48 = vld [vmem:[%s11285_s3 + $0x80] sm:$0xff]   ;;  %v8856_v50 = vld [vmem:[%s11285_s3 + $0x88] sm:$0xff]   ;;  %s9652_s13 = scalar_lea.vmem %s11283_s1, %s9463_s7 }
  0x1c   : > { %7761 = vmatprep.subr.bf16.mxu1 %v9339_v1  ;;  %v9485_v11 = vld [vmem:[%s9474_s12] sm:$0xf]  ;;  %v350_v12 = vld [vmem:[%s9474_s12 + $0x4] sm:$0x1]  ;;  %v9493_v15 = vld [vmem:[%s9474_s12 + $0x8] sm:$0xf]  ;;  %s9804_s10 = scalar_lea.vmem %s11284_s2, %s9463_s7 }
  0x1d   : > { %v6118_v14 = vcombine.low %v9485_v11, %v350_v12  ;;  %v6234_v16 = vld [vmem:[%s9474_s12 + $0xc] sm:$0x1]  ;;  %v8857_v51 = vld [vmem:[%s11285_s3 + $0x90] sm:$0xff]   ;;  %v8859_v53 = vld [vmem:[%s11285_s3 + $0x98] sm:$0xff]   ;;  %s10377_s11 = scalar_lea.vmem [#allocation2], %s6094_s17  ;;  %s9233_s7 = scalar_lea.vmem %s9232_s16, 1024 }
  0x1e   : > { %7642 = vmatpush3.bf16.msra.mxu0 %v8825_v7  ;;  %v6251_v18 = vcombine.low %v9493_v15, %v6234_v16  ;;  %v8858_v52 = vld [vmem:[%s11285_s3 + $0x90] sm:$0xff]   ;;  %v8860_v54 = vld [vmem:[%s11285_s3 + $0x98] sm:$0xff]   ;;  %v8861_v55 = vld [vmem:[%s11285_s3 + $0xa0] sm:$0xff]   ;;  %s5918_s27 = sshll.u32 %s10377_s11, 4  ;;  %s11199_s27 = int_to_ptr.vmem [resolvable:$true] %s5918_s27 }
  0x1f   : > { %7762 = vmatpush3.bf16.msra.mxu1 %v8826_v8  ;;  %7643 = vmatprep.subr.bf16.mxu0 %v9339_v1  ;;  %v392_v19 = vshll.u32 %v6118_v14, 16  ;;  %v390_v24 = vshrl.u32 %v6118_v14, 16  ;;  %v8862_v56 = vld [vmem:[%s11285_s3 + $0xa0] sm:$0xff]   ;;  %v8863_v57 = vld [vmem:[%s11285_s3 + $0xa8] sm:$0xff]   ;;  %v8865_v59 = vld [vmem:[%s11285_s3 + $0xb0] sm:$0xff]   ;;  %p9234_p1 = scmp.lt.s32.totalorder %s11199_s27, %s9232_s16 }
  0x20   : > { %7763 = vmatprep.subr.bf16.mxu1 %v9339_v1  ;;  %v1087_v21 = vshll.u32 %v6251_v18, 16  ;;  %v1085_v26 = vshrl.u32 %v6251_v18, 16  ;;  %v8864_v58 = vld [vmem:[%s11285_s3 + $0xa8] sm:$0xff]   ;;  %v8866_v60 = vld [vmem:[%s11285_s3 + $0xb0] sm:$0xff]   ;;  %v8867_v61 = vld [vmem:[%s11285_s3 + $0xb8] sm:$0xff]  }
  0x21   : > { %v394_v25 = vrot.slane %v392_v19, 1  ;;  %v8868_v62 = vld [vmem:[%s11285_s3 + $0xb8] sm:$0xff]   ;;  %v573_v63 = vld [vmem:[%s9652_s13] sm:$0xf]  ;;  %v6268_v2 = vld [vmem:[%s9652_s13 + $0x8] sm:$0xf] }
  0x22   : > { %7644 = vmatpush3.bf16.msra.mxu0 %v8827_v9  ;;  %v1089_v27 = vrot.slane %v1087_v21, 1  ;;  %v8870_v0 = vld [vmem:[%s11285_s3 + $0xc0] sm:$0xff]   ;;  %v8873_v4 = vld [vmem:[%s11285_s3 + $0xc8] sm:$0xff]   ;;  %v8875_v6 = vld [vmem:[%s11285_s3 + $0xd0] sm:$0xff]  }
  0x23   : > { %7764 = vmatpush3.bf16.msra.mxu1 %v8828_v10  ;;  %7645 = vmatprep.subr.bf16.mxu0 %v9339_v1  ;;  %v395_v29 = vor.u32 %v394_v25, %v390_v24  ;;  %v8872_v3 = vld [vmem:[%s11285_s3 + $0xc0] sm:$0xff]   ;;  %v8874_v5 = vld [vmem:[%s11285_s3 + $0xc8] sm:$0xff]   ;;  %v8876_v7 = vld [vmem:[%s11285_s3 + $0xd0] sm:$0xff]  }
  0x24   : > { %7765 = vmatprep.subr.bf16.mxu1 %v9339_v1  ;;  %v1090_v31 = vor.u32 %v1089_v27, %v1085_v26  ;;  %v8877_v8 = vld [vmem:[%s11285_s3 + $0xd8] sm:$0xff]   ;;  %v574_v10 = vld [vmem:[%s9652_s13 + $0x4] sm:$0x1]  ;;  %v8881_v16 = vld [vmem:[%s11285_s3 + $0xe8] sm:$0xff]  }
  0x25   : > { %v8878_v9 = vld [vmem:[%s11285_s3 + $0xd8] sm:$0xff]   ;;  %v8879_v12 = vld [vmem:[%s11285_s3 + $0xe0] sm:$0xff]   ;;  %v6175_v14 = vcombine.low %v573_v63, %v574_v10  ;;  %v8884_v21 = vld [vmem:[%s11285_s3 + $0xf0] sm:$0xff]  }
  0x26   : > { %7646 = vmatpush3.bf16.msra.mxu0 %v8829_v13  ;;  %v8880_v13 = vld [vmem:[%s11285_s3 + $0xe0] sm:$0xff]   ;;  %v8885_v26 = vld [vmem:[%s11285_s3 + $0xf8] sm:$0xff]  }
  0x27   : > { %7766 = vmatpush3.bf16.msra.mxu1 %v8830_v17  ;;  %7647 = vmatprep.subr.bf16.mxu0 %v9339_v1  ;;  %v8882_v17 = vld [vmem:[%s11285_s3 + $0xe8] sm:$0xff]   ;;  %v706_v18 = vshll.u32 %v6175_v14, 16  ;;  %v8886_v27 = vld [vmem:[%s11285_s3 + $0xf8] sm:$0xff]  }
  0x28   : > { %7767 = vmatprep.subr.bf16.mxu1 %v9339_v1  ;;  %v8920_v10 = vld [vmem:[%s11285_s3 + $0x178] sm:$0xff]  }
  0x2a   : > { %7648 = vmatpush3.bf16.msra.mxu0 %v8831_v20  ;;  %v8883_v20 = vld [vmem:[%s11285_s3 + $0xf0] sm:$0xff]  }
  0x2b   : > { %7768 = vmatpush3.bf16.msra.mxu1 %v8832_v22  ;;  %7649 = vmatprep.subr.bf16.mxu0 %v9339_v1  ;;  %v704_v22 = vshrl.u32 %v6175_v14, 16 }
  0x2c   : > { %7769 = vmatprep.subr.bf16.mxu1 %v9339_v1 }
  0x2e   : > { %7650 = vmatpush3.bf16.msra.mxu0 %v8833_v23  ;;  %v708_v23 = vrot.slane %v706_v18, 1  ;;  %v8926_v18 = vld [vmem:[%s11285_s3 + $0x50] sm:$0xff]  }
  0x2f   : > { %7770 = vmatpush3.bf16.msra.mxu1 %v8834_v28  ;;  %7655 = vmatprep.subr.bf16.mxu0 %v9339_v1 }
  0x30   : > { %7775 = vmatprep.subr.bf16.mxu1 %v9339_v1  ;;  %v709_v28 = vor.u32 %v708_v23, %v704_v22  ;;  %v6371_v22 = vld [vmem:[%s9474_s12 + $0x14] sm:$0x1]  ;;  %v8929_v23 = vld [vmem:[%s11285_s3 + $0x60] sm:$0xff]  }
  0x31   : > { %7652 = vmatmul.mubr.bf16.vlgmr.msra.gmra.mrb[0].mxu0 %v395_v29  ;;  %v8887_v29 = vld [vmem:[%s11285_s3 + $0x100] sm:$0xff]  }
  0x32   : > { %7656 = vmatpush3.bf16.msra.mxu0 %v8836_v30  ;;  %7772 = vmatmul.mubr.bf16.vlgmr.msra.gmra.mrb[0].mxu1 %v1090_v31  ;;  %v8888_v31 = vld [vmem:[%s11285_s3 + $0x100] sm:$0xff]  }
  0x33   : > { %7776 = vmatpush3.bf16.msra.mxu1 %v8838_v32  ;;  %7657 = vmatprep.subr.bf16.mxu0 %v9339_v1  ;;  %v8889_v32 = vld [vmem:[%s11285_s3 + $0x108] sm:$0xff]  }
  0x34   : > { %7777 = vmatprep.subr.bf16.mxu1 %v9339_v1  ;;  %7671 = vmatprep.mubr.msk.bf16.mxu0 %vm9340_vm0, %v9339_v1 }
  0x35   : > { %7791 = vmatprep.mubr.msk.bf16.mxu1 %vm9340_vm0, %v9339_v1 }
  0x36   : > { %7658 = vmatpush3.bf16.msra.mxu0 %v8839_v33  ;;  %v8890_v33 = vld [vmem:[%s11285_s3 + $0x108] sm:$0xff]  }
  0x37   : > { %7778 = vmatpush3.bf16.msra.mxu1 %v8840_v34  ;;  %7659 = vmatprep.subr.bf16.mxu0 %v9339_v1  ;;  %v8891_v34 = vld [vmem:[%s11285_s3 + $0x110] sm:$0xff]  }
  0x38   : > { %7779 = vmatprep.subr.bf16.mxu1 %v9339_v1 }
  0x3a   : > { %7660 = vmatpush3.bf16.msra.mxu0 %v8841_v35  ;;  %v8892_v35 = vld [vmem:[%s11285_s3 + $0x110] sm:$0xff]  }
  0x3b   : > { %7780 = vmatpush3.bf16.msra.mxu1 %v8842_v36  ;;  %7661 = vmatprep.subr.bf16.mxu0 %v9339_v1  ;;  %v8893_v36 = vld [vmem:[%s11285_s3 + $0x118] sm:$0xff]  }
  0x3c   : > { %7781 = vmatprep.subr.bf16.mxu1 %v9339_v1 }
  0x3e   : > { %7662 = vmatpush3.bf16.msra.mxu0 %v8843_v37  ;;  %v8894_v37 = vld [vmem:[%s11285_s3 + $0x118] sm:$0xff]  }
  0x3f   : > { %7782 = vmatpush3.bf16.msra.mxu1 %v8844_v38  ;;  %7663 = vmatprep.subr.bf16.mxu0 %v9339_v1  ;;  %v8895_v38 = vld [vmem:[%s11285_s3 + $0x120] sm:$0xff]  }
  0x40   : > { %7783 = vmatprep.subr.bf16.mxu1 %v9339_v1 }
  0x42   : > { %7664 = vmatpush3.bf16.msra.mxu0 %v8845_v39  ;;  %v8896_v39 = vld [vmem:[%s11285_s3 + $0x120] sm:$0xff]  }
  0x43   : > { %7784 = vmatpush3.bf16.msra.mxu1 %v8846_v40  ;;  %7665 = vmatprep.subr.bf16.mxu0 %v9339_v1  ;;  %v8897_v40 = vld [vmem:[%s11285_s3 + $0x128] sm:$0xff]  }
  0x44   : > { %7785 = vmatprep.subr.bf16.mxu1 %v9339_v1 }
  0x46   : > { %7666 = vmatpush3.bf16.msra.mxu0 %v8847_v41  ;;  %v8898_v41 = vld [vmem:[%s11285_s3 + $0x128] sm:$0xff]  }
  0x47   : > { %7786 = vmatpush3.bf16.msra.mxu1 %v8848_v42  ;;  %7667 = vmatprep.subr.bf16.mxu0 %v9339_v1  ;;  %v8899_v42 = vld [vmem:[%s11285_s3 + $0x130] sm:$0xff]  }
  0x48   : > { %7787 = vmatprep.subr.bf16.mxu1 %v9339_v1 }
  0x4a   : > { %7668 = vmatpush3.bf16.msra.mxu0 %v8849_v43  ;;  %v8900_v43 = vld [vmem:[%s11285_s3 + $0x130] sm:$0xff]  }
  0x4b   : > { %7788 = vmatpush3.bf16.msra.mxu1 %v8850_v44  ;;  %7669 = vmatprep.subr.bf16.mxu0 %v9339_v1  ;;  %v8901_v44 = vld [vmem:[%s11285_s3 + $0x138] sm:$0xff]  }
  0x4c   : > { %7789 = vmatprep.subr.bf16.mxu1 %v9339_v1 }
  0x4e   : > { %7670 = vmatpush3.bf16.msra.mxu0 %v8851_v45  ;;  %v8902_v45 = vld [vmem:[%s11285_s3 + $0x138] sm:$0xff]  }
  0x4f   : > { %7790 = vmatpush3.bf16.msra.mxu1 %v8852_v46  ;;  %7675 = vmatprep.subr.bf16.mxu0 %v9339_v1  ;;  %v800_v46 = vld [vmem:[%s9804_s10] sm:$0xf] }
  0x50   : > { %7795 = vmatprep.subr.bf16.mxu1 %v9339_v1 }
  0x51   : > { %7672 = vmatmul.mubr.bf16.vlgmr.msra.gmra.mrb[0].mxu0 %v9485_v11  ;;  %v6269_v11 = vld [vmem:[%s9652_s13 + $0xc] sm:$0x1] }
  0x52   : > { %7676 = vmatpush3.bf16.msra.mxu0 %v8853_v47  ;;  %7792 = vmatmul.mubr.bf16.vlgmr.msra.gmra.mrb[0].mxu1 %v9493_v15  ;;  %v6310_v15 = vcombine.low %v6268_v2, %v6269_v11  ;;  %v8904_v47 = vld [vmem:[%s11285_s3 + $0x140] sm:$0xff]  }
  0x53   : > { %7796 = vmatpush3.bf16.msra.mxu1 %v8854_v48  ;;  %7677 = vmatprep.subr.bf16.mxu0 %v9339_v1  ;;  %v6319_v48 = vld [vmem:[%s9804_s10 + $0x8] sm:$0xf]  ;;  %v8921_v11 = vld [vmem:[%s11285_s3 + $0x40] sm:$0xff]  }
  0x54   : > { %7797 = vmatprep.subr.bf16.mxu1 %v9339_v1  ;;  %7691 = vmatprep.mubr.msk.bf16.mxu0 %vm9340_vm0, %v9339_v1  ;;  %v1400_v19 = vshll.u32 %v6310_v15, 16  ;;  %v1398_v24 = vshrl.u32 %v6310_v15, 16  ;;  %v8923_v15 = vld [vmem:[%s11285_s3 + $0x48] sm:$0xff]  }
  0x55   : > { %7811 = vmatprep.mubr.msk.bf16.mxu1 %vm9340_vm0, %v9339_v1 }
  0x56   : > { %7678 = vmatpush3.bf16.msra.mxu0 %v8855_v49  ;;  %v1402_v25 = vrot.slane %v1400_v19, 1  ;;  %v8906_v49 = vld [vmem:[%s11285_s3 + $0x140] sm:$0xff]   ;;  %v8927_v19 = vld [vmem:[%s11285_s3 + $0x58] sm:$0xff]  }
  0x57   : > { %7798 = vmatpush3.bf16.msra.mxu1 %v8856_v50  ;;  %7679 = vmatprep.subr.bf16.mxu0 %v9339_v1  ;;  %v8907_v50 = vld [vmem:[%s11285_s3 + $0x148] sm:$0xff]  }
  0x58   : > { %7799 = vmatprep.subr.bf16.mxu1 %v9339_v1  ;;  %v1403_v30 = vor.u32 %v1402_v25, %v1398_v24  ;;  %v9924_v24 = vld [vmem:[%s9474_s12 + $0x18] sm:$0xf]  ;;  %v8930_v25 = vld [vmem:[%s11285_s3 + $0x60] sm:$0xff]  }
  0x5a   : > { %7680 = vmatpush3.bf16.msra.mxu0 %v8857_v51  ;;  %v8908_v51 = vld [vmem:[%s11285_s3 + $0x148] sm:$0xff]  }
  0x5b   : > { %7800 = vmatpush3.bf16.msra.mxu1 %v8858_v52  ;;  %7681 = vmatprep.subr.bf16.mxu0 %v9339_v1  ;;  %v8909_v52 = vld [vmem:[%s11285_s3 + $0x150] sm:$0xff]  }
  0x5c   : > { %7801 = vmatprep.subr.bf16.mxu1 %v9339_v1 }
  0x5e   : > { %7682 = vmatpush3.bf16.msra.mxu0 %v8859_v53  ;;  %v801_v53 = vld [vmem:[%s9804_s10 + $0x4] sm:$0x1] }
  0x5f   : > { %7802 = vmatpush3.bf16.msra.mxu1 %v8860_v54  ;;  %7683 = vmatprep.subr.bf16.mxu0 %v9339_v1  ;;  %v8910_v54 = vld [vmem:[%s11285_s3 + $0x150] sm:$0xff]  }
  0x60   : > { %7803 = vmatprep.subr.bf16.mxu1 %v9339_v1 }
  0x62   : > { %7684 = vmatpush3.bf16.msra.mxu0 %v8861_v55  ;;  %v8911_v55 = vld [vmem:[%s11285_s3 + $0x158] sm:$0xff]  }
  0x63   : > { %7804 = vmatpush3.bf16.msra.mxu1 %v8862_v56  ;;  %7685 = vmatprep.subr.bf16.mxu0 %v9339_v1  ;;  %v8912_v56 = vld [vmem:[%s11285_s3 + $0x158] sm:$0xff]  }
  0x64   : > { %7805 = vmatprep.subr.bf16.mxu1 %v9339_v1 }
  0x66   : > { %7686 = vmatpush3.bf16.msra.mxu0 %v8863_v57  ;;  %v6224_v57 = vcombine.low %v800_v46, %v801_v53  ;;  %v8949_v53 = vld [vmem:[%s11285_s3 + $0x28] sm:$0xff]  }
  0x67   : > { %7806 = vmatpush3.bf16.msra.mxu1 %v8864_v58  ;;  %7687 = vmatprep.subr.bf16.mxu0 %v9339_v1  ;;  %v6320_v58 = vld [vmem:[%s9804_s10 + $0xc] sm:$0x1] }
  0x68   : > { %7807 = vmatprep.subr.bf16.mxu1 %v9339_v1 }
  0x6a   : > { %7688 = vmatpush3.bf16.msra.mxu0 %v8865_v59  ;;  %v8913_v59 = vld [vmem:[%s11285_s3 + $0x160] sm:$0xff]  }
  0x6b   : > { %7808 = vmatpush3.bf16.msra.mxu1 %v8866_v60  ;;  %7689 = vmatprep.subr.bf16.mxu0 %v9339_v1  ;;  %v8914_v60 = vld [vmem:[%s11285_s3 + $0x160] sm:$0xff]  }
  0x6c   : > { %7809 = vmatprep.subr.bf16.mxu1 %v9339_v1 }
  0x6e   : > { %7690 = vmatpush3.bf16.msra.mxu0 %v8867_v61  ;;  %v933_v61 = vshll.u32 %v6224_v57, 16 }
  0x6f   : > { %7810 = vmatpush3.bf16.msra.mxu1 %v8868_v62  ;;  %7695 = vmatprep.subr.bf16.mxu0 %v9339_v1  ;;  %v8915_v62 = vld [vmem:[%s11285_s3 + $0x168] sm:$0xff]  }
  0x70   : > { %7815 = vmatprep.subr.bf16.mxu1 %v9339_v1 }
  0x71   : > { %7692 = vmatmul.mubr.bf16.vlgmr.msra.gmra.mrb[0].mxu0 %v573_v63  ;;  %v931_v63 = vshrl.u32 %v6224_v57, 16  ;;  %v8953_v57 = vld [vmem:[%s11285_s3 + $0x38] sm:$0xff]  }
  0x72   : > { %7696 = vmatpush3.bf16.msra.mxu0 %v8870_v0  ;;  %7812 = vmatmul.mubr.bf16.vlgmr.msra.gmra.mrb[0].mxu1 %v6268_v2  ;;  %v6361_v0 = vcombine.low %v6319_v48, %v6320_v58  ;;  %v8916_v2 = vld [vmem:[%s11285_s3 + $0x168] sm:$0xff]   ;;  %v8954_v58 = vld [vmem:[%s11285_s3 + $0x38] sm:$0xff]  }
  0x73   : > { %7816 = vmatpush3.bf16.msra.mxu1 %v8872_v3  ;;  %7697 = vmatprep.subr.bf16.mxu0 %v9339_v1  ;;  %v935_v3 = vrot.slane %v933_v61, 1  ;;  %v8957_v61 = vld [vmem:[%s11285_s3 + $0x88] sm:$0xff]  }
  0x74   : > { %7817 = vmatprep.subr.bf16.mxu1 %v9339_v1  ;;  %7711 = vmatprep.mubr.msk.bf16.mxu0 %vm9340_vm0, %v9339_v1 }
  0x75   : > { %7831 = vmatprep.mubr.msk.bf16.mxu1 %vm9340_vm0, %v9339_v1 }
  0x76   : > { %7698 = vmatpush3.bf16.msra.mxu0 %v8873_v4  ;;  %v8917_v4 = vld [vmem:[%s11285_s3 + $0x170] sm:$0xff]  }
  0x77   : > { %7818 = vmatpush3.bf16.msra.mxu1 %v8874_v5  ;;  %7699 = vmatprep.subr.bf16.mxu0 %v9339_v1  ;;  %v1626_v5 = vshll.u32 %v6361_v0, 16 }
  0x78   : > { %7819 = vmatprep.subr.bf16.mxu1 %v9339_v1 }
  0x7a   : > { %7700 = vmatpush3.bf16.msra.mxu0 %v8875_v6  ;;  %v8918_v6 = vld [vmem:[%s11285_s3 + $0x170] sm:$0xff]  }
  0x7b   : > { %7820 = vmatpush3.bf16.msra.mxu1 %v8876_v7  ;;  %7701 = vmatprep.subr.bf16.mxu0 %v9339_v1  ;;  %v1624_v7 = vshrl.u32 %v6361_v0, 16  ;;  %v8960_v0 = vld [vmem:[%s11285_s3 + $0x90] sm:$0xff]  }
  0x7c   : > { %7821 = vmatprep.subr.bf16.mxu1 %v9339_v1 }
  0x7e   : > { %7702 = vmatpush3.bf16.msra.mxu0 %v8877_v8  ;;  %v8919_v8 = vld [vmem:[%s11285_s3 + $0x178] sm:$0xff]  }
  0x7f   : > { %7822 = vmatpush3.bf16.msra.mxu1 %v8878_v9  ;;  %7703 = vmatprep.subr.bf16.mxu0 %v9339_v1  ;;  %v1628_v9 = vrot.slane %v1626_v5, 1  ;;  %v8964_v5 = vld [vmem:[%s11285_s3 + $0xa0] sm:$0xff]  }
  0x80   : > { %7823 = vmatprep.subr.bf16.mxu1 %v9339_v1 }
  0x81   : > { %v1629_v14 = vor.u32 %v1628_v9, %v1624_v7  ;;  %v8966_v7 = vld [vmem:[%s11285_s3 + $0xa8] sm:$0xff]   ;;  %v8968_v9 = vld [vmem:[%s11285_s3 + $0xb0] sm:$0xff]  }
  0x82   : > { %7704 = vmatpush3.bf16.msra.mxu0 %v8879_v12  ;;  %v936_v12 = vor.u32 %v935_v3, %v931_v63  ;;  %v8959_v63 = vld [vmem:[%s11285_s3 + $0x90] sm:$0xff]   ;;  %v8962_v3 = vld [vmem:[%s11285_s3 + $0x98] sm:$0xff]  }
  0x83   : > { %7824 = vmatpush3.bf16.msra.mxu1 %v8880_v13  ;;  %7705 = vmatprep.subr.bf16.mxu0 %v9339_v1  ;;  %v8922_v13 = vld [vmem:[%s11285_s3 + $0x40] sm:$0xff]  }
  0x84   : > { %7825 = vmatprep.subr.bf16.mxu1 %v9339_v1 }
  0x86   : > { %7706 = vmatpush3.bf16.msra.mxu0 %v8881_v16  ;;  %v8924_v16 = vld [vmem:[%s11285_s3 + $0x48] sm:$0xff]  }
  0x87   : > { %7826 = vmatpush3.bf16.msra.mxu1 %v8882_v17  ;;  %7707 = vmatprep.subr.bf16.mxu0 %v9339_v1  ;;  %v8925_v17 = vld [vmem:[%s11285_s3 + $0x50] sm:$0xff]  }
  0x88   : > { %7827 = vmatprep.subr.bf16.mxu1 %v9339_v1 }
  0x8a   : > { %7708 = vmatpush3.bf16.msra.mxu0 %v8883_v20  ;;  %v8928_v20 = vld [vmem:[%s11285_s3 + $0x58] sm:$0xff]  }
  0x8b   : > { %7828 = vmatpush3.bf16.msra.mxu1 %v8884_v21  ;;  %7709 = vmatprep.subr.bf16.mxu0 %v9339_v1  ;;  %v9916_v21 = vld [vmem:[%s9474_s12 + $0x10] sm:$0xf] }
  0x8c   : > { %7829 = vmatprep.subr.bf16.mxu1 %v9339_v1 }
  0x8e   : > { %7710 = vmatpush3.bf16.msra.mxu0 %v8885_v26  ;;  %v6508_v26 = vld [vmem:[%s9474_s12 + $0x1c] sm:$0x1] }
  0x8f   : > { %7830 = vmatpush3.bf16.msra.mxu1 %v8886_v27  ;;  %7715 = vmatprep.subr.bf16.mxu0 %v9339_v1  ;;  %v8931_v27 = vld [vmem:[%s11285_s3 + $0x68] sm:$0xff]  }
  0x90   : > { %7835 = vmatprep.subr.bf16.mxu1 %v9339_v1 }
  0x91   : > { %7712 = vmatmul.mubr.bf16.vlgmr.msra.gmra.mrb[0].mxu0 %v709_v28  ;;  %v6388_v28 = vcombine.low %v9916_v21, %v6371_v22  ;;  %v8980_v22 = vld [vmem:[%s11285_s3 + $0xd8] sm:$0xff]  }
  0x92   : > { %7716 = vmatpush3.bf16.msra.mxu0 %v8887_v29  ;;  %7832 = vmatmul.mubr.bf16.vlgmr.msra.gmra.mrb[0].mxu1 %v1403_v30  ;;  %v8932_v29 = vld [vmem:[%s11285_s3 + $0x68] sm:$0xff]   ;;  %v6525_v30 = vcombine.low %v9924_v24, %v6508_v26  ;;  %v8982_v26 = vld [vmem:[%s11285_s3 + $0xe0] sm:$0xff]  }
  0x93   : > { %7836 = vmatpush3.bf16.msra.mxu1 %v8888_v31  ;;  %7717 = vmatprep.subr.bf16.mxu0 %v9339_v1  ;;  %v8933_v31 = vld [vmem:[%s11285_s3 + $0x70] sm:$0xff]  }
  0x94   : > { %7837 = vmatprep.subr.bf16.mxu1 %v9339_v1  ;;  %7731 = vmatprep.mubr.msk.bf16.mxu0 %vm9340_vm0, %v9339_v1 }
  0x95   : > { %7851 = vmatprep.mubr.msk.bf16.mxu1 %vm9340_vm0, %v9339_v1 }
  0x96   : > { %7718 = vmatpush3.bf16.msra.mxu0 %v8889_v32  ;;  %v1780_v32 = vshll.u32 %v6388_v28, 16 }
  0x97   : > { %7838 = vmatpush3.bf16.msra.mxu1 %v8890_v33  ;;  %7719 = vmatprep.subr.bf16.mxu0 %v9339_v1  ;;  %v8934_v33 = vld [vmem:[%s11285_s3 + $0x70] sm:$0xff]  }
  0x98   : > { %7839 = vmatprep.subr.bf16.mxu1 %v9339_v1 }
  0x9a   : > { %7720 = vmatpush3.bf16.msra.mxu0 %v8891_v34  ;;  %v2473_v34 = vshll.u32 %v6525_v30, 16 }
  0x9b   : > { %7840 = vmatpush3.bf16.msra.mxu1 %v8892_v35  ;;  %7721 = vmatprep.subr.bf16.mxu0 %v9339_v1  ;;  %v8935_v35 = vld [vmem:[%s11285_s3 + $0x78] sm:$0xff]  }
  0x9c   : > { %7841 = vmatprep.subr.bf16.mxu1 %v9339_v1 }
  0x9e   : > { %7722 = vmatpush3.bf16.msra.mxu0 %v8893_v36  ;;  %v1778_v36 = vshrl.u32 %v6388_v28, 16  ;;  %v8983_v28 = vld [vmem:[%s11285_s3 + $0xe8] sm:$0xff]  }
  0x9f   : > { %7842 = vmatpush3.bf16.msra.mxu1 %v8894_v37  ;;  %7723 = vmatprep.subr.bf16.mxu0 %v9339_v1  ;;  %v1782_v37 = vrot.slane %v1780_v32, 1 }
  0xa0   : > { %7843 = vmatprep.subr.bf16.mxu1 %v9339_v1 }
  0xa2   : > { %7724 = vmatpush3.bf16.msra.mxu0 %v8895_v38  ;;  %v8936_v38 = vld [vmem:[%s11285_s3 + $0x78] sm:$0xff]  }
  0xa3   : > { %7844 = vmatpush3.bf16.msra.mxu1 %v8896_v39  ;;  %7725 = vmatprep.subr.bf16.mxu0 %v9339_v1  ;;  %v2471_v39 = vshrl.u32 %v6525_v30, 16 }
  0xa4   : > { %7845 = vmatprep.subr.bf16.mxu1 %v9339_v1 }
  0xa6   : > { %7726 = vmatpush3.bf16.msra.mxu0 %v8897_v40  ;;  %v2475_v40 = vrot.slane %v2473_v34, 1 }
  0xa7   : > { %7846 = vmatpush3.bf16.msra.mxu1 %v8898_v41  ;;  %7727 = vmatprep.subr.bf16.mxu0 %v9339_v1  ;;  %v8938_v41 = vld [vmem:[%s11285_s3] sm:$0xff]  }
  0xa8   : > { %7847 = vmatprep.subr.bf16.mxu1 %v9339_v1 }
  0xaa   : > { %7728 = vmatpush3.bf16.msra.mxu0 %v8899_v42  ;;  %v1783_v42 = vor.u32 %v1782_v37, %v1778_v36  ;;  %v8987_v37 = vld [vmem:[%s11285_s3 + $0xf8] sm:$0xff]  }
  0xab   : > { %7848 = vmatpush3.bf16.msra.mxu1 %v8900_v43  ;;  %7729 = vmatprep.subr.bf16.mxu0 %v9339_v1  ;;  %v8940_v43 = vld [vmem:[%s11285_s3] sm:$0xff]  }
  0xac   : > { %7849 = vmatprep.subr.bf16.mxu1 %v9339_v1 }
  0xae   : > { %7730 = vmatpush3.bf16.msra.mxu0 %v8901_v44  ;;  %v2476_v44 = vor.u32 %v2475_v40, %v2471_v39  ;;  %v8988_v39 = vld [vmem:[%s11285_s3 + $0xf8] sm:$0xff]   ;;  %v8989_v40 = vld [vmem:[%s11285_s3 + $0x100] sm:$0xff]  }
  0xaf   : > { %7850 = vmatpush3.bf16.msra.mxu1 %v8902_v45  ;;  %7735 = vmatprep.subr.bf16.mxu0 %v9339_v1  ;;  %v8941_v45 = vld [vmem:[%s11285_s3 + $0x8] sm:$0xff]  }
  0xb0   : > { %7855 = vmatprep.subr.bf16.mxu1 %v9339_v1 }
  0xb1   : > { %7732 = vmatmul.mubr.bf16.vlgmr.msra.gmra.mrb[0].mxu0 %v800_v46  ;;  %v8942_v46 = vld [vmem:[%s11285_s3 + $0x8] sm:$0xff]  }
  0xb2   : > { %7736 = vmatpush3.bf16.msra.mxu0 %v8904_v47  ;;  %7852 = vmatmul.mubr.bf16.vlgmr.msra.gmra.mrb[0].mxu1 %v6319_v48  ;;  %v8943_v47 = vld [vmem:[%s11285_s3 + $0x10] sm:$0xff]  }
  0xb3   : > { %7856 = vmatpush3.bf16.msra.mxu1 %v8906_v49  ;;  %7737 = vmatprep.subr.bf16.mxu0 %v9339_v1  ;;  %v8944_v48 = vld [vmem:[%s11285_s3 + $0x10] sm:$0xff]   ;;  %v8945_v49 = vld [vmem:[%s11285_s3 + $0x18] sm:$0xff]  }
  0xb4   : > { %7857 = vmatprep.subr.bf16.mxu1 %v9339_v1  ;;  %7751 = vmatprep.mubr.msk.bf16.mxu0 %vm9340_vm0, %v9339_v1 }
  0xb5   : > { %7871 = vmatprep.mubr.msk.bf16.mxu1 %vm9340_vm0, %v9339_v1 }
  0xb6   : > { %7738 = vmatpush3.bf16.msra.mxu0 %v8907_v50  ;;  %v8946_v50 = vld [vmem:[%s11285_s3 + $0x18] sm:$0xff]  }
  0xb7   : > { %7858 = vmatpush3.bf16.msra.mxu1 %v8908_v51  ;;  %7739 = vmatprep.subr.bf16.mxu0 %v9339_v1  ;;  %v8947_v51 = vld [vmem:[%s11285_s3 + $0x20] sm:$0xff]  }
  0xb8   : > { %7859 = vmatprep.subr.bf16.mxu1 %v9339_v1 }
  0xba   : > { %7740 = vmatpush3.bf16.msra.mxu0 %v8909_v52  ;;  %v8948_v52 = vld [vmem:[%s11285_s3 + $0x20] sm:$0xff]  }
  0xbb   : > { %7860 = vmatpush3.bf16.msra.mxu1 %v8910_v54  ;;  %7741 = vmatprep.subr.bf16.mxu0 %v9339_v1  ;;  %v8950_v54 = vld [vmem:[%s11285_s3 + $0x28] sm:$0xff]  }
  0xbc   : > { %7861 = vmatprep.subr.bf16.mxu1 %v9339_v1 }
  0xbe   : > { %7742 = vmatpush3.bf16.msra.mxu0 %v8911_v55  ;;  %v8951_v55 = vld [vmem:[%s11285_s3 + $0x30] sm:$0xff]  }
  0xbf   : > { %7862 = vmatpush3.bf16.msra.mxu1 %v8912_v56  ;;  %7743 = vmatprep.subr.bf16.mxu0 %v9339_v1  ;;  %v8952_v56 = vld [vmem:[%s11285_s3 + $0x30] sm:$0xff]  }
  0xc0   : > { %7863 = vmatprep.subr.bf16.mxu1 %v9339_v1 }
  0xc2   : > { %7744 = vmatpush3.bf16.msra.mxu0 %v8913_v59  ;;  %v8955_v59 = vld [vmem:[%s11285_s3 + $0x80] sm:$0xff]  }
  0xc3   : > { %7864 = vmatpush3.bf16.msra.mxu1 %v8914_v60  ;;  %7745 = vmatprep.subr.bf16.mxu0 %v9339_v1  ;;  %v8956_v60 = vld [vmem:[%s11285_s3 + $0x80] sm:$0xff]  }
  0xc4   : > { %7865 = vmatprep.subr.bf16.mxu1 %v9339_v1 }
  0xc6   : > { %7746 = vmatpush3.bf16.msra.mxu0 %v8915_v62  ;;  %v8958_v62 = vld [vmem:[%s11285_s3 + $0x88] sm:$0xff]  }
  0xc7   : > { %7866 = vmatpush3.bf16.msra.mxu1 %v8916_v2  ;;  %7747 = vmatprep.subr.bf16.mxu0 %v9339_v1  ;;  %v8961_v2 = vld [vmem:[%s11285_s3 + $0x98] sm:$0xff]  }
  0xc8   : > { %7867 = vmatprep.subr.bf16.mxu1 %v9339_v1 }
  0xca   : > { %7748 = vmatpush3.bf16.msra.mxu0 %v8917_v4  ;;  %v8963_v4 = vld [vmem:[%s11285_s3 + $0xa0] sm:$0xff]  }
  0xcb   : > { %7868 = vmatpush3.bf16.msra.mxu1 %v8918_v6  ;;  %7749 = vmatprep.subr.bf16.mxu0 %v9339_v1  ;;  %v8965_v6 = vld [vmem:[%s11285_s3 + $0xa8] sm:$0xff]  }
  0xcc   : > { %7869 = vmatprep.subr.bf16.mxu1 %v9339_v1 }
  0xce   : > { %7750 = vmatpush3.bf16.msra.mxu0 %v8919_v8  ;;  %v8967_v8 = vld [vmem:[%s11285_s3 + $0xb0] sm:$0xff]  }
  0xcf   : > { %7870 = vmatpush3.bf16.msra.mxu1 %v8920_v10  ;;  %7875 = vmatprep.subr.bf16.mxu0 %v9339_v1  ;;  %v8969_v10 = vld [vmem:[%s11285_s3 + $0xb8] sm:$0xff]  }
  0xd0   : > { %7995 = vmatprep.subr.bf16.mxu1 %v9339_v1 }
  0xd1   : > { %7752 = vmatmul.mubr.bf16.vlgmr.msra.gmra.mrb[0].mxu0 %v936_v12  ;;  %v6405_v12 = vld [vmem:[%s9652_s13 + $0x10] sm:$0xf] }
  0xd2   : > { %7872 = vmatmul.mubr.bf16.vlgmr.msra.gmra.mrb[0].mxu1 %v1629_v14  ;;  %7876 = vmatpush3.bf16.msra.mxu0 %v8921_v11  ;;  %v8970_v11 = vld [vmem:[%s11285_s3 + $0xb8] sm:$0xff]  }
  0xd3   : > { %7996 = vmatpush3.bf16.msra.mxu1 %v8922_v13  ;;  %7877 = vmatprep.subr.bf16.mxu0 %v9339_v1  ;;  %v8972_v13 = vld [vmem:[%s11285_s3 + $0xc0] sm:$0xff]   ;;  %v6542_v14 = vld [vmem:[%s9652_s13 + $0x18] sm:$0xf] }
  0xd4   : > { %7997 = vmatprep.subr.bf16.mxu1 %v9339_v1  ;;  %7891 = vmatprep.mubr.msk.bf16.mxu0 %vm9340_vm0, %v9339_v1 }
  0xd5   : > { %8011 = vmatprep.mubr.msk.bf16.mxu1 %vm9340_vm0, %v9339_v1 }
  0xd6   : > { %7878 = vmatpush3.bf16.msra.mxu0 %v8923_v15  ;;  %v8974_v15 = vld [vmem:[%s11285_s3 + $0xc0] sm:$0xff]  }
  0xd7   : > { %7998 = vmatpush3.bf16.msra.mxu1 %v8924_v16  ;;  %7879 = vmatprep.subr.bf16.mxu0 %v9339_v1  ;;  %v8975_v16 = vld [vmem:[%s11285_s3 + $0xc8] sm:$0xff]  }
  0xd8   : > { %7999 = vmatprep.subr.bf16.mxu1 %v9339_v1 }
  0xda   : > { %7880 = vmatpush3.bf16.msra.mxu0 %v8925_v17  ;;  %v8976_v17 = vld [vmem:[%s11285_s3 + $0xc8] sm:$0xff]  }
  0xdb   : > { %8000 = vmatpush3.bf16.msra.mxu1 %v8926_v18  ;;  %7881 = vmatprep.subr.bf16.mxu0 %v9339_v1  ;;  %v8977_v18 = vld [vmem:[%s11285_s3 + $0xd0] sm:$0xff]  }
  0xdc   : > { %8001 = vmatprep.subr.bf16.mxu1 %v9339_v1 }
  0xde   : > { %7882 = vmatpush3.bf16.msra.mxu0 %v8927_v19  ;;  %v8978_v19 = vld [vmem:[%s11285_s3 + $0xd0] sm:$0xff]  }
  0xdf   : > { %8002 = vmatpush3.bf16.msra.mxu1 %v8928_v20  ;;  %7883 = vmatprep.subr.bf16.mxu0 %v9339_v1  ;;  %v6406_v20 = vld [vmem:[%s9652_s13 + $0x14] sm:$0x1] }
  0xe0   : > { %8003 = vmatprep.subr.bf16.mxu1 %v9339_v1 }
  0xe2   : > { %7884 = vmatpush3.bf16.msra.mxu0 %v8929_v23  ;;  %v6447_v23 = vcombine.low %v6405_v12, %v6406_v20 }
  0xe3   : > { %8004 = vmatpush3.bf16.msra.mxu1 %v8930_v25  ;;  %7885 = vmatprep.subr.bf16.mxu0 %v9339_v1  ;;  %v8981_v25 = vld [vmem:[%s11285_s3 + $0xe0] sm:$0xff]  }
  0xe4   : > { %8005 = vmatprep.subr.bf16.mxu1 %v9339_v1 }
  0xe6   : > { %7886 = vmatpush3.bf16.msra.mxu0 %v8931_v27  ;;  %v2093_v27 = vshll.u32 %v6447_v23, 16 }
  0xe7   : > { %8006 = vmatpush3.bf16.msra.mxu1 %v8932_v29  ;;  %7887 = vmatprep.subr.bf16.mxu0 %v9339_v1  ;;  %v2091_v29 = vshrl.u32 %v6447_v23, 16 }
  0xe8   : > { %8007 = vmatprep.subr.bf16.mxu1 %v9339_v1  ;;  %v2095_v32 = vrot.slane %v2093_v27, 1  ;;  %v9025_v27 = vld [vmem:[%s11285_s3 + $0x48] sm:$0xff]  }
  0xea   : > { %7888 = vmatpush3.bf16.msra.mxu0 %v8933_v31  ;;  %v8984_v31 = vld [vmem:[%s11285_s3 + $0xe8] sm:$0xff]  }
  0xeb   : > { %8008 = vmatpush3.bf16.msra.mxu1 %v8934_v33  ;;  %7889 = vmatprep.subr.bf16.mxu0 %v9339_v1  ;;  %v8985_v33 = vld [vmem:[%s11285_s3 + $0xf0] sm:$0xff]  }
  0xec   : > { %8009 = vmatprep.subr.bf16.mxu1 %v9339_v1 }
  0xee   : > { %7890 = vmatpush3.bf16.msra.mxu0 %v8935_v35  ;;  %v8986_v35 = vld [vmem:[%s11285_s3 + $0xf0] sm:$0xff]  }
  0xef   : > { %8010 = vmatpush3.bf16.msra.mxu1 %v8936_v38  ;;  %7895 = vmatprep.subr.bf16.mxu0 %v9339_v1 }
  0xf0   : > { %8015 = vmatprep.subr.bf16.mxu1 %v9339_v1 }
  0xf1   : > { %7892 = vmatmul.mubr.bf16.vlgmr.msra.gmra.mrb[4].mxu0 %v1783_v42  ;;  %v8990_v42 = vld [vmem:[%s11285_s3 + $0x100] sm:$0xff]  }
  0xf2   : > { %7896 = vmatpush3.bf16.msra.mxu0 %v8938_v41  ;;  %8012 = vmatmul.mubr.bf16.vlgmr.msra.gmra.mrb[4].mxu1 %v2476_v44  ;;  %v2096_v41 = vor.u32 %v2095_v32, %v2091_v29  ;;  %v8991_v44 = vld [vmem:[%s11285_s3 + $0x108] sm:$0xff]   ;;  %v9027_v29 = vld [vmem:[%s11285_s3 + $0x50] sm:$0xff]   ;;  %v9030_v32 = vld [vmem:[%s11285_s3 + $0x58] sm:$0xff]  }
  0xf3   : > { %8016 = vmatpush3.bf16.msra.mxu1 %v8940_v43  ;;  %7897 = vmatprep.subr.bf16.mxu0 %v9339_v1 }
  0xf4   : > { %8017 = vmatprep.subr.bf16.mxu1 %v9339_v1  ;;  %7911 = vmatprep.mubr.msk.bf16.mxu0 %vm9340_vm0, %v9339_v1 }
  0xf5   : > { %8031 = vmatprep.mubr.msk.bf16.mxu1 %vm9340_vm0, %v9339_v1 }
  0xf6   : > { %7898 = vmatpush3.bf16.msra.mxu0 %v8941_v45  ;;  %v8992_v45 = vld [vmem:[%s11285_s3 + $0x108] sm:$0xff]  }
  0xf7   : > { %8018 = vmatpush3.bf16.msra.mxu1 %v8942_v46  ;;  %7899 = vmatprep.subr.bf16.mxu0 %v9339_v1  ;;  %v8993_v46 = vld [vmem:[%s11285_s3 + $0x110] sm:$0xff]  }
  0xf8   : > { %8019 = vmatprep.subr.bf16.mxu1 %v9339_v1 }
  0xfa   : > { %7900 = vmatpush3.bf16.msra.mxu0 %v8943_v47  ;;  %v8994_v47 = vld [vmem:[%s11285_s3 + $0x110] sm:$0xff]  }
  0xfb   : > { %8020 = vmatpush3.bf16.msra.mxu1 %v8944_v48  ;;  %7901 = vmatprep.subr.bf16.mxu0 %v9339_v1  ;;  %v8995_v48 = vld [vmem:[%s11285_s3 + $0x118] sm:$0xff]  }
  0xfc   : > { %8021 = vmatprep.subr.bf16.mxu1 %v9339_v1 }
  0xfe   : > { %7902 = vmatpush3.bf16.msra.mxu0 %v8945_v49  ;;  %v8996_v49 = vld [vmem:[%s11285_s3 + $0x118] sm:$0xff]  }
  0xff   : > { %8022 = vmatpush3.bf16.msra.mxu1 %v8946_v50  ;;  %7903 = vmatprep.subr.bf16.mxu0 %v9339_v1  ;;  %v8997_v50 = vld [vmem:[%s11285_s3 + $0x120] sm:$0xff]  }
 0x100   : > { %8023 = vmatprep.subr.bf16.mxu1 %v9339_v1 }
 0x102   : > { %7904 = vmatpush3.bf16.msra.mxu0 %v8947_v51  ;;  %v8998_v51 = vld [vmem:[%s11285_s3 + $0x120] sm:$0xff]  }
 0x103   : > { %8024 = vmatpush3.bf16.msra.mxu1 %v8948_v52  ;;  %7905 = vmatprep.subr.bf16.mxu0 %v9339_v1  ;;  %v8999_v52 = vld [vmem:[%s11285_s3 + $0x128] sm:$0xff]  }
 0x104   : > { %8025 = vmatprep.subr.bf16.mxu1 %v9339_v1 }
 0x106   : > { %7906 = vmatpush3.bf16.msra.mxu0 %v8949_v53  ;;  %v9000_v53 = vld [vmem:[%s11285_s3 + $0x128] sm:$0xff]  }
 0x107   : > { %8026 = vmatpush3.bf16.msra.mxu1 %v8950_v54  ;;  %7907 = vmatprep.subr.bf16.mxu0 %v9339_v1  ;;  %v9001_v54 = vld [vmem:[%s11285_s3 + $0x130] sm:$0xff]  }
 0x108   : > { %8027 = vmatprep.subr.bf16.mxu1 %v9339_v1 }
 0x10a   : > { %7908 = vmatpush3.bf16.msra.mxu0 %v8951_v55  ;;  %v9002_v55 = vld [vmem:[%s11285_s3 + $0x130] sm:$0xff]  }
 0x10b   : > { %8028 = vmatpush3.bf16.msra.mxu1 %v8952_v56  ;;  %7909 = vmatprep.subr.bf16.mxu0 %v9339_v1  ;;  %v9003_v56 = vld [vmem:[%s11285_s3 + $0x138] sm:$0xff]  }
 0x10c   : > { %8029 = vmatprep.subr.bf16.mxu1 %v9339_v1 }
 0x10e   : > { %7910 = vmatpush3.bf16.msra.mxu0 %v8953_v57  ;;  %v9004_v57 = vld [vmem:[%s11285_s3 + $0x138] sm:$0xff]  }
 0x10f   : > { %8030 = vmatpush3.bf16.msra.mxu1 %v8954_v58  ;;  %7915 = vmatprep.subr.bf16.mxu0 %v9339_v1  ;;  %v6456_v58 = vld [vmem:[%s9804_s10 + $0x10] sm:$0xf] }
 0x110   : > { %8035 = vmatprep.subr.bf16.mxu1 %v9339_v1 }
 0x111   : > { %7912 = vmatmul.mubr.bf16.vlgmr.msra.gmra.mrb[4].mxu0 %v9916_v21  ;;  %v8979_v21 = vld [vmem:[%s11285_s3 + $0xd8] sm:$0xff]  }
 0x112   : > { %7916 = vmatpush3.bf16.msra.mxu0 %v8955_v59  ;;  %8032 = vmatmul.mubr.bf16.vlgmr.msra.gmra.mrb[4].mxu1 %v9924_v24  ;;  %v6543_v24 = vld [vmem:[%s9652_s13 + $0x1c] sm:$0x1]  ;;  %v9006_v59 = vld [vmem:[%s11285_s3 + $0x140] sm:$0xff]  }
 0x113   : > { %8036 = vmatpush3.bf16.msra.mxu1 %v8956_v60  ;;  %7917 = vmatprep.subr.bf16.mxu0 %v9339_v1  ;;  %v6584_v30 = vcombine.low %v6542_v14, %v6543_v24  ;;  %v6593_v60 = vld [vmem:[%s9804_s10 + $0x18] sm:$0xf] }
 0x114   : > { %8037 = vmatprep.subr.bf16.mxu1 %v9339_v1  ;;  %7931 = vmatprep.mubr.msk.bf16.mxu0 %vm9340_vm0, %v9339_v1 }
 0x115   : > { %8051 = vmatprep.mubr.msk.bf16.mxu1 %vm9340_vm0, %v9339_v1  ;;  %v2786_v34 = vshll.u32 %v6584_v30, 16  ;;  %v2784_v36 = vshrl.u32 %v6584_v30, 16  ;;  %v9028_v30 = vld [vmem:[%s11285_s3 + $0x50] sm:$0xff]  }
 0x116   : > { %7918 = vmatpush3.bf16.msra.mxu0 %v8957_v61  ;;  %v9008_v61 = vld [vmem:[%s11285_s3 + $0x140] sm:$0xff]  }
 0x117   : > { %8038 = vmatpush3.bf16.msra.mxu1 %v8958_v62  ;;  %7919 = vmatprep.subr.bf16.mxu0 %v9339_v1  ;;  %v2788_v38 = vrot.slane %v2786_v34, 1  ;;  %v9009_v62 = vld [vmem:[%s11285_s3 + $0x148] sm:$0xff]   ;;  %v10351_v34 = vld [vmem:[%s9474_s12 + $0x20] sm:$0xf] }
 0x118   : > { %8039 = vmatprep.subr.bf16.mxu1 %v9339_v1 }
 0x119   : > { %v2789_v43 = vor.u32 %v2788_v38, %v2784_v36  ;;  %v9032_v36 = vld [vmem:[%s11285_s3 + $0x60] sm:$0xff]   ;;  %v6782_v38 = vld [vmem:[%s9474_s12 + $0x2c] sm:$0x1] }
 0x11a   : > { %7920 = vmatpush3.bf16.msra.mxu0 %v8959_v63  ;;  %v9010_v63 = vld [vmem:[%s11285_s3 + $0x148] sm:$0xff]  }
 0x11b   : > { %8040 = vmatpush3.bf16.msra.mxu1 %v8960_v0  ;;  %7921 = vmatprep.subr.bf16.mxu0 %v9339_v1  ;;  %v9011_v0 = vld [vmem:[%s11285_s3 + $0x150] sm:$0xff]  }
 0x11c   : > { %8041 = vmatprep.subr.bf16.mxu1 %v9339_v1 }
 0x11e   : > { %7922 = vmatpush3.bf16.msra.mxu0 %v8961_v2  ;;  %v9012_v2 = vld [vmem:[%s11285_s3 + $0x150] sm:$0xff]  }
 0x11f   : > { %8042 = vmatpush3.bf16.msra.mxu1 %v8962_v3  ;;  %7923 = vmatprep.subr.bf16.mxu0 %v9339_v1  ;;  %v9013_v3 = vld [vmem:[%s11285_s3 + $0x158] sm:$0xff]  }
 0x120   : > { %8043 = vmatprep.subr.bf16.mxu1 %v9339_v1 }
 0x122   : > { %7924 = vmatpush3.bf16.msra.mxu0 %v8963_v4  ;;  %v9014_v4 = vld [vmem:[%s11285_s3 + $0x158] sm:$0xff]  }
 0x123   : > { %8044 = vmatpush3.bf16.msra.mxu1 %v8964_v5  ;;  %7925 = vmatprep.subr.bf16.mxu0 %v9339_v1  ;;  %v6457_v5 = vld [vmem:[%s9804_s10 + $0x14] sm:$0x1] }
 0x124   : > { %8045 = vmatprep.subr.bf16.mxu1 %v9339_v1 }
 0x126   : > { %7926 = vmatpush3.bf16.msra.mxu0 %v8965_v6  ;;  %v9015_v6 = vld [vmem:[%s11285_s3 + $0x160] sm:$0xff]  }
 0x127   : > { %8046 = vmatpush3.bf16.msra.mxu1 %v8966_v7  ;;  %7927 = vmatprep.subr.bf16.mxu0 %v9339_v1  ;;  %v6594_v7 = vld [vmem:[%s9804_s10 + $0x1c] sm:$0x1] }
 0x128   : > { %8047 = vmatprep.subr.bf16.mxu1 %v9339_v1 }
 0x12a   : > { %7928 = vmatpush3.bf16.msra.mxu0 %v8967_v8  ;;  %v9016_v8 = vld [vmem:[%s11285_s3 + $0x160] sm:$0xff]  }
 0x12b   : > { %8048 = vmatpush3.bf16.msra.mxu1 %v8968_v9  ;;  %7929 = vmatprep.subr.bf16.mxu0 %v9339_v1  ;;  %v6498_v9 = vcombine.low %v6456_v58, %v6457_v5 }
 0x12c   : > { %8049 = vmatprep.subr.bf16.mxu1 %v9339_v1 }
 0x12e   : > { %7930 = vmatpush3.bf16.msra.mxu0 %v8969_v10  ;;  %v6635_v10 = vcombine.low %v6593_v60, %v6594_v7 }
 0x12f   : > { %8050 = vmatpush3.bf16.msra.mxu1 %v8970_v11  ;;  %7935 = vmatprep.subr.bf16.mxu0 %v9339_v1  ;;  %v9017_v11 = vld [vmem:[%s11285_s3 + $0x168] sm:$0xff]  }
 0x130   : > { %8055 = vmatprep.subr.bf16.mxu1 %v9339_v1 }
 0x131   : > { %7932 = vmatmul.mubr.bf16.vlgmr.msra.gmra.mrb[4].mxu0 %v6405_v12  ;;  %v9018_v12 = vld [vmem:[%s11285_s3 + $0x168] sm:$0xff]  }
 0x132   : > { %7936 = vmatpush3.bf16.msra.mxu0 %v8972_v13  ;;  %8052 = vmatmul.mubr.bf16.vlgmr.msra.gmra.mrb[4].mxu1 %v6542_v14  ;;  %v2319_v13 = vshll.u32 %v6498_v9, 16  ;;  %v3012_v14 = vshll.u32 %v6635_v10, 16 }
 0x133   : > { %8056 = vmatpush3.bf16.msra.mxu1 %v8974_v15  ;;  %7937 = vmatprep.subr.bf16.mxu0 %v9339_v1  ;;  %v9019_v15 = vld [vmem:[%s11285_s3 + $0x170] sm:$0xff]  }
 0x134   : > { %8057 = vmatprep.subr.bf16.mxu1 %v9339_v1  ;;  %7951 = vmatprep.mubr.msk.bf16.mxu0 %vm9340_vm0, %v9339_v1  ;;  %v3014_v20 = vrot.slane %v3012_v14, 1 }
 0x135   : > { %8071 = vmatprep.mubr.msk.bf16.mxu1 %vm9340_vm0, %v9339_v1 }
 0x136   : > { %7938 = vmatpush3.bf16.msra.mxu0 %v8975_v16  ;;  %v9020_v16 = vld [vmem:[%s11285_s3 + $0x170] sm:$0xff]  }
 0x137   : > { %8058 = vmatpush3.bf16.msra.mxu1 %v8976_v17  ;;  %7939 = vmatprep.subr.bf16.mxu0 %v9339_v1  ;;  %v2317_v17 = vshrl.u32 %v6498_v9, 16 }
 0x138   : > { %8059 = vmatprep.subr.bf16.mxu1 %v9339_v1 }
 0x13a   : > { %7940 = vmatpush3.bf16.msra.mxu0 %v8977_v18  ;;  %v2321_v18 = vrot.slane %v2319_v13, 1  ;;  %v9038_v13 = vld [vmem:[%s11285_s3 + $0x78] sm:$0xff]  }
 0x13b   : > { %8060 = vmatpush3.bf16.msra.mxu1 %v8978_v19  ;;  %7941 = vmatprep.subr.bf16.mxu0 %v9339_v1  ;;  %v3010_v19 = vshrl.u32 %v6635_v10, 16 }
 0x13c   : > { %8061 = vmatprep.subr.bf16.mxu1 %v9339_v1  ;;  %v2322_v23 = vor.u32 %v2321_v18, %v2317_v17 }
 0x13d   : > { %v3015_v24 = vor.u32 %v3014_v20, %v3010_v19 }
 0x13e   : > { %7942 = vmatpush3.bf16.msra.mxu0 %v8979_v21  ;;  %v9021_v21 = vld [vmem:[%s11285_s3 + $0x178] sm:$0xff]  }
 0x13f   : > { %8062 = vmatpush3.bf16.msra.mxu1 %v8980_v22  ;;  %7943 = vmatprep.subr.bf16.mxu0 %v9339_v1  ;;  %v9022_v22 = vld [vmem:[%s11285_s3 + $0x178] sm:$0xff]  }
 0x140   : > { %8063 = vmatprep.subr.bf16.mxu1 %v9339_v1 }
 0x142   : > { %7944 = vmatpush3.bf16.msra.mxu0 %v8981_v25  ;;  %v9023_v25 = vld [vmem:[%s11285_s3 + $0x40] sm:$0xff]  }
 0x143   : > { %8064 = vmatpush3.bf16.msra.mxu1 %v8982_v26  ;;  %7945 = vmatprep.subr.bf16.mxu0 %v9339_v1  ;;  %v9024_v26 = vld [vmem:[%s11285_s3 + $0x40] sm:$0xff]  }
 0x144   : > { %8065 = vmatprep.subr.bf16.mxu1 %v9339_v1 }
 0x146   : > { %7946 = vmatpush3.bf16.msra.mxu0 %v8983_v28  ;;  %v9026_v28 = vld [vmem:[%s11285_s3 + $0x48] sm:$0xff]  }
 0x147   : > { %8066 = vmatpush3.bf16.msra.mxu1 %v8984_v31  ;;  %7947 = vmatprep.subr.bf16.mxu0 %v9339_v1  ;;  %v9029_v31 = vld [vmem:[%s11285_s3 + $0x58] sm:$0xff]  }
 0x148   : > { %8067 = vmatprep.subr.bf16.mxu1 %v9339_v1 }
 0x14a   : > { %7948 = vmatpush3.bf16.msra.mxu0 %v8985_v33  ;;  %v9031_v33 = vld [vmem:[%s11285_s3 + $0x60] sm:$0xff]  }
 0x14b   : > { %8068 = vmatpush3.bf16.msra.mxu1 %v8986_v35  ;;  %7949 = vmatprep.subr.bf16.mxu0 %v9339_v1  ;;  %v6645_v35 = vld [vmem:[%s9474_s12 + $0x24] sm:$0x1] }
 0x14c   : > { %8069 = vmatprep.subr.bf16.mxu1 %v9339_v1 }
 0x14e   : > { %7950 = vmatpush3.bf16.msra.mxu0 %v8987_v37  ;;  %v10359_v37 = vld [vmem:[%s9474_s12 + $0x28] sm:$0xf] }
 0x14f   : > { %8070 = vmatpush3.bf16.msra.mxu1 %v8988_v39  ;;  %7955 = vmatprep.subr.bf16.mxu0 %v9339_v1  ;;  %v6662_v39 = vcombine.low %v10351_v34, %v6645_v35  ;;  %v9045_v35 = vld [vmem:[%s11285_s3 + $0x10] sm:$0xff]  }
 0x150   : > { %8075 = vmatprep.subr.bf16.mxu1 %v9339_v1 }
 0x151   : > { %7952 = vmatmul.mubr.bf16.vlgmr.msra.gmra.mrb[4].mxu0 %v2096_v41  ;;  %v6799_v41 = vcombine.low %v10359_v37, %v6782_v38  ;;  %v9047_v38 = vld [vmem:[%s11285_s3 + $0x18] sm:$0xff]  }
 0x152   : > { %7956 = vmatpush3.bf16.msra.mxu0 %v8989_v40  ;;  %8072 = vmatmul.mubr.bf16.vlgmr.msra.gmra.mrb[4].mxu1 %v2789_v43  ;;  %v9033_v40 = vld [vmem:[%s11285_s3 + $0x68] sm:$0xff]  }
 0x153   : > { %8076 = vmatpush3.bf16.msra.mxu1 %v8990_v42  ;;  %7957 = vmatprep.subr.bf16.mxu0 %v9339_v1  ;;  %v9034_v42 = vld [vmem:[%s11285_s3 + $0x68] sm:$0xff]   ;;  %v3857_v9 = vshrl.u32 %v6799_v41, 16 }
 0x154   : > { %8077 = vmatprep.subr.bf16.mxu1 %v9339_v1  ;;  %7971 = vmatprep.mubr.msk.bf16.mxu0 %vm9340_vm0, %v9339_v1 }
 0x155   : > { %8091 = vmatprep.mubr.msk.bf16.mxu1 %vm9340_vm0, %v9339_v1 }
 0x156   : > { %7958 = vmatpush3.bf16.msra.mxu0 %v8991_v44 }
 0x157   : > { %8078 = vmatpush3.bf16.msra.mxu1 %v8992_v45  ;;  %7959 = vmatprep.subr.bf16.mxu0 %v9339_v1 }
 0x158   : > { %8079 = vmatprep.subr.bf16.mxu1 %v9339_v1 }
 0x15a   : > { %7960 = vmatpush3.bf16.msra.mxu0 %v8993_v46 }
 0x15b   : > { %8080 = vmatpush3.bf16.msra.mxu1 %v8994_v47  ;;  %7961 = vmatprep.subr.bf16.mxu0 %v9339_v1 }
 0x15c   : > { %8081 = vmatprep.subr.bf16.mxu1 %v9339_v1 }
 0x15e   : > { %7962 = vmatpush3.bf16.msra.mxu0 %v8995_v48 }
 0x15f   : > { %8082 = vmatpush3.bf16.msra.mxu1 %v8996_v49  ;;  %7963 = vmatprep.subr.bf16.mxu0 %v9339_v1  ;;  %v3166_v49 = vshll.u32 %v6662_v39, 16 }
 0x160   : > { %8083 = vmatprep.subr.bf16.mxu1 %v9339_v1 }
 0x161   : > { %v3168_v5 = vrot.slane %v3166_v49, 1  ;;  %v9058_v49 = vld [vmem:[%s11285_s3 + $0x80] sm:$0xff]  }
 0x162   : > { %7964 = vmatpush3.bf16.msra.mxu0 %v8997_v50 }
 0x163   : > { %8084 = vmatpush3.bf16.msra.mxu1 %v8998_v51  ;;  %7965 = vmatprep.subr.bf16.mxu0 %v9339_v1 }
 0x164   : > { %8085 = vmatprep.subr.bf16.mxu1 %v9339_v1 }
 0x166   : > { %7966 = vmatpush3.bf16.msra.mxu0 %v8999_v52 }
 0x167   : > { %8086 = vmatpush3.bf16.msra.mxu1 %v9000_v53  ;;  %7967 = vmatprep.subr.bf16.mxu0 %v9339_v1 }
 0x168   : > { %8087 = vmatprep.subr.bf16.mxu1 %v9339_v1 }
 0x16a   : > { %7968 = vmatpush3.bf16.msra.mxu0 %v9001_v54 }
 0x16b   : > { %8088 = vmatpush3.bf16.msra.mxu1 %v9002_v55  ;;  %7969 = vmatprep.subr.bf16.mxu0 %v9339_v1  ;;  %v9035_v55 = vld [vmem:[%s11285_s3 + $0x70] sm:$0xff]  }
 0x16c   : > { %8089 = vmatprep.subr.bf16.mxu1 %v9339_v1 }
 0x16e   : > { %7970 = vmatpush3.bf16.msra.mxu0 %v9003_v56  ;;  %v3859_v56 = vshll.u32 %v6799_v41, 16  ;;  %v9050_v41 = vld [vmem:[%s11285_s3 + $0x20] sm:$0xff]  }
 0x16f   : > { %8090 = vmatpush3.bf16.msra.mxu1 %v9004_v57  ;;  %7975 = vmatprep.subr.bf16.mxu0 %v9339_v1 }
 0x170   : > { %8095 = vmatprep.subr.bf16.mxu1 %v9339_v1  ;;  %v3861_v10 = vrot.slane %v3859_v56, 1  ;;  %v9067_v56 = vld [vmem:[%s11285_s3 + $0xa8] sm:$0xff]  }
 0x171   : > { %7972 = vmatmul.mubr.bf16.vlgmr.msra.gmra.mrb[4].mxu0 %v6456_v58 }
 0x172   : > { %7976 = vmatpush3.bf16.msra.mxu0 %v9006_v59  ;;  %8092 = vmatmul.mubr.bf16.vlgmr.msra.gmra.mrb[4].mxu1 %v6593_v60 }
 0x173   : > { %8096 = vmatpush3.bf16.msra.mxu1 %v9008_v61  ;;  %7977 = vmatprep.subr.bf16.mxu0 %v9339_v1  ;;  %v9036_v61 = vld [vmem:[%s11285_s3 + $0x70] sm:$0xff]  }
 0x174   : > { %8097 = vmatprep.subr.bf16.mxu1 %v9339_v1  ;;  %7991 = vmatprep.mubr.msk.bf16.mxu0 %vm9340_vm0, %v9339_v1 }
 0x175   : > { %8111 = vmatprep.mubr.msk.bf16.mxu1 %vm9340_vm0, %v9339_v1 }
 0x176   : > { %7978 = vmatpush3.bf16.msra.mxu0 %v9009_v62 }
 0x177   : > { %8098 = vmatpush3.bf16.msra.mxu1 %v9010_v63  ;;  %7979 = vmatprep.subr.bf16.mxu0 %v9339_v1 }
 0x178   : > { %8099 = vmatprep.subr.bf16.mxu1 %v9339_v1 }
 0x17a   : > { %7980 = vmatpush3.bf16.msra.mxu0 %v9011_v0 }
 0x17b   : > { %8100 = vmatpush3.bf16.msra.mxu1 %v9012_v2  ;;  %7981 = vmatprep.subr.bf16.mxu0 %v9339_v1 }
 0x17c   : > { %8101 = vmatprep.subr.bf16.mxu1 %v9339_v1 }
 0x17e   : > { %7982 = vmatpush3.bf16.msra.mxu0 %v9013_v3 }
 0x17f   : > { %8102 = vmatpush3.bf16.msra.mxu1 %v9014_v4  ;;  %7983 = vmatprep.subr.bf16.mxu0 %v9339_v1  ;;  %v3164_v4 = vshrl.u32 %v6662_v39, 16  ;;  %v9048_v39 = vld [vmem:[%s11285_s3 + $0x18] sm:$0xff]  }
 0x180   : > { %8103 = vmatprep.subr.bf16.mxu1 %v9339_v1 }
 0x181   : > { %v3169_v18 = vor.u32 %v3168_v5, %v3164_v4  ;;  %v9078_v4 = vld [vmem:[%s11285_s3 + $0xc8] sm:$0xff]   ;;  %v9079_v5 = vld [vmem:[%s11285_s3 + $0xd0] sm:$0xff]  }
 0x182   : > { %7984 = vmatpush3.bf16.msra.mxu0 %v9015_v6 }
 0x183   : > { %8104 = vmatpush3.bf16.msra.mxu1 %v9016_v8  ;;  %7985 = vmatprep.subr.bf16.mxu0 %v9339_v1  ;;  %v9037_v8 = vld [vmem:[%s11285_s3 + $0x78] sm:$0xff]  }
 0x184   : > { %8105 = vmatprep.subr.bf16.mxu1 %v9339_v1 }
 0x186   : > { %7986 = vmatpush3.bf16.msra.mxu0 %v9017_v11 }
 0x187   : > { %8106 = vmatpush3.bf16.msra.mxu1 %v9018_v12  ;;  %7987 = vmatprep.subr.bf16.mxu0 %v9339_v1 }
 0x188   : > { %8107 = vmatprep.subr.bf16.mxu1 %v9339_v1 }
 0x18a   : > { %7988 = vmatpush3.bf16.msra.mxu0 %v9019_v15 }
 0x18b   : > { %8108 = vmatpush3.bf16.msra.mxu1 %v9020_v16  ;;  %7989 = vmatprep.subr.bf16.mxu0 %v9339_v1 }
 0x18c   : > { %8109 = vmatprep.subr.bf16.mxu1 %v9339_v1 }
 0x18e   : > { %7990 = vmatpush3.bf16.msra.mxu0 %v9021_v21  ;;  %v9040_v21 = vld [vmem:[%s11285_s3] sm:$0xff]  }
 0x18f   : > { %8110 = vmatpush3.bf16.msra.mxu1 %v9022_v22  ;;  %8115 = vmatprep.subr.bf16.mxu0 %v9339_v1  ;;  %v3862_v22 = vor.u32 %v3861_v10, %v3857_v9  ;;  %v6680_v9 = vld [vmem:[%s9652_s13 + $0x24] sm:$0x1] }
 0x190   : > { %8235 = vmatprep.subr.bf16.mxu1 %v9339_v1  ;;  %v9083_v10 = vld [vmem:[%s11285_s3 + $0xe0] sm:$0xff]  }
 0x191   : > { %7992 = vmatmul.mubr.bf16.vlgmr.msra.gmra.mrb[4].mxu0 %v2322_v23 }
 0x192   : > { %8112 = vmatmul.mubr.bf16.vlgmr.msra.gmra.mrb[4].mxu1 %v3015_v24  ;;  %8116 = vmatpush3.bf16.msra.mxu0 %v9023_v25  ;;  %v9042_v25 = vld [vmem:[%s11285_s3] sm:$0xff]  }
 0x193   : > { %8236 = vmatpush3.bf16.msra.mxu1 %v9024_v26  ;;  %8117 = vmatprep.subr.bf16.mxu0 %v9339_v1 }
 0x194   : > { %8237 = vmatprep.subr.bf16.mxu1 %v9339_v1  ;;  %8131 = vmatprep.mubr.msk.bf16.mxu0 %vm9340_vm0, %v9339_v1 }
 0x195   : > { %8251 = vmatprep.mubr.msk.bf16.mxu1 %vm9340_vm0, %v9339_v1 }
 0x196   : > { %8118 = vmatpush3.bf16.msra.mxu0 %v9025_v27 }
 0x197   : > { %8238 = vmatpush3.bf16.msra.mxu1 %v9026_v28  ;;  %8119 = vmatprep.subr.bf16.mxu0 %v9339_v1 }
 0x198   : > { %8239 = vmatprep.subr.bf16.mxu1 %v9339_v1 }
 0x19a   : > { %8120 = vmatpush3.bf16.msra.mxu0 %v9027_v29 }
 0x19b   : > { %8240 = vmatpush3.bf16.msra.mxu1 %v9028_v30  ;;  %8121 = vmatprep.subr.bf16.mxu0 %v9339_v1 }
 0x19c   : > { %8241 = vmatprep.subr.bf16.mxu1 %v9339_v1 }
 0x19e   : > { %8122 = vmatpush3.bf16.msra.mxu0 %v9029_v31  ;;  %v9043_v31 = vld [vmem:[%s11285_s3 + $0x8] sm:$0xff]  }
 0x19f   : > { %8242 = vmatpush3.bf16.msra.mxu1 %v9030_v32  ;;  %8123 = vmatprep.subr.bf16.mxu0 %v9339_v1  ;;  %v9044_v32 = vld [vmem:[%s11285_s3 + $0x8] sm:$0xff]  }
 0x1a0   : > { %8243 = vmatprep.subr.bf16.mxu1 %v9339_v1 }
 0x1a2   : > { %8124 = vmatpush3.bf16.msra.mxu0 %v9031_v33 }
 0x1a3   : > { %8244 = vmatpush3.bf16.msra.mxu1 %v9032_v36  ;;  %8125 = vmatprep.subr.bf16.mxu0 %v9339_v1  ;;  %v9046_v36 = vld [vmem:[%s11285_s3 + $0x10] sm:$0xff]  }
 0x1a4   : > { %v1020_v43 = vpop.f32.mrb[0].mxu0  ;;  %8245 = vmatprep.subr.bf16.mxu1 %v9339_v1 }
 0x1a5   : > { %v1027_v44 = vpack.c.bf16 %v1020_v43, %v1020_v43  ;;  %v1029_v45 = vrot.slane %v1020_v43, 4  ;;  %v1036_v46 = vmul.f32 %v1020_v43, %v1020_v43  ;;  %v1713_v47 = vpop.f32.mrb[0].mxu1  ;;  %v7753_v48 = vpop.f32.mrb[1].mxu0 }
 0x1a6   : > { %v1720_v50 = vpack.c.bf16 %v1713_v47, %v1713_v47  ;;  %v1722_v51 = vrot.slane %v1713_v47, 4  ;;  %v1729_v52 = vmul.f32 %v1713_v47, %v1713_v47  ;;  %v7873_v53 = vpop.f32.mrb[1].mxu1  ;;  %v1023_v54 = vpop.f32.mrb[2].mxu0  ;;  %8126 = vmatpush3.bf16.msra.mxu0 %v9033_v40  ;;  %v9049_v40 = vld [vmem:[%s11285_s3 + $0x20] sm:$0xff]  }
 0x1a7   : > { %1028 = vst [vmem:[%s10377_s11] sm:$0xf] %v1027_v44  ;;  %v1030_v57 = vadd.f32 %v1029_v45, %v1020_v43  ;;  %v1037_v58 = vrot.slane %v1036_v46, 4  ;;  %v1716_v59 = vpop.f32.mrb[2].mxu1  ;;  %8246 = vmatpush3.bf16.msra.mxu1 %v9034_v42  ;;  %v7754_v60 = vpop.f32.mrb[3].mxu0  ;;  %8127 = vmatprep.subr.bf16.mxu0 %v9339_v1  ;;  %v9051_v42 = vld [vmem:[%s11285_s3 + $0x28] sm:$0xff]   ;;  %v9053_v44 = vld [vmem:[%s11285_s3 + $0x30] sm:$0xff]  }
 0x1a8   : > { %1721 = vst [vmem:[%s10377_s11 + $0x4] sm:$0xf] %v1720_v50  ;;  %v1723_v62 = vadd.f32 %v1722_v51, %v1713_v47  ;;  %v1730_v63 = vrot.slane %v1729_v52, 4  ;;  %v7874_v0 = vpop.f32.mrb[3].mxu1  ;;  %8247 = vmatprep.subr.bf16.mxu1 %v9339_v1  ;;  %v9052_v43 = vld [vmem:[%s11285_s3 + $0x28] sm:$0xff]   ;;  %v9054_v45 = vld [vmem:[%s11285_s3 + $0x30] sm:$0xff]  }
 0x1a9   : > { %v1031_v2 = vrot.slane %v1030_v57, 2  ;;  %v1038_v3 = vadd.f32 %v1037_v58, %v1036_v46  ;;  %v9055_v46 = vld [vmem:[%s11285_s3 + $0x38] sm:$0xff]   ;;  %v9057_v48 = vld [vmem:[%s11285_s3 + $0x80] sm:$0xff]   ;;  %v9059_v50 = vld [vmem:[%s11285_s3 + $0x88] sm:$0xff]  }
 0x1aa   : > { %v1724_v6 = vrot.slane %v1723_v62, 2  ;;  %v1731_v7 = vadd.f32 %v1730_v63, %v1729_v52  ;;  %8128 = vmatpush3.bf16.msra.mxu0 %v9035_v55  ;;  %v9056_v47 = vld [vmem:[%s11285_s3 + $0x38] sm:$0xff]   ;;  %v9060_v51 = vld [vmem:[%s11285_s3 + $0x88] sm:$0xff]   ;;  %v9065_v54 = vld [vmem:[%s11285_s3 + $0xa0] sm:$0xff]  }
 0x1ab   : > { %v1032_v11 = vadd.f32 %v1031_v2, %v1030_v57  ;;  %v1039_v12 = vrot.slane %v1038_v3, 2  ;;  %8248 = vmatpush3.bf16.msra.mxu1 %v9036_v61  ;;  %8129 = vmatprep.subr.bf16.mxu0 %v9339_v1  ;;  %v9063_v52 = vld [vmem:[%s11285_s3 + $0x98] sm:$0xff]   ;;  %v9066_v55 = vld [vmem:[%s11285_s3 + $0xa0] sm:$0xff]   ;;  %v9068_v57 = vld [vmem:[%s11285_s3 + $0xa8] sm:$0xff]  }
 0x1ac   : > { %v1725_v14 = vadd.f32 %v1724_v6, %v1723_v62  ;;  %v1732_v15 = vrot.slane %v1731_v7, 2  ;;  %8249 = vmatprep.subr.bf16.mxu1 %v9339_v1  ;;  %v9064_v53 = vld [vmem:[%s11285_s3 + $0x98] sm:$0xff]   ;;  %v9069_v58 = vld [vmem:[%s11285_s3 + $0xb0] sm:$0xff]   ;;  %v6679_v62 = vld [vmem:[%s9652_s13 + $0x20] sm:$0xf] }
 0x1ad   : > { %v1033_v16 = vrot.slane %v1032_v11, 1  ;;  %v1040_v17 = vadd.f32 %v1039_v12, %v1038_v3  ;;  %v9070_v59 = vld [vmem:[%s11285_s3 + $0xb0] sm:$0xff]   ;;  %v9071_v60 = vld [vmem:[%s11285_s3 + $0xb8] sm:$0xff]   ;;  %v9074_v63 = vld [vmem:[%s11285_s3 + $0xc0] sm:$0xff]  }
 0x1ae   : > { %v1726_v19 = vrot.slane %v1725_v14, 1  ;;  %v1733_v20 = vadd.f32 %v1732_v15, %v1731_v7  ;;  %8130 = vmatpush3.bf16.msra.mxu0 %v9037_v8  ;;  %v9072_v61 = vld [vmem:[%s11285_s3 + $0xb8] sm:$0xff]   ;;  %v6816_v0 = vld [vmem:[%s9652_s13 + $0x28] sm:$0xf]  ;;  %v9076_v2 = vld [vmem:[%s11285_s3 + $0xc0] sm:$0xff]  }
 0x1af   : > { %v1034_v23 = vadd.f32 %v1033_v16, %v1032_v11  ;;  %v1041_v24 = vrot.slane %v1040_v17, 1  ;;  %8250 = vmatpush3.bf16.msra.mxu1 %v9038_v13  ;;  %8135 = vmatprep.subr.bf16.mxu0 %v9339_v1  ;;  %v9077_v3 = vld [vmem:[%s11285_s3 + $0xc8] sm:$0xff]   ;;  %v9080_v6 = vld [vmem:[%s11285_s3 + $0xd0] sm:$0xff]   ;;  %v9081_v7 = vld [vmem:[%s11285_s3 + $0xd8] sm:$0xff]   ;;  %v6721_v13 = vcombine.low %v6679_v62, %v6680_v9 }
 0x1b0   : > { %v1727_v26 = vadd.f32 %v1726_v19, %v1725_v14  ;;  %v1734_v27 = vrot.slane %v1733_v20, 1  ;;  %8255 = vmatprep.subr.bf16.mxu1 %v9339_v1  ;;  %v9082_v8 = vld [vmem:[%s11285_s3 + $0xd8] sm:$0xff]   ;;  %v6817_v11 = vld [vmem:[%s9652_s13 + $0x2c] sm:$0x1]  ;;  %v9084_v12 = vld [vmem:[%s11285_s3 + $0xe0] sm:$0xff]  }
 0x1b1   : > { %v1042_v28 = vadd.f32 %v1041_v24, %v1040_v17  ;;  %8132 = vmatmul.mubr.bf16.vlgmr.msra.gmra.mrb[8].mxu0 %v3169_v18  ;;  %v6858_v14 = vcombine.low %v6816_v0, %v6817_v11  ;;  %v9085_v15 = vld [vmem:[%s11285_s3 + $0xe8] sm:$0xff]   ;;  %v3479_v17 = vshll.u32 %v6721_v13, 16  ;;  %v9087_v19 = vld [vmem:[%s11285_s3 + $0xf0] sm:$0xff]   ;;  %v9124_v11 = vld [vmem:[%s11285_s3 + $0x178] sm:$0xff]  }
 0x1b2   : > { %v10402_v29 = vadd.f32 %v1727_v26, %v1034_v23  ;;  %v1735_v30 = vadd.f32 %v1734_v27, %v1733_v20  ;;  %8136 = vmatpush3.bf16.msra.mxu0 %v9040_v21  ;;  %8252 = vmatmul.mubr.bf16.vlgmr.msra.gmra.mrb[8].mxu1 %v3862_v22  ;;  %v9086_v16 = vld [vmem:[%s11285_s3 + $0xe8] sm:$0xff]   ;;  %v9088_v20 = vld [vmem:[%s11285_s3 + $0xf0] sm:$0xff]   ;;  %v3477_v21 = vshrl.u32 %v6721_v13, 16  ;;  %v9090_v26 = vld [vmem:[%s11285_s3 + $0xf8] sm:$0xff]  }
 0x1b3   : > { %8256 = vmatpush3.bf16.msra.mxu1 %v9042_v25  ;;  %8137 = vmatprep.subr.bf16.mxu0 %v9339_v1  ;;  %v4172_v18 = vshll.u32 %v6858_v14, 16  ;;  %v3481_v22 = vrot.slane %v3479_v17, 1  ;;  %v4170_v23 = vshrl.u32 %v6858_v14, 16  ;;  %v9089_v25 = vld [vmem:[%s11285_s3 + $0xf8] sm:$0xff]   ;;  %v9125_v14 = vld [vmem:[%s11285_s3 + $0x40] sm:$0xff]   ;;  %v9128_v17 = vld [vmem:[%s11285_s3 + $0x48] sm:$0xff]  }
 0x1b4   : > { %v10411_v33 = vadd.f32 %v1735_v30, %v1042_v28  ;;  %8257 = vmatprep.subr.bf16.mxu1 %v9339_v1  ;;  %8151 = vmatprep.mubr.msk.bf16.mxu0 %vm9340_vm0, %v9339_v1  ;;  %v9091_v28 = vld [vmem:[%s11285_s3 + $0x100] sm:$0xff]  }
 0x1b5   : > { %8271 = vmatprep.mubr.msk.bf16.mxu1 %vm9340_vm0, %v9339_v1  ;;  %v4174_v24 = vrot.slane %v4172_v18, 1  ;;  %v3482_v27 = vor.u32 %v3481_v22, %v3477_v21  ;;  %v9129_v18 = vld [vmem:[%s11285_s3 + $0x50] sm:$0xff]   ;;  %v9132_v21 = vld [vmem:[%s11285_s3 + $0x58] sm:$0xff]   ;;  %v9133_v22 = vld [vmem:[%s11285_s3 + $0x60] sm:$0xff]  }
 0x1b6   : > { %8138 = vmatpush3.bf16.msra.mxu0 %v9043_v31  ;;  %v9092_v31 = vld [vmem:[%s11285_s3 + $0x100] sm:$0xff]  }
 0x1b7   : > { %8258 = vmatpush3.bf16.msra.mxu1 %v9044_v32  ;;  %8139 = vmatprep.subr.bf16.mxu0 %v9339_v1  ;;  %v4175_v30 = vor.u32 %v4174_v24, %v4170_v23  ;;  %v9093_v32 = vld [vmem:[%s11285_s3 + $0x108] sm:$0xff]   ;;  %v10788_v23 = vld [vmem:[%s9474_s12 + $0x30] sm:$0xf]  ;;  %v6919_v24 = vld [vmem:[%s9474_s12 + $0x34] sm:$0x1] }
 0x1b8   : > { %8259 = vmatprep.subr.bf16.mxu1 %v9339_v1 }
 0x1ba   : > { %8140 = vmatpush3.bf16.msra.mxu0 %v9045_v35  ;;  %v9094_v35 = vld [vmem:[%s11285_s3 + $0x108] sm:$0xff]  }
 0x1bb   : > { %8260 = vmatpush3.bf16.msra.mxu1 %v9046_v36  ;;  %8141 = vmatprep.subr.bf16.mxu0 %v9339_v1  ;;  %v9095_v36 = vld [vmem:[%s11285_s3 + $0x110] sm:$0xff]  }
 0x1bc   : > { %8261 = vmatprep.subr.bf16.mxu1 %v9339_v1 }
 0x1be   : > { %8142 = vmatpush3.bf16.msra.mxu0 %v9047_v38  ;;  %v9096_v38 = vld [vmem:[%s11285_s3 + $0x110] sm:$0xff]  }
 0x1bf   : > { %8262 = vmatpush3.bf16.msra.mxu1 %v9048_v39  ;;  %8143 = vmatprep.subr.bf16.mxu0 %v9339_v1  ;;  %v9097_v39 = vld [vmem:[%s11285_s3 + $0x118] sm:$0xff]  }
 0x1c0   : > { %8263 = vmatprep.subr.bf16.mxu1 %v9339_v1 }
 0x1c2   : > { %8144 = vmatpush3.bf16.msra.mxu0 %v9049_v40  ;;  %v9098_v40 = vld [vmem:[%s11285_s3 + $0x118] sm:$0xff]  }
 0x1c3   : > { %8264 = vmatpush3.bf16.msra.mxu1 %v9050_v41  ;;  %8145 = vmatprep.subr.bf16.mxu0 %v9339_v1  ;;  %v9099_v41 = vld [vmem:[%s11285_s3 + $0x120] sm:$0xff]  }
 0x1c4   : > { %8265 = vmatprep.subr.bf16.mxu1 %v9339_v1 }
 0x1c6   : > { %8146 = vmatpush3.bf16.msra.mxu0 %v9051_v42  ;;  %v9100_v42 = vld [vmem:[%s11285_s3 + $0x120] sm:$0xff]  }
 0x1c7   : > { %8266 = vmatpush3.bf16.msra.mxu1 %v9052_v43  ;;  %8147 = vmatprep.subr.bf16.mxu0 %v9339_v1  ;;  %v9101_v43 = vld [vmem:[%s11285_s3 + $0x128] sm:$0xff]  }
 0x1c8   : > { %8267 = vmatprep.subr.bf16.mxu1 %v9339_v1 }
 0x1ca   : > { %8148 = vmatpush3.bf16.msra.mxu0 %v9053_v44  ;;  %v9102_v44 = vld [vmem:[%s11285_s3 + $0x128] sm:$0xff]  }
 0x1cb   : > { %8268 = vmatpush3.bf16.msra.mxu1 %v9054_v45  ;;  %8149 = vmatprep.subr.bf16.mxu0 %v9339_v1  ;;  %v9103_v45 = vld [vmem:[%s11285_s3 + $0x130] sm:$0xff]  }
 0x1cc   : > { %8269 = vmatprep.subr.bf16.mxu1 %v9339_v1 }
 0x1ce   : > { %8150 = vmatpush3.bf16.msra.mxu0 %v9055_v46  ;;  %v9104_v46 = vld [vmem:[%s11285_s3 + $0x130] sm:$0xff]  }
 0x1cf   : > { %8270 = vmatpush3.bf16.msra.mxu1 %v9056_v47  ;;  %8155 = vmatprep.subr.bf16.mxu0 %v9339_v1  ;;  %v9105_v47 = vld [vmem:[%s11285_s3 + $0x138] sm:$0xff]  }
 0x1d0   : > { %8275 = vmatprep.subr.bf16.mxu1 %v9339_v1 }
 0x1d1   : > { %8152 = vmatmul.mubr.bf16.vlgmr.msra.gmra.mrb[8].mxu0 %v10351_v34  ;;  %v9061_v34 = vld [vmem:[%s11285_s3 + $0x90] sm:$0xff]  }
 0x1d2   : > { %8156 = vmatpush3.bf16.msra.mxu0 %v9057_v48  ;;  %8272 = vmatmul.mubr.bf16.vlgmr.msra.gmra.mrb[8].mxu1 %v10359_v37  ;;  %v9062_v37 = vld [vmem:[%s11285_s3 + $0x90] sm:$0xff]   ;;  %v9106_v48 = vld [vmem:[%s11285_s3 + $0x138] sm:$0xff]  }
 0x1d3   : > { %8276 = vmatpush3.bf16.msra.mxu1 %v9058_v49  ;;  %8157 = vmatprep.subr.bf16.mxu0 %v9339_v1  ;;  %v6730_v49 = vld [vmem:[%s9804_s10 + $0x20] sm:$0xf] }
 0x1d4   : > { %8277 = vmatprep.subr.bf16.mxu1 %v9339_v1  ;;  %8171 = vmatprep.mubr.msk.bf16.mxu0 %vm9340_vm0, %v9339_v1 }
 0x1d5   : > { %8291 = vmatprep.mubr.msk.bf16.mxu1 %vm9340_vm0, %v9339_v1 }
 0x1d6   : > { %8158 = vmatpush3.bf16.msra.mxu0 %v9059_v50  ;;  %v9108_v50 = vld [vmem:[%s11285_s3 + $0x140] sm:$0xff]  }
 0x1d7   : > { %8278 = vmatpush3.bf16.msra.mxu1 %v9060_v51  ;;  %8159 = vmatprep.subr.bf16.mxu0 %v9339_v1  ;;  %v6867_v51 = vld [vmem:[%s9804_s10 + $0x28] sm:$0xf] }
 0x1d8   : > { %8279 = vmatprep.subr.bf16.mxu1 %v9339_v1 }
 0x1da   : > { %8160 = vmatpush3.bf16.msra.mxu0 %v9061_v34  ;;  %v9110_v34 = vld [vmem:[%s11285_s3 + $0x140] sm:$0xff]  }
 0x1db   : > { %8280 = vmatpush3.bf16.msra.mxu1 %v9062_v37  ;;  %8161 = vmatprep.subr.bf16.mxu0 %v9339_v1  ;;  %v9111_v37 = vld [vmem:[%s11285_s3 + $0x148] sm:$0xff]  }
 0x1dc   : > { %8281 = vmatprep.subr.bf16.mxu1 %v9339_v1 }
 0x1de   : > { %8162 = vmatpush3.bf16.msra.mxu0 %v9063_v52  ;;  %v9112_v52 = vld [vmem:[%s11285_s3 + $0x148] sm:$0xff]  }
 0x1df   : > { %8282 = vmatpush3.bf16.msra.mxu1 %v9064_v53  ;;  %8163 = vmatprep.subr.bf16.mxu0 %v9339_v1  ;;  %v9113_v53 = vld [vmem:[%s11285_s3 + $0x150] sm:$0xff]  }
 0x1e0   : > { %8283 = vmatprep.subr.bf16.mxu1 %v9339_v1 }
 0x1e2   : > { %8164 = vmatpush3.bf16.msra.mxu0 %v9065_v54  ;;  %v9114_v54 = vld [vmem:[%s11285_s3 + $0x150] sm:$0xff]  }
 0x1e3   : > { %8284 = vmatpush3.bf16.msra.mxu1 %v9066_v55  ;;  %8165 = vmatprep.subr.bf16.mxu0 %v9339_v1  ;;  %v9115_v55 = vld [vmem:[%s11285_s3 + $0x158] sm:$0xff]  }
 0x1e4   : > { %8285 = vmatprep.subr.bf16.mxu1 %v9339_v1 }
 0x1e6   : > { %8166 = vmatpush3.bf16.msra.mxu0 %v9067_v56  ;;  %v9116_v56 = vld [vmem:[%s11285_s3 + $0x158] sm:$0xff]  }
 0x1e7   : > { %8286 = vmatpush3.bf16.msra.mxu1 %v9068_v57  ;;  %8167 = vmatprep.subr.bf16.mxu0 %v9339_v1  ;;  %v6731_v57 = vld [vmem:[%s9804_s10 + $0x24] sm:$0x1] }
 0x1e8   : > { %8287 = vmatprep.subr.bf16.mxu1 %v9339_v1 }
 0x1ea   : > { %8168 = vmatpush3.bf16.msra.mxu0 %v9069_v58  ;;  %v9117_v58 = vld [vmem:[%s11285_s3 + $0x160] sm:$0xff]  }
 0x1eb   : > { %8288 = vmatpush3.bf16.msra.mxu1 %v9070_v59  ;;  %8169 = vmatprep.subr.bf16.mxu0 %v9339_v1  ;;  %v6868_v59 = vld [vmem:[%s9804_s10 + $0x2c] sm:$0x1] }
 0x1ec   : > { %8289 = vmatprep.subr.bf16.mxu1 %v9339_v1 }
 0x1ee   : > { %8170 = vmatpush3.bf16.msra.mxu0 %v9071_v60  ;;  %v9118_v60 = vld [vmem:[%s11285_s3 + $0x160] sm:$0xff]  }
 0x1ef   : > { %8290 = vmatpush3.bf16.msra.mxu1 %v9072_v61  ;;  %8175 = vmatprep.subr.bf16.mxu0 %v9339_v1  ;;  %v6772_v61 = vcombine.low %v6730_v49, %v6731_v57 }
 0x1f0   : > { %8295 = vmatprep.subr.bf16.mxu1 %v9339_v1 }
 0x1f1   : > { %8172 = vmatmul.mubr.bf16.vlgmr.msra.gmra.mrb[8].mxu0 %v6679_v62  ;;  %v6909_v62 = vcombine.low %v6867_v51, %v6868_v59 }
 0x1f2   : > { %8176 = vmatpush3.bf16.msra.mxu0 %v9074_v63  ;;  %8292 = vmatmul.mubr.bf16.vlgmr.msra.gmra.mrb[8].mxu1 %v6816_v0  ;;  %v9119_v63 = vld [vmem:[%s11285_s3 + $0x168] sm:$0xff]  }
 0x1f3   : > { %8296 = vmatpush3.bf16.msra.mxu1 %v9076_v2  ;;  %8177 = vmatprep.subr.bf16.mxu0 %v9339_v1  ;;  %v9120_v0 = vld [vmem:[%s11285_s3 + $0x168] sm:$0xff]   ;;  %v3705_v2 = vshll.u32 %v6772_v61, 16 }
 0x1f4   : > { %8297 = vmatprep.subr.bf16.mxu1 %v9339_v1  ;;  %8191 = vmatprep.mubr.msk.bf16.mxu0 %vm9340_vm0, %v9339_v1 }
 0x1f5   : > { %8311 = vmatprep.mubr.msk.bf16.mxu1 %vm9340_vm0, %v9339_v1 }
 0x1f6   : > { %8178 = vmatpush3.bf16.msra.mxu0 %v9077_v3  ;;  %v4398_v3 = vshll.u32 %v6909_v62, 16 }
 0x1f7   : > { %8298 = vmatpush3.bf16.msra.mxu1 %v9078_v4  ;;  %8179 = vmatprep.subr.bf16.mxu0 %v9339_v1  ;;  %v9121_v4 = vld [vmem:[%s11285_s3 + $0x170] sm:$0xff]  }
 0x1f8   : > { %8299 = vmatprep.subr.bf16.mxu1 %v9339_v1  ;;  %v4400_v9 = vrot.slane %v4398_v3, 1 }
 0x1fa   : > { %8180 = vmatpush3.bf16.msra.mxu0 %v9079_v5  ;;  %v9122_v5 = vld [vmem:[%s11285_s3 + $0x170] sm:$0xff]  }
 0x1fb   : > { %8300 = vmatpush3.bf16.msra.mxu1 %v9080_v6  ;;  %8181 = vmatprep.subr.bf16.mxu0 %v9339_v1  ;;  %v3703_v6 = vshrl.u32 %v6772_v61, 16 }
 0x1fc   : > { %8301 = vmatprep.subr.bf16.mxu1 %v9339_v1 }
 0x1fe   : > { %8182 = vmatpush3.bf16.msra.mxu0 %v9081_v7  ;;  %v3707_v7 = vrot.slane %v3705_v2, 1 }
 0x1ff   : > { %8302 = vmatpush3.bf16.msra.mxu1 %v9082_v8  ;;  %8183 = vmatprep.subr.bf16.mxu0 %v9339_v1  ;;  %v4396_v8 = vshrl.u32 %v6909_v62, 16  ;;  %v9139_v62 = vld [vmem:[%s11285_s3 + $0x78] sm:$0xff]  }
 0x200   : > { %8303 = vmatprep.subr.bf16.mxu1 %v9339_v1 }
 0x201   : > { %v4401_v13 = vor.u32 %v4400_v9, %v4396_v8 }
 0x202   : > { %8184 = vmatpush3.bf16.msra.mxu0 %v9083_v10  ;;  %v9123_v10 = vld [vmem:[%s11285_s3 + $0x178] sm:$0xff]  }
 0x203   : > { %8304 = vmatpush3.bf16.msra.mxu1 %v9084_v12  ;;  %8185 = vmatprep.subr.bf16.mxu0 %v9339_v1  ;;  %v3708_v12 = vor.u32 %v3707_v7, %v3703_v6 }
 0x204   : > { %8305 = vmatprep.subr.bf16.mxu1 %v9339_v1 }
 0x206   : > { %8186 = vmatpush3.bf16.msra.mxu0 %v9085_v15  ;;  %v9126_v15 = vld [vmem:[%s11285_s3 + $0x40] sm:$0xff]  }
 0x207   : > { %8306 = vmatpush3.bf16.msra.mxu1 %v9086_v16  ;;  %8187 = vmatprep.subr.bf16.mxu0 %v9339_v1  ;;  %v9127_v16 = vld [vmem:[%s11285_s3 + $0x48] sm:$0xff]  }
 0x208   : > { %8307 = vmatprep.subr.bf16.mxu1 %v9339_v1 }
 0x20a   : > { %8188 = vmatpush3.bf16.msra.mxu0 %v9087_v19  ;;  %v9130_v19 = vld [vmem:[%s11285_s3 + $0x50] sm:$0xff]  }
 0x20b   : > { %8308 = vmatpush3.bf16.msra.mxu1 %v9088_v20  ;;  %8189 = vmatprep.subr.bf16.mxu0 %v9339_v1  ;;  %v9131_v20 = vld [vmem:[%s11285_s3 + $0x58] sm:$0xff]  }
 0x20c   : > { %8309 = vmatprep.subr.bf16.mxu1 %v9339_v1 }
 0x20e   : > { %8190 = vmatpush3.bf16.msra.mxu0 %v9089_v25  ;;  %v9134_v25 = vld [vmem:[%s11285_s3 + $0x60] sm:$0xff]  }
 0x20f   : > { %8310 = vmatpush3.bf16.msra.mxu1 %v9090_v26  ;;  %8195 = vmatprep.subr.bf16.mxu0 %v9339_v1  ;;  %v10796_v26 = vld [vmem:[%s9474_s12 + $0x38] sm:$0xf] }
 0x210   : > { %8315 = vmatprep.subr.bf16.mxu1 %v9339_v1 }
 0x211   : > { %8192 = vmatmul.mubr.bf16.vlgmr.msra.gmra.mrb[8].mxu0 %v3482_v27  ;;  %v7056_v27 = vld [vmem:[%s9474_s12 + $0x3c] sm:$0x1]  ;;  %s9227_s12 = scalar_lea.vmem %s11199_s27, 512 }
 0x212   : > { %8196 = vmatpush3.bf16.msra.mxu0 %v9091_v28  ;;  %8312 = vmatmul.mubr.bf16.vlgmr.msra.gmra.mrb[8].mxu1 %v4175_v30  ;;  %v6936_v28 = vcombine.low %v10788_v23, %v6919_v24  ;;  %v9135_v30 = vld [vmem:[%s11285_s3 + $0x68] sm:$0xff]   ;;  %p9228_p12 = scmp.ne.s32.totalorder %s11199_s27, %s9227_s12  ;;  %p9235_p2 = scmp.lt.s32.totalorder %s9233_s7, %s9227_s12 }
 0x213   : > { %8316 = vmatpush3.bf16.msra.mxu1 %v9092_v31  ;;  %8197 = vmatprep.subr.bf16.mxu0 %v9339_v1  ;;  %v7073_v31 = vcombine.low %v10796_v26, %v7056_v27 }
 0x214   : > { %8317 = vmatprep.subr.bf16.mxu1 %v9339_v1  ;;  %8211 = vmatprep.mubr.msk.bf16.mxu0 %vm9340_vm0, %v9339_v1  ;;  %p9229_p13 = pnand %p9228_p12, %p9415_p4  ;;  %p9236_p3 = por %p9235_p2, %p9234_p1 }
 0x215   : > { %8331 = vmatprep.mubr.msk.bf16.mxu1 %vm9340_vm0, %v9339_v1 }
 0x216   : > { %8198 = vmatpush3.bf16.msra.mxu0 %v9093_v32  ;;  %v9136_v32 = vld [vmem:[%s11285_s3 + $0x68] sm:$0xff]   ;;  %p9230_p0 = pneg %p9229_p13 }
 0x217   : > { %8318 = vmatpush3.bf16.msra.mxu1 %v9094_v35  ;;  %8199 = vmatprep.subr.bf16.mxu0 %v9339_v1 }
 0x218   : > { %8319 = vmatprep.subr.bf16.mxu1 %v9339_v1  ;;  %p9237_p5 = pnand %p9236_p3, %p9230_p0 }
 0x21a   : > { %8200 = vmatpush3.bf16.msra.mxu0 %v9095_v36 }
 0x21b   : > { %8320 = vmatpush3.bf16.msra.mxu1 %v9096_v38  ;;  %8201 = vmatprep.subr.bf16.mxu0 %v9339_v1 }
 0x21c   : > { %8321 = vmatprep.subr.bf16.mxu1 %v9339_v1 }
 0x21e   : > { %8202 = vmatpush3.bf16.msra.mxu0 %v9097_v39 }
 0x21f   : > { %8322 = vmatpush3.bf16.msra.mxu1 %v9098_v40  ;;  %8203 = vmatprep.subr.bf16.mxu0 %v9339_v1 }
 0x220   : > { %8323 = vmatprep.subr.bf16.mxu1 %v9339_v1 }
 0x222   : > { %8204 = vmatpush3.bf16.msra.mxu0 %v9099_v41 }
 0x223   : > { %8324 = vmatpush3.bf16.msra.mxu1 %v9100_v42  ;;  %8205 = vmatprep.subr.bf16.mxu0 %v9339_v1  ;;  %v4552_v42 = vshll.u32 %v6936_v28, 16 }
 0x224   : > { %8325 = vmatprep.subr.bf16.mxu1 %v9339_v1 }
 0x225   : > { %v4554_v59 = vrot.slane %v4552_v42, 1  ;;  %v9158_v42 = vld [vmem:[%s11285_s3 + $0x38] sm:$0xff]  }
 0x226   : > { %8206 = vmatpush3.bf16.msra.mxu0 %v9101_v43 }
 0x227   : > { %8326 = vmatpush3.bf16.msra.mxu1 %v9102_v44  ;;  %8207 = vmatprep.subr.bf16.mxu0 %v9339_v1 }
 0x228   : > { %8327 = vmatprep.subr.bf16.mxu1 %v9339_v1 }
 0x22a   : > { %8208 = vmatpush3.bf16.msra.mxu0 %v9103_v45 }
 0x22b   : > { %8328 = vmatpush3.bf16.msra.mxu1 %v9104_v46  ;;  %8209 = vmatprep.subr.bf16.mxu0 %v9339_v1 }
 0x22c   : > { %8329 = vmatprep.subr.bf16.mxu1 %v9339_v1 }
 0x22e   : > { %8210 = vmatpush3.bf16.msra.mxu0 %v9105_v47 }
 0x22f   : > { %8330 = vmatpush3.bf16.msra.mxu1 %v9106_v48  ;;  %8215 = vmatprep.subr.bf16.mxu0 %v9339_v1  ;;  %v9137_v48 = vld [vmem:[%s11285_s3 + $0x70] sm:$0xff]  }
 0x230   : > { %8335 = vmatprep.subr.bf16.mxu1 %v9339_v1 }
 0x231   : > { %8212 = vmatmul.mubr.bf16.vlgmr.msra.gmra.mrb[8].mxu0 %v6730_v49  ;;  %v5245_v49 = vshll.u32 %v7073_v31, 16 }
 0x232   : > { %8216 = vmatpush3.bf16.msra.mxu0 %v9108_v50  ;;  %8332 = vmatmul.mubr.bf16.vlgmr.msra.gmra.mrb[8].mxu1 %v6867_v51 }
 0x233   : > { %8336 = vmatpush3.bf16.msra.mxu1 %v9110_v34  ;;  %8217 = vmatprep.subr.bf16.mxu0 %v9339_v1 }
 0x234   : > { %8337 = vmatprep.subr.bf16.mxu1 %v9339_v1  ;;  %8231 = vmatprep.mubr.msk.bf16.mxu0 %vm9340_vm0, %v9339_v1 }
 0x235   : > { %8351 = vmatprep.mubr.msk.bf16.mxu1 %vm9340_vm0, %v9339_v1 }
 0x236   : > { %8218 = vmatpush3.bf16.msra.mxu0 %v9111_v37 }
 0x237   : > { %8338 = vmatpush3.bf16.msra.mxu1 %v9112_v52  ;;  %8219 = vmatprep.subr.bf16.mxu0 %v9339_v1  ;;  %v9138_v52 = vld [vmem:[%s11285_s3 + $0x70] sm:$0xff]  }
 0x238   : > { %8339 = vmatprep.subr.bf16.mxu1 %v9339_v1 }
 0x23a   : > { %8220 = vmatpush3.bf16.msra.mxu0 %v9113_v53 }
 0x23b   : > { %8340 = vmatpush3.bf16.msra.mxu1 %v9114_v54  ;;  %8221 = vmatprep.subr.bf16.mxu0 %v9339_v1 }
 0x23c   : > { %8341 = vmatprep.subr.bf16.mxu1 %v9339_v1 }
 0x23e   : > { %8222 = vmatpush3.bf16.msra.mxu0 %v9115_v55 }
 0x23f   : > { %8342 = vmatpush3.bf16.msra.mxu1 %v9116_v56  ;;  %8223 = vmatprep.subr.bf16.mxu0 %v9339_v1 }
 0x240   : > { %8343 = vmatprep.subr.bf16.mxu1 %v9339_v1 }
 0x242   : > { %8224 = vmatpush3.bf16.msra.mxu0 %v9117_v58  ;;  %v4550_v58 = vshrl.u32 %v6936_v28, 16  ;;  %v9148_v28 = vld [vmem:[%s11285_s3 + $0x10] sm:$0xff]  }
 0x243   : > { %8344 = vmatpush3.bf16.msra.mxu1 %v9118_v60  ;;  %8225 = vmatprep.subr.bf16.mxu0 %v9339_v1 }
 0x244   : > { %8345 = vmatprep.subr.bf16.mxu1 %v9339_v1  ;;  %v4555_v9 = vor.u32 %v4554_v59, %v4550_v58  ;;  %v9178_v58 = vld [vmem:[%s11285_s3 + $0xc0] sm:$0xff]   ;;  %v9179_v59 = vld [vmem:[%s11285_s3 + $0xc8] sm:$0xff]  }
 0x246   : > { %8226 = vmatpush3.bf16.msra.mxu0 %v9119_v63  ;;  %v5243_v63 = vshrl.u32 %v7073_v31, 16  ;;  %v9150_v31 = vld [vmem:[%s11285_s3 + $0x18] sm:$0xff]  }
 0x247   : > { %8346 = vmatpush3.bf16.msra.mxu1 %v9120_v0  ;;  %8227 = vmatprep.subr.bf16.mxu0 %v9339_v1  ;;  %v5247_v0 = vrot.slane %v5245_v49, 1  ;;  %v9167_v49 = vld [vmem:[%s11285_s3 + $0xa0] sm:$0xff]  }
 0x248   : > { %8347 = vmatprep.subr.bf16.mxu1 %v9339_v1 }
 0x24a   : > { %8228 = vmatpush3.bf16.msra.mxu0 %v9121_v4  ;;  %v9140_v4 = vld [vmem:[%s11285_s3 + $0x78] sm:$0xff]  }
 0x24b   : > { %8348 = vmatpush3.bf16.msra.mxu1 %v9122_v5  ;;  %8229 = vmatprep.subr.bf16.mxu0 %v9339_v1 }
 0x24c   : > { %8349 = vmatprep.subr.bf16.mxu1 %v9339_v1 }
 0x24e   : > { %8230 = vmatpush3.bf16.msra.mxu0 %v9123_v10 }
 0x24f   : > { %8350 = vmatpush3.bf16.msra.mxu1 %v9124_v11  ;;  %8355 = vmatprep.subr.bf16.mxu0 %v9339_v1 }
 0x250   : > { %8475 = vmatprep.subr.bf16.mxu1 %v9339_v1 }
 0x251   : > { %8232 = vmatmul.mubr.bf16.vlgmr.msra.gmra.mrb[8].mxu0 %v3708_v12  ;;  %v9142_v12 = vld [vmem:[%s11285_s3] sm:$0xff]  }
 0x252   : > { %8352 = vmatmul.mubr.bf16.vlgmr.msra.gmra.mrb[8].mxu1 %v4401_v13  ;;  %8356 = vmatpush3.bf16.msra.mxu0 %v9125_v14  ;;  %v5248_v13 = vor.u32 %v5247_v0, %v5243_v63  ;;  %v9183_v63 = vld [vmem:[%s11285_s3 + $0xd8] sm:$0xff]  }
 0x253   : > { %8476 = vmatpush3.bf16.msra.mxu1 %v9126_v15  ;;  %8357 = vmatprep.subr.bf16.mxu0 %v9339_v1  ;;  %v9184_v0 = vld [vmem:[%s11285_s3 + $0xd8] sm:$0xff]  }
 0x254   : > { %8477 = vmatprep.subr.bf16.mxu1 %v9339_v1  ;;  %8371 = vmatprep.mubr.msk.bf16.mxu0 %vm9340_vm0, %v9339_v1 }
 0x255   : > { %8491 = vmatprep.mubr.msk.bf16.mxu1 %vm9340_vm0, %v9339_v1 }
 0x256   : > { %8358 = vmatpush3.bf16.msra.mxu0 %v9127_v16  ;;  %v9144_v16 = vld [vmem:[%s11285_s3] sm:$0xff]  }
 0x257   : > { %8478 = vmatpush3.bf16.msra.mxu1 %v9128_v17  ;;  %8359 = vmatprep.subr.bf16.mxu0 %v9339_v1 }
 0x258   : > { %8479 = vmatprep.subr.bf16.mxu1 %v9339_v1 }
 0x25a   : > { %8360 = vmatpush3.bf16.msra.mxu0 %v9129_v18 }
 0x25b   : > { %8480 = vmatpush3.bf16.msra.mxu1 %v9130_v19  ;;  %8361 = vmatprep.subr.bf16.mxu0 %v9339_v1 }
 0x25c   : > { %8481 = vmatprep.subr.bf16.mxu1 %v9339_v1 }
 0x25e   : > { %8362 = vmatpush3.bf16.msra.mxu0 %v9131_v20 }
 0x25f   : > { %8482 = vmatpush3.bf16.msra.mxu1 %v9132_v21  ;;  %8363 = vmatprep.subr.bf16.mxu0 %v9339_v1  ;;  %v9145_v21 = vld [vmem:[%s11285_s3 + $0x8] sm:$0xff]  }
 0x260   : > { %8483 = vmatprep.subr.bf16.mxu1 %v9339_v1 }
 0x262   : > { %8364 = vmatpush3.bf16.msra.mxu0 %v9133_v22 }
 0x263   : > { %8484 = vmatpush3.bf16.msra.mxu1 %v9134_v25  ;;  %8365 = vmatprep.subr.bf16.mxu0 %v9339_v1 }
 0x264   : > { %v2406_v35 = vpop.f32.mrb[4].mxu0  ;;  %8485 = vmatprep.subr.bf16.mxu1 %v9339_v1 }
 0x265   : > { %v2413_v36 = vpack.c.bf16 %v2406_v35, %v2406_v35  ;;  %v2415_v38 = vrot.slane %v2406_v35, 4  ;;  %v2422_v39 = vmul.f32 %v2406_v35, %v2406_v35  ;;  %v3099_v40 = vpop.f32.mrb[4].mxu1  ;;  %v7993_v41 = vpop.f32.mrb[5].mxu0 }
 0x266   : > { %v3106_v43 = vpack.c.bf16 %v3099_v40, %v3099_v40  ;;  %v3108_v44 = vrot.slane %v3099_v40, 4  ;;  %v3115_v45 = vmul.f32 %v3099_v40, %v3099_v40  ;;  %v8113_v46 = vpop.f32.mrb[5].mxu1  ;;  %v2409_v47 = vpop.f32.mrb[6].mxu0  ;;  %8366 = vmatpush3.bf16.msra.mxu0 %v9135_v30  ;;  %v9149_v30 = vld [vmem:[%s11285_s3 + $0x18] sm:$0xff]  }
 0x267   : > { %2414 = vst [vmem:[%s10377_s11 + $0x8] sm:$0xf] %v2413_v36  ;;  %v2416_v50 = vadd.f32 %v2415_v38, %v2406_v35  ;;  %v2423_v51 = vrot.slane %v2422_v39, 4  ;;  %v3102_v34 = vpop.f32.mrb[6].mxu1  ;;  %8486 = vmatpush3.bf16.msra.mxu1 %v9136_v32  ;;  %v7994_v37 = vpop.f32.mrb[7].mxu0  ;;  %8367 = vmatprep.subr.bf16.mxu0 %v9339_v1  ;;  %v9151_v32 = vld [vmem:[%s11285_s3 + $0x20] sm:$0xff]  }
 0x268   : > { %3107 = vst [vmem:[%s10377_s11 + $0xc] sm:$0xf] %v3106_v43  ;;  %v3109_v53 = vadd.f32 %v3108_v44, %v3099_v40  ;;  %v3116_v54 = vrot.slane %v3115_v45, 4  ;;  %v8114_v55 = vpop.f32.mrb[7].mxu1  ;;  %8487 = vmatprep.subr.bf16.mxu1 %v9339_v1  ;;  %v9152_v35 = vld [vmem:[%s11285_s3 + $0x20] sm:$0xff]   ;;  %v9153_v36 = vld [vmem:[%s11285_s3 + $0x28] sm:$0xff]  }
 0x269   : > { %v2417_v56 = vrot.slane %v2416_v50, 2  ;;  %v2424_v57 = vadd.f32 %v2423_v51, %v2422_v39  ;;  %v9154_v38 = vld [vmem:[%s11285_s3 + $0x28] sm:$0xff]   ;;  %v9155_v39 = vld [vmem:[%s11285_s3 + $0x30] sm:$0xff]   ;;  %v9157_v41 = vld [vmem:[%s11285_s3 + $0x38] sm:$0xff]  }
 0x26a   : > { %v3110_v60 = vrot.slane %v3109_v53, 2  ;;  %v3117_v61 = vadd.f32 %v3116_v54, %v3115_v45  ;;  %8368 = vmatpush3.bf16.msra.mxu0 %v9137_v48  ;;  %v9156_v40 = vld [vmem:[%s11285_s3 + $0x30] sm:$0xff]   ;;  %v9159_v43 = vld [vmem:[%s11285_s3 + $0x80] sm:$0xff]   ;;  %v9161_v45 = vld [vmem:[%s11285_s3 + $0x88] sm:$0xff]  }
 0x26b   : > { %v2418_v2 = vadd.f32 %v2417_v56, %v2416_v50  ;;  %v2425_v3 = vrot.slane %v2424_v57, 2  ;;  %8488 = vmatpush3.bf16.msra.mxu1 %v9138_v52  ;;  %8369 = vmatprep.subr.bf16.mxu0 %v9339_v1  ;;  %v9160_v44 = vld [vmem:[%s11285_s3 + $0x80] sm:$0xff]   ;;  %v9162_v46 = vld [vmem:[%s11285_s3 + $0x88] sm:$0xff]   ;;  %v9165_v47 = vld [vmem:[%s11285_s3 + $0x98] sm:$0xff]  }
 0x26c   : > { %v3111_v5 = vadd.f32 %v3110_v60, %v3109_v53  ;;  %v3118_v6 = vrot.slane %v3117_v61, 2  ;;  %8489 = vmatprep.subr.bf16.mxu1 %v9339_v1  ;;  %v9166_v48 = vld [vmem:[%s11285_s3 + $0x98] sm:$0xff]   ;;  %v9168_v50 = vld [vmem:[%s11285_s3 + $0xa0] sm:$0xff]   ;;  %v9169_v51 = vld [vmem:[%s11285_s3 + $0xa8] sm:$0xff]  }
 0x26d   : > { %v2419_v7 = vrot.slane %v2418_v2, 1  ;;  %v2426_v8 = vadd.f32 %v2425_v3, %v2424_v57  ;;  %v9170_v34 = vld [vmem:[%s11285_s3 + $0xa8] sm:$0xff]   ;;  %v9171_v37 = vld [vmem:[%s11285_s3 + $0xb0] sm:$0xff]   ;;  %v9173_v53 = vld [vmem:[%s11285_s3 + $0xb8] sm:$0xff]  }
 0x26e   : > { %v3112_v10 = vrot.slane %v3111_v5, 1  ;;  %v3119_v11 = vadd.f32 %v3118_v6, %v3117_v61  ;;  %8370 = vmatpush3.bf16.msra.mxu0 %v9139_v62  ;;  %v9172_v52 = vld [vmem:[%s11285_s3 + $0xb0] sm:$0xff]   ;;  %v9174_v54 = vld [vmem:[%s11285_s3 + $0xb8] sm:$0xff]   ;;  %v9176_v56 = vld [vmem:[%s11285_s3 + $0xc0] sm:$0xff]  }
 0x26f   : > { %v2420_v14 = vadd.f32 %v2419_v7, %v2418_v2  ;;  %v2427_v15 = vrot.slane %v2426_v8, 1  ;;  %8490 = vmatpush3.bf16.msra.mxu1 %v9140_v4  ;;  %8375 = vmatprep.subr.bf16.mxu0 %v9339_v1  ;;  %v6953_v55 = vld [vmem:[%s9652_s13 + $0x30] sm:$0xf]  ;;  %v7090_v57 = vld [vmem:[%s9652_s13 + $0x38] sm:$0xf]  ;;  %v9180_v60 = vld [vmem:[%s11285_s3 + $0xc8] sm:$0xff]  }
 0x270   : > { %v3120_v17 = vrot.slane %v3119_v11, 1  ;;  %8495 = vmatprep.subr.bf16.mxu1 %v9339_v1  ;;  %v3113_v20 = vadd.f32 %v3112_v10, %v3111_v5  ;;  %v9181_v61 = vld [vmem:[%s11285_s3 + $0xd0] sm:$0xff]   ;;  %v9185_v3 = vld [vmem:[%s11285_s3 + $0xe0] sm:$0xff]   ;;  %v7091_v4 = vld [vmem:[%s9652_s13 + $0x3c] sm:$0x1] }
 0x271   : > { %v2421_v18 = vadd.f32 %v2420_v14, %v10402_v29  ;;  %v2428_v19 = vadd.f32 %v2427_v15, %v2426_v8  ;;  %8372 = vmatmul.mubr.bf16.vlgmr.msra.gmra.mrb[12].mxu0 %v4555_v9  ;;  %v9146_v29 = vld [vmem:[%s11285_s3 + $0x8] sm:$0xff]   ;;  %v9182_v62 = vld [vmem:[%s11285_s3 + $0xd0] sm:$0xff]   ;;  %v9186_v5 = vld [vmem:[%s11285_s3 + $0xe0] sm:$0xff]   ;;  %v7132_v7 = vcombine.low %v7090_v57, %v7091_v4 }
 0x272   : > { %8376 = vmatpush3.bf16.msra.mxu0 %v9142_v12  ;;  %8492 = vmatmul.mubr.bf16.vlgmr.msra.gmra.mrb[12].mxu1 %v5248_v13  ;;  %v3121_v25 = vadd.f32 %v3120_v17, %v3119_v11  ;;  %v6954_v2 = vld [vmem:[%s9652_s13 + $0x34] sm:$0x1]  ;;  %v9187_v8 = vld [vmem:[%s11285_s3 + $0xe8] sm:$0xff]   ;;  %v9226_v4 = vld [vmem:[%s11285_s3 + $0x178] sm:$0xff]  }
 0x273   : > { %v2429_v22 = vadd.f32 %v2428_v19, %v10411_v33  ;;  %v10841_v24 = vadd.f32 %v3113_v20, %v2421_v18  ;;  %8496 = vmatpush3.bf16.msra.mxu1 %v9144_v16  ;;  %8377 = vmatprep.subr.bf16.mxu0 %v9339_v1  ;;  %v9147_v33 = vld [vmem:[%s11285_s3 + $0x10] sm:$0xff]   ;;  %v6995_v6 = vcombine.low %v6953_v55, %v6954_v2  ;;  %v9188_v9 = vld [vmem:[%s11285_s3 + $0xe8] sm:$0xff]   ;;  %v5558_v11 = vshll.u32 %v7132_v7, 16  ;;  %v9191_v18 = vld [vmem:[%s11285_s3 + $0xf8] sm:$0xff]  }
 0x274   : > { %8497 = vmatprep.subr.bf16.mxu1 %v9339_v1  ;;  %8391 = vmatprep.mubr.msk.bf16.mxu0 %vm9340_vm0, %v9339_v1  ;;  %v9189_v12 = vld [vmem:[%s11285_s3 + $0xf0] sm:$0xff]   ;;  %v5556_v16 = vshrl.u32 %v7132_v7, 16  ;;  %v9192_v19 = vld [vmem:[%s11285_s3 + $0xf8] sm:$0xff]  }
 0x275   : > { %v10850_v27 = vadd.f32 %v3121_v25, %v2429_v22  ;;  %8511 = vmatprep.mubr.msk.bf16.mxu1 %vm9340_vm0, %v9339_v1  ;;  %v4865_v10 = vshll.u32 %v6995_v6, 16  ;;  %v9190_v13 = vld [vmem:[%s11285_s3 + $0xf0] sm:$0xff]   ;;  %v4863_v14 = vshrl.u32 %v6995_v6, 16  ;;  %v5560_v17 = vrot.slane %v5558_v11, 1  ;;  %v9194_v25 = vld [vmem:[%s11285_s3 + $0x100] sm:$0xff]  }
 0x276   : > { %8378 = vmatpush3.bf16.msra.mxu0 %v9145_v21  ;;  %v9193_v21 = vld [vmem:[%s11285_s3 + $0x100] sm:$0xff]  }
 0x277   : > { %8498 = vmatpush3.bf16.msra.mxu1 %v9146_v29  ;;  %8379 = vmatprep.subr.bf16.mxu0 %v9339_v1  ;;  %v4867_v15 = vrot.slane %v4865_v10, 1  ;;  %v5561_v22 = vor.u32 %v5560_v17, %v5556_v16  ;;  %v9195_v29 = vld [vmem:[%s11285_s3 + $0x108] sm:$0xff]  }
 0x278   : > { %8499 = vmatprep.subr.bf16.mxu1 %v9339_v1 }
 0x279   : > { %v4868_v20 = vor.u32 %v4867_v15, %v4863_v14 }
 0x27a   : > { %8380 = vmatpush3.bf16.msra.mxu0 %v9147_v33  ;;  %v9196_v33 = vld [vmem:[%s11285_s3 + $0x108] sm:$0xff]  }
 0x27b   : > { %8500 = vmatpush3.bf16.msra.mxu1 %v9148_v28  ;;  %8381 = vmatprep.subr.bf16.mxu0 %v9339_v1  ;;  %v9197_v28 = vld [vmem:[%s11285_s3 + $0x110] sm:$0xff]  }
 0x27c   : > { %8501 = vmatprep.subr.bf16.mxu1 %v9339_v1 }
 0x27e   : > { %8382 = vmatpush3.bf16.msra.mxu0 %v9149_v30  ;;  %v9198_v30 = vld [vmem:[%s11285_s3 + $0x110] sm:$0xff]  }
 0x27f   : > { %8502 = vmatpush3.bf16.msra.mxu1 %v9150_v31  ;;  %8383 = vmatprep.subr.bf16.mxu0 %v9339_v1  ;;  %v9199_v31 = vld [vmem:[%s11285_s3 + $0x118] sm:$0xff]  }
 0x280   : > { %8503 = vmatprep.subr.bf16.mxu1 %v9339_v1 }
 0x282   : > { %8384 = vmatpush3.bf16.msra.mxu0 %v9151_v32  ;;  %v9200_v32 = vld [vmem:[%s11285_s3 + $0x118] sm:$0xff]  }
 0x283   : > { %8504 = vmatpush3.bf16.msra.mxu1 %v9152_v35  ;;  %8385 = vmatprep.subr.bf16.mxu0 %v9339_v1  ;;  %v9201_v35 = vld [vmem:[%s11285_s3 + $0x120] sm:$0xff]  }
 0x284   : > { %8505 = vmatprep.subr.bf16.mxu1 %v9339_v1 }
 0x286   : > { %8386 = vmatpush3.bf16.msra.mxu0 %v9153_v36  ;;  %v9202_v36 = vld [vmem:[%s11285_s3 + $0x120] sm:$0xff]  }
 0x287   : > { %8506 = vmatpush3.bf16.msra.mxu1 %v9154_v38  ;;  %8387 = vmatprep.subr.bf16.mxu0 %v9339_v1  ;;  %v9203_v38 = vld [vmem:[%s11285_s3 + $0x128] sm:$0xff]  }
 0x288   : > { %8507 = vmatprep.subr.bf16.mxu1 %v9339_v1 }
 0x28a   : > { %8388 = vmatpush3.bf16.msra.mxu0 %v9155_v39  ;;  %v9204_v39 = vld [vmem:[%s11285_s3 + $0x128] sm:$0xff]  }
 0x28b   : > { %8508 = vmatpush3.bf16.msra.mxu1 %v9156_v40  ;;  %8389 = vmatprep.subr.bf16.mxu0 %v9339_v1  ;;  %v9205_v40 = vld [vmem:[%s11285_s3 + $0x130] sm:$0xff]  }
 0x28c   : > { %8509 = vmatprep.subr.bf16.mxu1 %v9339_v1 }
 0x28e   : > { %8390 = vmatpush3.bf16.msra.mxu0 %v9157_v41  ;;  %v9206_v41 = vld [vmem:[%s11285_s3 + $0x130] sm:$0xff]  }
 0x28f   : > { %8510 = vmatpush3.bf16.msra.mxu1 %v9158_v42  ;;  %8395 = vmatprep.subr.bf16.mxu0 %v9339_v1  ;;  %v9207_v42 = vld [vmem:[%s11285_s3 + $0x138] sm:$0xff]  }
 0x290   : > { %8515 = vmatprep.subr.bf16.mxu1 %v9339_v1 }
 0x291   : > { %8392 = vmatmul.mubr.bf16.vlgmr.msra.gmra.mrb[12].mxu0 %v10788_v23  ;;  %v9163_v23 = vld [vmem:[%s11285_s3 + $0x90] sm:$0xff]  }
 0x292   : > { %8396 = vmatpush3.bf16.msra.mxu0 %v9159_v43  ;;  %8512 = vmatmul.mubr.bf16.vlgmr.msra.gmra.mrb[12].mxu1 %v10796_v26  ;;  %v9164_v26 = vld [vmem:[%s11285_s3 + $0x90] sm:$0xff]   ;;  %v9208_v43 = vld [vmem:[%s11285_s3 + $0x138] sm:$0xff]  }
 0x293   : > { %8516 = vmatpush3.bf16.msra.mxu1 %v9160_v44  ;;  %8397 = vmatprep.subr.bf16.mxu0 %v9339_v1  ;;  %v7004_v44 = vld [vmem:[%s9804_s10 + $0x30] sm:$0xf] }
 0x294   : > { %8517 = vmatprep.subr.bf16.mxu1 %v9339_v1  ;;  %8411 = vmatprep.mubr.msk.bf16.mxu0 %vm9340_vm0, %v9339_v1 }
 0x295   : > { %8531 = vmatprep.mubr.msk.bf16.mxu1 %vm9340_vm0, %v9339_v1 }
 0x296   : > { %8398 = vmatpush3.bf16.msra.mxu0 %v9161_v45  ;;  %v9210_v45 = vld [vmem:[%s11285_s3 + $0x140] sm:$0xff]  }
 0x297   : > { %8518 = vmatpush3.bf16.msra.mxu1 %v9162_v46  ;;  %8399 = vmatprep.subr.bf16.mxu0 %v9339_v1  ;;  %v7141_v46 = vld [vmem:[%s9804_s10 + $0x38] sm:$0xf] }
 0x298   : > { %8519 = vmatprep.subr.bf16.mxu1 %v9339_v1 }
 0x29a   : > { %8400 = vmatpush3.bf16.msra.mxu0 %v9163_v23  ;;  %v9212_v23 = vld [vmem:[%s11285_s3 + $0x140] sm:$0xff]  }
 0x29b   : > { %8520 = vmatpush3.bf16.msra.mxu1 %v9164_v26  ;;  %8401 = vmatprep.subr.bf16.mxu0 %v9339_v1  ;;  %v9213_v26 = vld [vmem:[%s11285_s3 + $0x148] sm:$0xff]  }
 0x29c   : > { %8521 = vmatprep.subr.bf16.mxu1 %v9339_v1 }
 0x29e   : > { %8402 = vmatpush3.bf16.msra.mxu0 %v9165_v47  ;;  %v9214_v47 = vld [vmem:[%s11285_s3 + $0x148] sm:$0xff]  }
 0x29f   : > { %8522 = vmatpush3.bf16.msra.mxu1 %v9166_v48  ;;  %8403 = vmatprep.subr.bf16.mxu0 %v9339_v1  ;;  %v9215_v48 = vld [vmem:[%s11285_s3 + $0x150] sm:$0xff]  }
 0x2a0   : > { %8523 = vmatprep.subr.bf16.mxu1 %v9339_v1 }
 0x2a2   : > { %8404 = vmatpush3.bf16.msra.mxu0 %v9167_v49  ;;  %v9216_v49 = vld [vmem:[%s11285_s3 + $0x150] sm:$0xff]  }
 0x2a3   : > { %8524 = vmatpush3.bf16.msra.mxu1 %v9168_v50  ;;  %8405 = vmatprep.subr.bf16.mxu0 %v9339_v1  ;;  %v9217_v50 = vld [vmem:[%s11285_s3 + $0x158] sm:$0xff]  }
 0x2a4   : > { %8525 = vmatprep.subr.bf16.mxu1 %v9339_v1 }
 0x2a6   : > { %8406 = vmatpush3.bf16.msra.mxu0 %v9169_v51  ;;  %v9218_v51 = vld [vmem:[%s11285_s3 + $0x158] sm:$0xff]  }
 0x2a7   : > { %8526 = vmatpush3.bf16.msra.mxu1 %v9170_v34  ;;  %8407 = vmatprep.subr.bf16.mxu0 %v9339_v1  ;;  %v7005_v34 = vld [vmem:[%s9804_s10 + $0x34] sm:$0x1] }
 0x2a8   : > { %8527 = vmatprep.subr.bf16.mxu1 %v9339_v1 }
 0x2aa   : > { %8408 = vmatpush3.bf16.msra.mxu0 %v9171_v37  ;;  %v9219_v37 = vld [vmem:[%s11285_s3 + $0x160] sm:$0xff]  }
 0x2ab   : > { %8528 = vmatpush3.bf16.msra.mxu1 %v9172_v52  ;;  %8409 = vmatprep.subr.bf16.mxu0 %v9339_v1  ;;  %v7142_v52 = vld [vmem:[%s9804_s10 + $0x3c] sm:$0x1] }
 0x2ac   : > { %8529 = vmatprep.subr.bf16.mxu1 %v9339_v1 }
 0x2ae   : > { %8410 = vmatpush3.bf16.msra.mxu0 %v9173_v53  ;;  %v9220_v53 = vld [vmem:[%s11285_s3 + $0x160] sm:$0xff]  }
 0x2af   : > { %8530 = vmatpush3.bf16.msra.mxu1 %v9174_v54  ;;  %8415 = vmatprep.subr.bf16.mxu0 %v9339_v1  ;;  %v7046_v54 = vcombine.low %v7004_v44, %v7005_v34 }
 0x2b0   : > { %8535 = vmatprep.subr.bf16.mxu1 %v9339_v1 }
 0x2b1   : > { %8412 = vmatmul.mubr.bf16.vlgmr.msra.gmra.mrb[12].mxu0 %v6953_v55  ;;  %v7183_v55 = vcombine.low %v7141_v46, %v7142_v52 }
 0x2b2   : > { %8416 = vmatpush3.bf16.msra.mxu0 %v9176_v56  ;;  %8532 = vmatmul.mubr.bf16.vlgmr.msra.gmra.mrb[12].mxu1 %v7090_v57  ;;  %v9221_v56 = vld [vmem:[%s11285_s3 + $0x168] sm:$0xff]  }
 0x2b3   : > { %8536 = vmatpush3.bf16.msra.mxu1 %v9178_v58  ;;  %8417 = vmatprep.subr.bf16.mxu0 %v9339_v1  ;;  %v9222_v57 = vld [vmem:[%s11285_s3 + $0x168] sm:$0xff]   ;;  %v5091_v58 = vshll.u32 %v7046_v54, 16 }
 0x2b4   : > { %8537 = vmatprep.subr.bf16.mxu1 %v9339_v1  ;;  %8431 = vmatprep.mubr.msk.bf16.mxu0 %vm9340_vm0, %v9339_v1 }
 0x2b5   : > { %8551 = vmatprep.mubr.msk.bf16.mxu1 %vm9340_vm0, %v9339_v1 }
 0x2b6   : > { %8418 = vmatpush3.bf16.msra.mxu0 %v9179_v59  ;;  %v5784_v59 = vshll.u32 %v7183_v55, 16 }
 0x2b7   : > { %8538 = vmatpush3.bf16.msra.mxu1 %v9180_v60  ;;  %8419 = vmatprep.subr.bf16.mxu0 %v9339_v1  ;;  %v9223_v60 = vld [vmem:[%s11285_s3 + $0x170] sm:$0xff]  }
 0x2b8   : > { %8539 = vmatprep.subr.bf16.mxu1 %v9339_v1  ;;  %v5786_v2 = vrot.slane %v5784_v59, 1 }
 0x2ba   : > { %8420 = vmatpush3.bf16.msra.mxu0 %v9181_v61  ;;  %v9224_v61 = vld [vmem:[%s11285_s3 + $0x170] sm:$0xff]  }
 0x2bb   : > { %8540 = vmatpush3.bf16.msra.mxu1 %v9182_v62  ;;  %8421 = vmatprep.subr.bf16.mxu0 %v9339_v1  ;;  %v5089_v62 = vshrl.u32 %v7046_v54, 16 }
 0x2bc   : > { %8541 = vmatprep.subr.bf16.mxu1 %v9339_v1 }
 0x2be   : > { %8422 = vmatpush3.bf16.msra.mxu0 %v9183_v63  ;;  %v5093_v63 = vrot.slane %v5091_v58, 1 }
 0x2bf   : > { %8542 = vmatpush3.bf16.msra.mxu1 %v9184_v0  ;;  %8423 = vmatprep.subr.bf16.mxu0 %v9339_v1  ;;  %v5782_v0 = vshrl.u32 %v7183_v55, 16 }
 0x2c0   : > { %8543 = vmatprep.subr.bf16.mxu1 %v9339_v1 }
 0x2c1   : > { %v5787_v6 = vor.u32 %v5786_v2, %v5782_v0 }
 0x2c2   : > { %8424 = vmatpush3.bf16.msra.mxu0 %v9185_v3  ;;  %v9225_v3 = vld [vmem:[%s11285_s3 + $0x178] sm:$0xff]  }
 0x2c3   : > { %8544 = vmatpush3.bf16.msra.mxu1 %v9186_v5  ;;  %8425 = vmatprep.subr.bf16.mxu0 %v9339_v1  ;;  %v5094_v5 = vor.u32 %v5093_v63, %v5089_v62 }
 0x2c4   : > { %8545 = vmatprep.subr.bf16.mxu1 %v9339_v1 }
 0x2c6   : > { %8426 = vmatpush3.bf16.msra.mxu0 %v9187_v8 }
 0x2c7   : > { %8546 = vmatpush3.bf16.msra.mxu1 %v9188_v9  ;;  %8427 = vmatprep.subr.bf16.mxu0 %v9339_v1 }
 0x2c8   : > { %8547 = vmatprep.subr.bf16.mxu1 %v9339_v1 }
 0x2ca   : > { %8428 = vmatpush3.bf16.msra.mxu0 %v9189_v12 }
 0x2cb   : > { %8548 = vmatpush3.bf16.msra.mxu1 %v9190_v13  ;;  %8429 = vmatprep.subr.bf16.mxu0 %v9339_v1 }
 0x2cc   : > { %8549 = vmatprep.subr.bf16.mxu1 %v9339_v1 }
 0x2ce   : > { %8430 = vmatpush3.bf16.msra.mxu0 %v9191_v18 }
 0x2cf   : > { %8550 = vmatpush3.bf16.msra.mxu1 %v9192_v19  ;;  %8435 = vmatprep.subr.bf16.mxu0 %v9339_v1 }
 0x2d0   : > { %8555 = vmatprep.subr.bf16.mxu1 %v9339_v1 }
 0x2d1   : > { %8432 = vmatmul.mubr.bf16.vlgmr.msra.gmra.mrb[12].mxu0 %v4868_v20 }
 0x2d2   : > { %8436 = vmatpush3.bf16.msra.mxu0 %v9193_v21  ;;  %8552 = vmatmul.mubr.bf16.vlgmr.msra.gmra.mrb[12].mxu1 %v5561_v22 }
 0x2d3   : > { %8556 = vmatpush3.bf16.msra.mxu1 %v9194_v25  ;;  %8437 = vmatprep.subr.bf16.mxu0 %v9339_v1 }
 0x2d4   : > { %8557 = vmatprep.subr.bf16.mxu1 %v9339_v1  ;;  %8451 = vmatprep.mubr.msk.bf16.mxu0 %vm9340_vm0, %v9339_v1 }
 0x2d5   : > { %8571 = vmatprep.mubr.msk.bf16.mxu1 %vm9340_vm0, %v9339_v1 }
 0x2d6   : > { %8438 = vmatpush3.bf16.msra.mxu0 %v9195_v29 }
 0x2d7   : > { %8558 = vmatpush3.bf16.msra.mxu1 %v9196_v33  ;;  %8439 = vmatprep.subr.bf16.mxu0 %v9339_v1 }
 0x2d8   : > { %8559 = vmatprep.subr.bf16.mxu1 %v9339_v1 }
 0x2da   : > { %8440 = vmatpush3.bf16.msra.mxu0 %v9197_v28 }
 0x2db   : > { %8560 = vmatpush3.bf16.msra.mxu1 %v9198_v30  ;;  %8441 = vmatprep.subr.bf16.mxu0 %v9339_v1 }
 0x2dc   : > { %8561 = vmatprep.subr.bf16.mxu1 %v9339_v1 }
 0x2de   : > { %8442 = vmatpush3.bf16.msra.mxu0 %v9199_v31 }
 0x2df   : > { %8562 = vmatpush3.bf16.msra.mxu1 %v9200_v32  ;;  %8443 = vmatprep.subr.bf16.mxu0 %v9339_v1 }
 0x2e0   : > { %8563 = vmatprep.subr.bf16.mxu1 %v9339_v1 }
 0x2e2   : > { %8444 = vmatpush3.bf16.msra.mxu0 %v9201_v35 }
 0x2e3   : > { %8564 = vmatpush3.bf16.msra.mxu1 %v9202_v36  ;;  %8445 = vmatprep.subr.bf16.mxu0 %v9339_v1 }
 0x2e4   : > { %8565 = vmatprep.subr.bf16.mxu1 %v9339_v1 }
 0x2e6   : > { %8446 = vmatpush3.bf16.msra.mxu0 %v9203_v38 }
 0x2e7   : > { %8566 = vmatpush3.bf16.msra.mxu1 %v9204_v39  ;;  %8447 = vmatprep.subr.bf16.mxu0 %v9339_v1 }
 0x2e8   : > { %8567 = vmatprep.subr.bf16.mxu1 %v9339_v1 }
 0x2ea   : > { %8448 = vmatpush3.bf16.msra.mxu0 %v9205_v40 }
 0x2eb   : > { %8568 = vmatpush3.bf16.msra.mxu1 %v9206_v41  ;;  %8449 = vmatprep.subr.bf16.mxu0 %v9339_v1 }
 0x2ec   : > { %8569 = vmatprep.subr.bf16.mxu1 %v9339_v1 }
 0x2ee   : > { %8450 = vmatpush3.bf16.msra.mxu0 %v9207_v42 }
 0x2ef   : > { %8570 = vmatpush3.bf16.msra.mxu1 %v9208_v43  ;;  %8455 = vmatprep.subr.bf16.mxu0 %v9339_v1 }
 0x2f0   : > { %8575 = vmatprep.subr.bf16.mxu1 %v9339_v1 }
 0x2f1   : > { %8452 = vmatmul.mubr.bf16.vlgmr.msra.gmra.mrb[12].mxu0 %v7004_v44 }
 0x2f2   : > { %8456 = vmatpush3.bf16.msra.mxu0 %v9210_v45  ;;  %8572 = vmatmul.mubr.bf16.vlgmr.msra.gmra.mrb[12].mxu1 %v7141_v46 }
 0x2f3   : > { %8576 = vmatpush3.bf16.msra.mxu1 %v9212_v23  ;;  %8457 = vmatprep.subr.bf16.mxu0 %v9339_v1 }
 0x2f4   : > { %8577 = vmatprep.subr.bf16.mxu1 %v9339_v1  ;;  %8471 = vmatprep.mubr.msk.bf16.mxu0 %vm9340_vm0, %v9339_v1 }
 0x2f5   : > { %8591 = vmatprep.mubr.msk.bf16.mxu1 %vm9340_vm0, %v9339_v1 }
 0x2f6   : > { %8458 = vmatpush3.bf16.msra.mxu0 %v9213_v26 }
 0x2f7   : > { %8578 = vmatpush3.bf16.msra.mxu1 %v9214_v47  ;;  %8459 = vmatprep.subr.bf16.mxu0 %v9339_v1 }
 0x2f8   : > { %8579 = vmatprep.subr.bf16.mxu1 %v9339_v1 }
 0x2fa   : > { %8460 = vmatpush3.bf16.msra.mxu0 %v9215_v48 }
 0x2fb   : > { %8580 = vmatpush3.bf16.msra.mxu1 %v9216_v49  ;;  %8461 = vmatprep.subr.bf16.mxu0 %v9339_v1 }
 0x2fc   : > { %8581 = vmatprep.subr.bf16.mxu1 %v9339_v1 }
 0x2fe   : > { %8462 = vmatpush3.bf16.msra.mxu0 %v9217_v50 }
 0x2ff   : > { %8582 = vmatpush3.bf16.msra.mxu1 %v9218_v51  ;;  %8463 = vmatprep.subr.bf16.mxu0 %v9339_v1 }
 0x300   : > { %8583 = vmatprep.subr.bf16.mxu1 %v9339_v1 }
 0x302   : > { %8464 = vmatpush3.bf16.msra.mxu0 %v9219_v37 }
 0x303   : > { %8584 = vmatpush3.bf16.msra.mxu1 %v9220_v53  ;;  %8465 = vmatprep.subr.bf16.mxu0 %v9339_v1 }
 0x304   : > { %8585 = vmatprep.subr.bf16.mxu1 %v9339_v1 }
 0x306   : > { %8466 = vmatpush3.bf16.msra.mxu0 %v9221_v56 }
 0x307   : > { %8586 = vmatpush3.bf16.msra.mxu1 %v9222_v57  ;;  %8467 = vmatprep.subr.bf16.mxu0 %v9339_v1 }
 0x308   : > { %8587 = vmatprep.subr.bf16.mxu1 %v9339_v1 }
 0x30a   : > { %8468 = vmatpush3.bf16.msra.mxu0 %v9223_v60 }
 0x30b   : > { %8588 = vmatpush3.bf16.msra.mxu1 %v9224_v61  ;;  %8469 = vmatprep.subr.bf16.mxu0 %v9339_v1 }
 0x30c   : > { %8589 = vmatprep.subr.bf16.mxu1 %v9339_v1 }
 0x30e   : > { %8470 = vmatpush3.bf16.msra.mxu0 %v9225_v3 }
 0x30f   : > { %8590 = vmatpush3.bf16.msra.mxu1 %v9226_v4 }
 0x311   : > { %8472 = vmatmul.mubr.bf16.vlgmr.msra.gmra.mrb[12].mxu0 %v5094_v5 }
 0x312   : > { %8592 = vmatmul.mubr.bf16.vlgmr.msra.gmra.mrb[12].mxu1 %v5787_v6 }
 0x324   : > { %v3792_v7 = vpop.f32.mrb[8].mxu0 }
 0x325   : > { %v3799_v8 = vpack.c.bf16 %v3792_v7, %v3792_v7  ;;  %v3801_v9 = vrot.slane %v3792_v7, 4  ;;  %v3808_v10 = vmul.f32 %v3792_v7, %v3792_v7  ;;  %v4485_v11 = vpop.f32.mrb[8].mxu1  ;;  %v8233_v12 = vpop.f32.mrb[9].mxu0 }
 0x326   : > { %v4492_v13 = vpack.c.bf16 %v4485_v11, %v4485_v11  ;;  %v4494_v14 = vrot.slane %v4485_v11, 4  ;;  %v4501_v15 = vmul.f32 %v4485_v11, %v4485_v11  ;;  %v8353_v16 = vpop.f32.mrb[9].mxu1  ;;  %v3795_v17 = vpop.f32.mrb[10].mxu0 }
 0x327   : > { %3800 = vst [vmem:[%s10377_s11 + $0x10] sm:$0xf] %v3799_v8  ;;  %v3802_v1 = vadd.f32 %v3801_v9, %v3792_v7  ;;  %v3809_v18 = vrot.slane %v3808_v10, 4  ;;  %v4488_v19 = vpop.f32.mrb[10].mxu1  ;;  %v8234_v20 = vpop.f32.mrb[11].mxu0 }
 0x328   : > { %4493 = vst [vmem:[%s10377_s11 + $0x14] sm:$0xf] %v4492_v13  ;;  %v4495_v21 = vadd.f32 %v4494_v14, %v4485_v11  ;;  %v4502_v22 = vrot.slane %v4501_v15, 4  ;;  %v8354_v25 = vpop.f32.mrb[11].mxu1 }
 0x329   : > { %v3803_v29 = vrot.slane %v3802_v1, 2  ;;  %v3810_v33 = vadd.f32 %v3809_v18, %v3808_v10 }
 0x32a   : > { %v4496_v28 = vrot.slane %v4495_v21, 2  ;;  %v4503_v30 = vadd.f32 %v4502_v22, %v4501_v15 }
 0x32b   : > { %v3804_v31 = vadd.f32 %v3803_v29, %v3802_v1  ;;  %v3811_v32 = vrot.slane %v3810_v33, 2 }
 0x32c   : > { %v4497_v35 = vadd.f32 %v4496_v28, %v4495_v21  ;;  %v4504_v36 = vrot.slane %v4503_v30, 2 }
 0x32d   : > { %v3805_v38 = vrot.slane %v3804_v31, 1  ;;  %v3812_v39 = vadd.f32 %v3811_v32, %v3810_v33 }
 0x32e   : > { %v4498_v40 = vrot.slane %v4497_v35, 1  ;;  %v4505_v41 = vadd.f32 %v4504_v36, %v4503_v30 }
 0x32f   : > { %v3806_v42 = vadd.f32 %v3805_v38, %v3804_v31  ;;  %v3813_v43 = vrot.slane %v3812_v39, 1 }
 0x330   : > { %v4506_v44 = vrot.slane %v4505_v41, 1  ;;  %v4499_v23 = vadd.f32 %v4498_v40, %v4497_v35 }
 0x331   : > { %v3807_v45 = vadd.f32 %v3806_v42, %v10841_v24  ;;  %v3814_v46 = vadd.f32 %v3813_v43, %v3812_v39 }
 0x332   : > { %v4507_v26 = vadd.f32 %v4506_v44, %v4505_v41 }
 0x333   : > { %v3815_v47 = vadd.f32 %v3814_v46, %v10850_v27  ;;  %v11188_v48 = vadd.f32 %v4499_v23, %v3807_v45 }
 0x335   : > { %v11190_v49 = vadd.f32 %v4507_v26, %v3815_v47 }
 0x3e4   : > { %v5178_v50 = vpop.f32.mrb[12].mxu0 }
 0x3e5   : > { %v5185_v51 = vpack.c.bf16 %v5178_v50, %v5178_v50  ;;  %v5187_v34 = vrot.slane %v5178_v50, 4  ;;  %v5194_v37 = vmul.f32 %v5178_v50, %v5178_v50  ;;  %v5871_v52 = vpop.f32.mrb[12].mxu1  ;;  %v8473_v53 = vpop.f32.mrb[13].mxu0 }
 0x3e6   : > { %v5878_v24 = vpack.c.bf16 %v5871_v52, %v5871_v52  ;;  %v5880_v27 = vrot.slane %v5871_v52, 4  ;;  %v5887_v54 = vmul.f32 %v5871_v52, %v5871_v52  ;;  %v8593_v55 = vpop.f32.mrb[13].mxu1  ;;  %v5181_v56 = vpop.f32.mrb[14].mxu0 }
 0x3e7   : > { %5186 = vst [vmem:[%s10377_s11 + $0x18] sm:$0xf] %v5185_v51  ;;  %v5188_v57 = vadd.f32 %v5187_v34, %v5178_v50  ;;  %v5195_v58 = vrot.slane %v5194_v37, 4  ;;  %v5874_v59 = vpop.f32.mrb[14].mxu1  ;;  %v8474_v60 = vpop.f32.mrb[15].mxu0 }
 0x3e8   : > { %5879 = vst [vmem:[%s10377_s11 + $0x1c] sm:$0xf] %v5878_v24  ;;  %v5881_v61 = vadd.f32 %v5880_v27, %v5871_v52  ;;  %v5888_v62 = vrot.slane %v5887_v54, 4  ;;  %v8594_v63 = vpop.f32.mrb[15].mxu1 }
 0x3e9   : > { %v5189_v0 = vrot.slane %v5188_v57, 2  ;;  %v5196_v2 = vadd.f32 %v5195_v58, %v5194_v37 }
 0x3ea   : > { %9240 = shalt.err (!%p9237_p5)
}
 0x3eb   : > { %s9241_s11 = scalar_lea.hbm %s11197_s8, 512  ;;  %s9245_s13 = scalar_lea.hbm %s11286_s4, 1024 }
 0x3ec   : > { %p9242_p6 = scmp.ne.s32.totalorder %s11197_s8, %s9241_s11  ;;  %p9246_p10 = scmp.lt.u32.totalorder %s11197_s8, %s11286_s4 }
 0x3ed   : > { %p9247_p11 = scmp.lt.u32.totalorder %s9245_s13, %s9241_s11  ;;  %p9249_p13 = scmp.lt.u32.totalorder %s9241_s11, %s11197_s8 }
 0x3ee   : > { %p9243_p7 = pnand %p9242_p6, %p9415_p4 }
 0x3ef   : > { %p9248_p12 = por %p9247_p11, %p9246_p10 }
 0x3f0   : > { %p9244_p9 = pneg %p9243_p7 }
 0x3f1   : > { %p9250_p0 = por %p9249_p13, %p9248_p12 }
 0x3f3   : > { %p9251_p1 = pnand %p9250_p0, %p9244_p9 }
 0x3f5   : > { %9254 = shalt.err (!%p9251_p1)
}
 0x3f6   : > { %s9342_s10 = smov 64   ;;  %s9343_s12 = smov 4   ;;  %v5882_v3 = vrot.slane %v5881_v61, 2  ;;  %v5889_v4 = vadd.f32 %v5888_v62, %v5887_v54  ;;  %v5190_v5 = vadd.f32 %v5189_v0, %v5188_v57  ;;  %v5197_v6 = vrot.slane %v5196_v2, 2 }
 0x3f7   : > { %8755 = dma.vmem_to_hbm [thread:$0]  (%p9415_p4), %s11199_s27, 512, %s11197_s8, %s5898_s9, %s9342_s10, %s9342_s10, %s9343_s12  }
 0x3f8   : > { %v5883_v7 = vadd.f32 %v5882_v3, %v5881_v61  ;;  %v5890_v8 = vrot.slane %v5889_v4, 2  ;;  %s6095_s14 = sshll.u32 %s10348_s15, 1  ;;  %v5191_v9 = vrot.slane %v5190_v5, 1  ;;  %v5198_v10 = vadd.f32 %v5197_v6, %v5196_v2  ;;  %s7196_s27 = sshll.u32 %s9329_s21, 5 }
 0x3f9   : > { %s313_s8 = scalar_lea.vmem [#allocation4], %s6095_s14  ;;  %s11234_s11 = scalar_lea.hbm %s11287_s5, %s7196_s27 }
 0x3fa   : > { %v5884_v11 = vrot.slane %v5883_v7, 1  ;;  %v5891_v12 = vadd.f32 %v5890_v8, %v5889_v4  ;;  %v5192_v13 = vadd.f32 %v5191_v9, %v5190_v5  ;;  %v5199_v14 = vrot.slane %v5198_v10, 1  ;;  %s5935_s9 = sshll.u32 %s313_s8, 4  ;;  %s5903_s21 = scalar_lea.sflag [#allocation5], %s10348_s15  ;;  %s11236_s9 = int_to_ptr.vmem [resolvable:$true] %s5935_s9 }
 0x3fb   : > { %s9255_s17 = scalar_lea.vmem %s11236_s9, 32  ;;  %s9344_s24 = smov [#allocation4]  }
 0x3fc   : > { %v5892_v15 = vrot.slane %v5891_v12, 1  ;;  %v5193_v16 = vadd.f32 %v5192_v13, %v11188_v48  ;;  %v5200_v17 = vadd.f32 %v5199_v14, %v5198_v10  ;;  %v5885_v1 = vadd.f32 %v5884_v11, %v5883_v7  ;;  %p9256_p2 = scmp.ne.s32.totalorder %s11236_s9, %s9255_s17  ;;  %s9259_s13 = sshll.u32 %s9344_s24, 4  ;;  %s9260_s13 = int_to_ptr.vmem [resolvable:$false] %s9259_s13 }
 0x3fd   : > { %s9261_s25 = scalar_lea.vmem %s9260_s13, 64  ;;  %p9262_p6 = scmp.lt.s32.totalorder %s11236_s9, %s9260_s13 }
 0x3fe   : > { %v5201_v18 = vadd.f32 %v5200_v17, %v11190_v49  ;;  %v5886_v19 = vadd.f32 %v5885_v1, %v5193_v16  ;;  %v5893_v20 = vadd.f32 %v5892_v15, %v5891_v12  ;;  %p9257_p3 = pnand %p9256_p2, %p9415_p4  ;;  %p9263_p7 = scmp.lt.s32.totalorder %s9261_s25, %s9255_s17 }
 0x400   : > { %v5894_v21 = vadd.f32 %v5893_v20, %v5201_v18  ;;  %5895 = vst [vmem:[%s313_s8] sm:$0x1] %v5886_v19  ;;  %p9258_p5 = pneg %p9257_p3  ;;  %p9264_p9 = por %p9263_p7, %p9262_p6 }
 0x402   : > { %5896 = vst [vmem:[%s313_s8 + $0x1] sm:$0x1] %v5894_v21  ;;  %p9265_p10 = pnand %p9264_p9, %p9258_p5 }
 0x404   : > { %9268 = shalt.err (!%p9265_p10)
}
 0x405   : > { %s9269_s15 = scalar_lea.hbm %s11234_s11, 32  ;;  %s9273_s12 = scalar_lea.hbm %s11287_s5, 64 }
 0x406   : > { %p9270_p11 = scmp.ne.s32.totalorder %s11234_s11, %s9269_s15  ;;  %p9274_p0 = scmp.lt.u32.totalorder %s11234_s11, %s11287_s5 }
 0x407   : > { %p9275_p1 = scmp.lt.u32.totalorder %s9273_s12, %s9269_s15  ;;  %p9277_p3 = scmp.lt.u32.totalorder %s9269_s15, %s11234_s11 }
 0x408   : > { %p9271_p12 = pnand %p9270_p11, %p9415_p4 }
 0x409   : > { %p9276_p2 = por %p9275_p1, %p9274_p0 }
 0x40a   : > { %p9272_p13 = pneg %p9271_p12 }
 0x40b   : > { %p9278_p5 = por %p9277_p3, %p9276_p2 }
 0x40d   : > { %p9279_p6 = pnand %p9278_p5, %p9272_p13 }
 0x40f   : > { %9282 = shalt.err (!%p9279_p6)
}
 0x410   : > { %8756 = dma.vmem_to_hbm [thread:$0]  (%p9415_p4), %s11236_s9, 32, %s11234_s11, %s5903_s21  }
 0x411 PF: > { %p8766_p7 = scmp.ge.s32.totalorder %s9337_s23, 2  ;;  %s5947_s8 = sand.u32 1, %s9317_s18  }
 0x412   : > { %s5948_s16 = scalar_lea.sflag [#allocation3], %s5947_s8 }
 0x413   : > { %p8760_p9 = pnand %p8766_p7, %p9422_p8 }
 0x415   : > { %9308 = dma.done.wait (!%p8760_p9), %s5948_s16, 512  }
 0x416   : > { %9310 = vsyncadd (!%p8760_p9), %s5948_s16, 4294966784  ;;  %s5957_s7 = scalar_lea.sflag [#allocation5], %s5947_s8 }
 0x417   : > { %9312 = dma.done.wait (!%p8760_p9), %s5957_s7, 32  }
 0x418   : > { %9314 = vsyncadd (!%p8760_p9), %s5957_s7, 4294967264  ;;  %s22_s23 = sadd.s32 1, %s9337_s23   ;;  %s11290_s18 = smov %s9321_s19 }
 0x419   : > { %p19_p10 = scmp.ge.s32.totalorder %s22_s23, 4   ;;  %s11291_s19 = smov %s9325_s20 }
 0x41a   : > { %s11292_s20 = smov %s9428_s6  ;;  %s11293_s21 = smov %s9333_s22 }
 0x41b   : > { %s11294_s22 = smov %s11296_s26  ;;  %21 = sbr.rel (!%p19_p10) target bundleno = 6 (0x6), region = 120 }
 0x422   :  { %5962 = vsyncpa [#allocation3], 1 }
 0x423   :  { %5964 = vsyncpa [#allocation3 + $0x1], 1 }
 0x424   :  { %5965 = vsyncpa [#allocation5], 1 }
 0x425   :  { %5967 = vsyncpa [#allocation5 + $0x1], 1 }

</bundles_post_ra>
